<compile_context>
chip_gen: v6e
topology: v6e:2x2x1
jax: 0.10.0
libtpu: 0.0.40
codegen_flags: <defaults>
</compile_context>

<pallas_src>
import functools
import numpy as np
import jax
import jax.numpy as jnp
from jax import lax
from jax.experimental import pallas as pl
from jax.experimental.pallas import tpu as pltpu


def _round_up(n, m):
    return ((n + m - 1) // m) * m


# normalized [1,2,1] x [1,2,1] blur, coefficient index = kh*3 + kw (fallback)
_BLUR_COEF = tuple((np.outer([1., 2., 1.], [1., 2., 1.]) / 16.0).reshape(-1).tolist())


# ----------------------------------------------------------------------------
# Device / capability probes (cached; run eagerly in __main__)
# ----------------------------------------------------------------------------

_ROLL_OK = None
_NTC = None


def _num_tensorcores():
    """TensorCores one pallas_call can shard over (megacore: v4/v5p/v7x)."""
    global _NTC
    if _NTC is None:
        try:
            kind = jax.devices()[0].device_kind.lower()
            _NTC = 2 if ("v4" in kind or "v5p" in kind or "v7" in kind) else 1
        except Exception:
            _NTC = 1
    return _NTC


def _roll_probe():
    """Check pltpu.roll lowers (bf16 negative shift + f32 positive shift) and
    matches np.roll semantics; otherwise use the stacked-tap fallback path."""
    def kern(x_ref, o_ref):
        xb = x_ref[...]
        o_ref[...] = (pltpu.roll(xb, -7, axis=1).astype(jnp.float32)
                      + pltpu.roll(xb.astype(jnp.float32), 11, axis=1))
    try:
        xi = (np.arange(16 * 256) % 251).astype(np.float32).reshape(16, 256)
        y = pl.pallas_call(
            kern, out_shape=jax.ShapeDtypeStruct((16, 256), jnp.float32)
        )(jnp.asarray(xi, dtype=jnp.bfloat16))
        y = np.asarray(jax.block_until_ready(y))
        ref = np.roll(xi, -7, axis=1) + np.roll(xi, 11, axis=1)
        return bool(np.array_equal(y, ref))
    except Exception:
        return False


def _use_roll():
    global _ROLL_OK
    if _ROLL_OK is None:
        _ROLL_OK = _roll_probe()
    return _ROLL_OK


# ----------------------------------------------------------------------------
# Pallas kernels
# ----------------------------------------------------------------------------

def _conv3x3_kernel(*refs, wp, cinp, fuse_blur):
    """3x3 'same' conv as one K=9*Cin MXU GEMM per image, optional fused
    [1,2,1]x[1,2,1]/16 blur epilogue.  Lanes = per-image zero-padded flat
    (Hp*Wp rounded up to 128); taps built in-kernel with XLU rolls."""
    if fuse_blur:
        x_ref, w_ref, mask_ref, o_ref, taps_ref = refs
        mv = mask_ref[...]                          # (1, lpad) f32
    else:
        x_ref, w_ref, o_ref, taps_ref = refs
        mv = None
    wv = w_ref[...]                                 # (cout, 9*cinp) bf16
    n_img = x_ref.shape[0]
    for bi in range(n_img):                         # static, tiny
        x = x_ref[bi]                               # (cinp, lpad) bf16
        # in-kernel im2col: 9 rolls into one bf16 VMEM scratch, tap-major rows
        for kh in range(3):
            for kw in range(3):
                s = kh * wp + kw
                tap = x if s == 0 else pltpu.roll(x, -s, axis=1)
                taps_ref[pl.ds((kh * 3 + kw) * cinp, cinp), :] = tap
        # single MXU GEMM, contraction K = 9*cinp, f32 accumulation
        y = jnp.dot(wv, taps_ref[...], preferred_element_type=jnp.float32)
        if fuse_blur:
            # re-pad the conv result on the same grid (shift by wp+1, zero the
            # pad ring + tail), then separable [1,2,1]/4 x [1,2,1]/4 blur.
            ypad = pltpu.roll(y, wp + 1, axis=1) * mv
            t = (ypad + 2.0 * pltpu.roll(ypad, -1, axis=1)
                 + pltpu.roll(ypad, -2, axis=1))
            y = (t + 2.0 * pltpu.roll(t, -wp, axis=1)
                 + pltpu.roll(t, -2 * wp, axis=1)) * (1.0 / 16.0)
        o_ref[bi] = y


def _noise_act_in_style_kernel(x_ref, nz_ref, nw_ref, nb_ref, ss_ref, sb_ref,
                               m_ref, o_ref, *, inv_p):
    # x: (B, c, Ppad)  nz: (B, 1, Ppad)  nw/nb: (1, c, 1)  ss/sb: (B, c, 1)
    h = x_ref[...] + nz_ref[...] * nw_ref[...] + nb_ref[...]      # AddNoise
    h = jnp.where(h >= 0, h, 0.2 * h)                             # LeakyReLU
    hm = h * m_ref[...]                                           # mask pad lanes
    mean = jnp.sum(hm, axis=-1, keepdims=True) * inv_p
    e2 = jnp.sum(hm * hm, axis=-1, keepdims=True) * inv_p         # E[h^2]
    var = jnp.maximum(e2 - mean * mean, 0.0)
    normed = (h - mean) * lax.rsqrt(var + 1e-8)                   # InstanceNorm
    o_ref[...] = normed * (1.0 + ss_ref[...]) + sb_ref[...]       # AdaIN


def _rgb_kernel(x_ref, w_ref, b_ref, o_ref):
    # 1x1 conv with bias, per image: (cout, c) @ (c, Ppad) + (cout, 1)
    wv = w_ref[...]
    bv = b_ref[...]
    for bi in range(x_ref.shape[0]):
        o_ref[bi] = jnp.dot(wv, x_ref[bi],
                            preferred_element_type=jnp.float32) + bv


def _gemm_kernel(a_ref, b_ref, o_ref):               # fallback conv GEMM
    o_ref[...] = jnp.dot(a_ref[...], b_ref[...],
                         preferred_element_type=jnp.float32)


def _blur_taps_kernel(t_ref, o_ref):                  # fallback blur
    acc = _BLUR_COEF[0] * t_ref[0]
    for k in range(1, 9):
        acc = acc + _BLUR_COEF[k] * t_ref[k]
    o_ref[...] = acc


# ----------------------------------------------------------------------------
# Wrappers (glue + pallas_call); activations stay in plain NCHW
# ----------------------------------------------------------------------------

def upsample2x(x):
    # F.interpolate(scale_factor=2, mode='nearest') on NCHW
    # TODO(synk): fold into the upconv as 4 exact phase convolutions on the
    # low-res input to avoid the 4x-larger intermediate.
    return jnp.repeat(jnp.repeat(x, 2, axis=2), 2, axis=3)


def _conv3x3_fallback(x, w):
    b, cin, h, wd = x.shape
    cout = w.shape[0]
    xp = jnp.pad(x, ((0, 0), (0, 0), (1, 1), (1, 1)))
    taps = jnp.stack([xp[:, :, kh:kh + h, kw:kw + wd]
                      for kh in range(3) for kw in range(3)], axis=0)
    patches = jnp.transpose(taps, (0, 2, 1, 3, 4)).reshape(9 * cin, b * h * wd)
    wmat = jnp.transpose(w, (0, 2, 3, 1)).reshape(cout, 9 * cin)
    out = pl.pallas_call(
        _gemm_kernel,
        out_shape=jax.ShapeDtypeStruct((cout, b * h * wd), jnp.float32),
    )(wmat.astype(jnp.bfloat16), patches.astype(jnp.bfloat16))
    return out.reshape(cout, b, h, wd).transpose(1, 0, 2, 3)


def _blur_fallback(x):
    b, c, h, w = x.shape
    xp = jnp.pad(x, ((0, 0), (0, 0), (1, 1), (1, 1)))
    taps = jnp.stack([xp[:, :, kh:kh + h, kw:kw + w].reshape(b * c, h * w)
                      for kh in range(3) for kw in range(3)], axis=0)
    out = pl.pallas_call(
        _blur_taps_kernel,
        out_shape=jax.ShapeDtypeStruct((b * c, h * w), jnp.float32),
    )(taps.astype(jnp.float32))
    return out.reshape(b, c, h, w)


def conv3x3(x, w, fuse_blur=False):
    """3x3 conv, padding=1, no bias, NCHW; optionally fused Blur2d([1,2,1])."""
    b, cin, h, wd = x.shape
    cout = w.shape[0]
    if not _use_roll():
        out = _conv3x3_fallback(x, w)
        return _blur_fallback(out) if fuse_blur else out

    hp, wp = h + 2, wd + 2
    limg = hp * wp
    lpad = _round_up(limg, 128)            # lane-dense vregs / unmasked stores
    cinp = _round_up(cin, 16)              # aligned bf16 sublane tap slices
    xp = jnp.pad(x, ((0, 0), (0, cinp - cin), (1, 1), (1, 1)))
    xp = jnp.pad(xp.reshape(b, cinp, limg),
                 ((0, 0), (0, 0), (0, lpad - limg))).astype(jnp.bfloat16)
    wmat = jnp.pad(w, ((0, 0), (0, cinp - cin), (0, 0), (0, 0)))
    wmat = jnp.transpose(wmat, (0, 2, 3, 1)).reshape(cout, 9 * cinp)
    wmat = wmat.astype(jnp.bfloat16)

    ntc = _num_tensorcores()
    nchunk = ntc if (ntc > 1 and b % ntc == 0) else 1      # batch grid only on
    bblk = b // nchunk                                     # multi-TC chips

    inputs = [xp, wmat]
    in_specs = [pl.BlockSpec((bblk, cinp, lpad), lambda i: (i, 0, 0)),
                pl.BlockSpec((cout, 9 * cinp), lambda i: (0, 0))]
    if fuse_blur:
        m = np.zeros((hp, wp), np.float32)
        m[1:h + 1, 1:wd + 1] = 1.0
        mask = np.zeros((1, lpad), np.float32)
        mask[0, :limg] = m.reshape(-1)
        inputs.append(jnp.asarray(mask))
        in_specs.append(pl.BlockSpec((1, lpad), lambda i: (0, 0)))

    # TODO(synk): at large resolutions also tile the lane axis on whole
    # padded-image boundaries and set vmem_limit_bytes against the 16 MiB
    # (v5e) / 32 MiB (v6e/v7x) scoped-VMEM budgets.
    out = pl.pallas_call(
        functools.partial(_conv3x3_kernel, wp=wp, cinp=cinp,
                          fuse_blur=fuse_blur),
        out_shape=jax.ShapeDtypeStruct((b, cout, lpad), jnp.float32),
        grid=(nchunk,),
        in_specs=in_specs,
        out_specs=pl.BlockSpec((bblk, cout, lpad), lambda i: (i, 0, 0)),
        scratch_shapes=[pltpu.VMEM((9 * cinp, lpad), jnp.bfloat16)],
        compiler_params=pltpu.CompilerParams(
            dimension_semantics=("parallel",)),
    )(*inputs)
    return out[:, :, :limg].reshape(b, cout, hp, wp)[:, :, :h, :wd]


def fused_noise_act_style(x, noise, nw, nb, ss, sb):
    """AddNoise + LeakyReLU(0.2) + InstanceNorm(1e-8) + AdaIN, fused, lane-dense.
    x (B,C,H,W), noise (B,1,H,W), nw/nb (C,), ss/sb (B,C)."""
    b, c, h, w = x.shape
    p = h * w
    ppad = _round_up(p, 128)                 # lane-dense stores; masked stats
    xr = jnp.pad(x.reshape(b, c, p), ((0, 0), (0, 0), (0, ppad - p)))
    nz = jnp.pad(noise.reshape(b, 1, p), ((0, 0), (0, 0), (0, ppad - p)))
    mask = np.zeros((1, 1, ppad), np.float32)
    mask[..., :p] = 1.0

    ntc = _num_tensorcores()
    nchunk = ntc if (ntc > 1 and c % (8 * ntc) == 0) else 1
    cb = c // nchunk

    out = pl.pallas_call(
        functools.partial(_noise_act_in_style_kernel, inv_p=1.0 / p),
        out_shape=jax.ShapeDtypeStruct((b, c, ppad), jnp.float32),
        grid=(nchunk,),
        in_specs=[
            pl.BlockSpec((b, cb, ppad), lambda i: (0, i, 0)),
            pl.BlockSpec((b, 1, ppad), lambda i: (0, 0, 0)),
            pl.BlockSpec((1, cb, 1), lambda i: (0, i, 0)),
            pl.BlockSpec((1, cb, 1), lambda i: (0, i, 0)),
            pl.BlockSpec((b, cb, 1), lambda i: (0, i, 0)),
            pl.BlockSpec((b, cb, 1), lambda i: (0, i, 0)),
            pl.BlockSpec((1, 1, ppad), lambda i: (0, 0, 0)),
        ],
        out_specs=pl.BlockSpec((b, cb, ppad), lambda i: (0, i, 0)),
        compiler_params=pltpu.CompilerParams(
            dimension_semantics=("parallel",)),
    )(xr.astype(jnp.float32), nz.astype(jnp.float32),
      nw.reshape(1, c, 1).astype(jnp.float32),
      nb.reshape(1, c, 1).astype(jnp.float32),
      ss.reshape(b, c, 1).astype(jnp.float32),
      sb.reshape(b, c, 1).astype(jnp.float32),
      jnp.asarray(mask))
    return out[:, :, :p].reshape(b, c, h, w)


def to_rgb(x, w, bias):
    """1x1 conv with bias on NCHW (kept in f32; output is the final image)."""
    b, c, h, wd = x.shape
    cout = w.shape[0]
    p = h * wd
    ppad = _round_up(p, 128)
    xr = jnp.pad(x.reshape(b, c, p), ((0, 0), (0, 0), (0, ppad - p)))
    out = pl.pallas_call(
        _rgb_kernel,
        out_shape=jax.ShapeDtypeStruct((b, cout, ppad), jnp.float32),
    )(xr.astype(jnp.float32), w.reshape(cout, c).astype(jnp.float32),
      bias.reshape(cout, 1).astype(jnp.float32))
    return out[:, :, :p].reshape(b, cout, h, wd)


def style_params_all(ws, blocks):
    """All AffineStyle FCs in ONE GEMM, done directly in XLA: the (B, w_dim) x
    (w_dim, sum 4*C) product is dwarfed by a pallas_call launch (review)."""
    w_cat = jnp.concatenate(
        [jnp.concatenate([bp['style1_w'].T, bp['style2_w'].T], axis=1)
         for bp in blocks], axis=1)
    b_cat = jnp.concatenate(
        [jnp.concatenate([bp['style1_b'], bp['style2_b']]) for bp in blocks])
    return jnp.dot(ws, w_cat) + b_cat[None, :]


# ----------------------------------------------------------------------------
# Module forward (mirrors SynthesisG.forward / Block.forward)
# ----------------------------------------------------------------------------

def block_forward(p, x, style_sl, noise1, noise2, skip_first):
    s1s, s1b, s2s, s2b = style_sl
    if not skip_first:
        # UpConv2d (do_fuse=False at these resolutions): nearest x2 + conv3x3,
        # with Blur2d([1,2,1]) fused as an in-kernel epilogue.
        # TODO(synk): the fused conv_transpose branch of UpConv2d
        # (in_res*2 >= 128) is not implemented; never taken at these sizes.
        x = conv3x3(upsample2x(x), p['upconv1_w'], fuse_blur=True)
    x = fused_noise_act_style(x, noise1, p['noise1_w'], p['noise1_b'], s1s, s1b)
    x = conv3x3(x, p['conv2_w'], fuse_blur=False)
    x = fused_noise_act_style(x, noise2, p['noise2_w'], p['noise2_b'], s2s, s2b)
    return x


def synthesis_forward(params, ws, noises, lod=0, alpha=1.0):
    blocks = params['blocks']
    rgbs = params['rgbs']
    assert 0 <= lod < len(blocks)
    stop_after = len(blocks) - lod - 1
    bsz = ws.shape[0]

    styles = style_params_all(ws, blocks)                  # (B, sum 4*C)

    c0 = params['const'].shape[1]
    x = jnp.broadcast_to(params['const'], (bsz, c0, 4, 4))
    y = None
    off = 0
    for i, bp in enumerate(blocks):
        c = bp['conv2_w'].shape[0]
        sl = (styles[:, off:off + c], styles[:, off + c:off + 2 * c],
              styles[:, off + 2 * c:off + 3 * c],
              styles[:, off + 3 * c:off + 4 * c])
        off += 4 * c
        x = block_forward(bp, x, sl, noises[2 * i], noises[2 * i + 1],
                          skip_first=(i == 0))
        if i == stop_after - 1:
            y = to_rgb(upsample2x(x), rgbs[i]['w'], rgbs[i]['b'])
        if i == stop_after:
            out = to_rgb(x, rgbs[i]['w'], rgbs[i]['b'])
            return out if stop_after == 0 else (1.0 - alpha) * y + alpha * out


# ----------------------------------------------------------------------------
# Deterministic parameter construction (shapes from SynthesisG.__init__,
# wscale runtime coefficients folded into the weights)
# ----------------------------------------------------------------------------

def make_params(key, w_dim=32, image_out_nc=3, image_out_res=16,
                nc_base=64, nc_decay=1.0, nc_max=32):
    log_res = int(np.log2(image_out_res))
    assert image_out_res == 2 ** log_res and image_out_res >= 4

    def get_out_nc(lr):
        return min(int(nc_base / 2 ** (lr * nc_decay)), nc_max)

    keys = iter(jax.random.split(key, 128))

    def nrm(shape, std):
        return jax.random.normal(next(keys), shape, jnp.float32) * std

    params = {'const': jnp.ones((1, get_out_nc(1), 4, 4), jnp.float32)}
    blocks, rgbs = [], []
    in_nc = None
    for in_log_res in range(1, log_res):
        out_nc = get_out_nc(in_log_res)
        p = {}
        if in_log_res > 1:  # skip_first_layer only for the 4x4 block
            p['upconv1_w'] = nrm((out_nc, in_nc, 3, 3),
                                 np.sqrt(2.0) / np.sqrt(in_nc * 9))
        # AddNoise params are zero-initialized in the reference; use small
        # deterministic random values so the noise path is exercised.
        p['noise1_w'] = nrm((out_nc,), 0.1)
        p['noise1_b'] = nrm((out_nc,), 0.1)
        p['noise2_w'] = nrm((out_nc,), 0.1)
        p['noise2_b'] = nrm((out_nc,), 0.1)
        fc_std = 1.0 / np.sqrt(w_dim)        # gain=1 wscale
        p['style1_w'] = nrm((2 * out_nc, w_dim), fc_std)
        p['style1_b'] = jnp.zeros((2 * out_nc,), jnp.float32)
        p['style2_w'] = nrm((2 * out_nc, w_dim), fc_std)
        p['style2_b'] = jnp.zeros((2 * out_nc,), jnp.float32)
        p['conv2_w'] = nrm((out_nc, out_nc, 3, 3),
                           np.sqrt(2.0) / np.sqrt(out_nc * 9))
        blocks.append(p)
        rgbs.append({'w': nrm((image_out_nc, out_nc, 1, 1),
                              1.0 / np.sqrt(out_nc)),
                     'b': jnp.zeros((image_out_nc,), jnp.float32)})
        in_nc = out_nc
    params['blocks'] = blocks
    params['rgbs'] = rgbs
    return params


# ----------------------------------------------------------------------------

if __name__ == "__main__":
    key = jax.random.PRNGKey(0)
    kp, kw, kn = jax.random.split(key, 3)

    B, W_DIM, OUT_RES = 2, 32, 16
    params = make_params(kp, w_dim=W_DIM, image_out_res=OUT_RES,
                         nc_base=64, nc_max=32)

    # latent w (same w used for all layers, as in the PyTorch forward when a
    # single 2-D tensor is given)
    ws = jax.random.normal(kw, (B, W_DIM), jnp.float32)

    # explicit per-layer noise (replaces in-module torch.randn fallback)
    res_per_layer = []
    r = 4
    for _ in range(len(params['blocks'])):
        res_per_layer += [r, r]
        r *= 2
    nkeys = jax.random.split(kn, len(res_per_layer))
    noises = [jax.random.normal(nk, (B, 1, rr, rr), jnp.float32)
              for nk, rr in zip(nkeys, res_per_layer)]

    _use_roll()            # run the probes eagerly, outside the jit trace
    _num_tensorcores()

    fwd = jax.jit(functools.partial(synthesis_forward, lod=0, alpha=0.7))
    out = jax.block_until_ready(fwd(params, ws, noises))
    assert out.shape == (B, 3, OUT_RES, OUT_RES), out.shape
    assert out.dtype == jnp.float32
    print("KERNEL_OK")
</pallas_src>

<mosaic_0001>
module attributes {stable_mosaic.version = 11 : i64} {
  func.func @_noise_act_in_style_kernel(%arg0: i32, %arg1: memref<2x32x128xf32, #tpu.memory_space<vmem>>, %arg2: memref<2x1x128xf32, #tpu.memory_space<vmem>>, %arg3: memref<1x32x1xf32, #tpu.memory_space<vmem>>, %arg4: memref<1x32x1xf32, #tpu.memory_space<vmem>>, %arg5: memref<2x32x1xf32, #tpu.memory_space<vmem>>, %arg6: memref<2x32x1xf32, #tpu.memory_space<vmem>>, %arg7: memref<1x1x128xf32, #tpu.memory_space<vmem>>, %arg8: memref<2x32x128xf32, #tpu.memory_space<vmem>>) attributes {dimension_semantics = [#tpu.dimension_semantics<parallel>], iteration_bounds = array<i64: 1>, scalar_prefetch = 0 : i64, scratch_operands = 0 : i64, tpu.core_type = #tpu.core_type<tc>, window_params = [{transform_indices = @transform_0, window_bounds = array<i64: 2, 32, 128>}, {pipeline_mode = #tpu.pipeline_mode<synchronous>, transform_indices = @transform_1, window_bounds = array<i64: 2, 1, 128>}, {transform_indices = @transform_2, window_bounds = array<i64: 1, 32, 1>}, {transform_indices = @transform_3, window_bounds = array<i64: 1, 32, 1>}, {transform_indices = @transform_4, window_bounds = array<i64: 2, 32, 1>}, {transform_indices = @transform_5, window_bounds = array<i64: 2, 32, 1>}, {pipeline_mode = #tpu.pipeline_mode<synchronous>, transform_indices = @transform_6, window_bounds = array<i64: 1, 1, 128>}, {transform_indices = @transform_7, window_bounds = array<i64: 2, 32, 128>}]} {
    %c0 = arith.constant 0 : index
    %c0_0 = arith.constant 0 : index
    %c0_1 = arith.constant 0 : index
    %0 = vector.load %arg1[%c0, %c0_0, %c0_1] : memref<2x32x128xf32, #tpu.memory_space<vmem>>, vector<2x32x128xf32>
    %c0_2 = arith.constant 0 : index
    %c0_3 = arith.constant 0 : index
    %c0_4 = arith.constant 0 : index
    %1 = vector.load %arg2[%c0_2, %c0_3, %c0_4] : memref<2x1x128xf32, #tpu.memory_space<vmem>>, vector<2x1x128xf32>
    %c0_5 = arith.constant 0 : index
    %c0_6 = arith.constant 0 : index
    %c0_7 = arith.constant 0 : index
    %2 = vector.load %arg3[%c0_5, %c0_6, %c0_7] : memref<1x32x1xf32, #tpu.memory_space<vmem>>, vector<1x32x1xf32>
    %3 = vector.broadcast %1 : vector<2x1x128xf32> to vector<2x32x128xf32>
    %4 = vector.broadcast %2 : vector<1x32x1xf32> to vector<2x32x128xf32>
    %5 = arith.mulf %3, %4 : vector<2x32x128xf32>
    %6 = arith.addf %0, %5 : vector<2x32x128xf32>
    %c0_8 = arith.constant 0 : index
    %c0_9 = arith.constant 0 : index
    %c0_10 = arith.constant 0 : index
    %7 = vector.load %arg4[%c0_8, %c0_9, %c0_10] : memref<1x32x1xf32, #tpu.memory_space<vmem>>, vector<1x32x1xf32>
    %8 = vector.broadcast %7 : vector<1x32x1xf32> to vector<2x32x128xf32>
    %9 = arith.addf %6, %8 : vector<2x32x128xf32>
    %cst = arith.constant 0.000000e+00 : f32
    %10 = vector.broadcast %cst : f32 to vector<2x32x128xf32>
    %11 = arith.cmpf oge, %9, %10 : vector<2x32x128xf32>
    %cst_11 = arith.constant 2.000000e-01 : f32
    %12 = vector.broadcast %cst_11 : f32 to vector<2x32x128xf32>
    %13 = arith.mulf %12, %9 : vector<2x32x128xf32>
    %14 = arith.select %11, %9, %13 : vector<2x32x128xi1>, vector<2x32x128xf32>
    %c0_12 = arith.constant 0 : index
    %c0_13 = arith.constant 0 : index
    %c0_14 = arith.constant 0 : index
    %15 = vector.load %arg7[%c0_12, %c0_13, %c0_14] : memref<1x1x128xf32, #tpu.memory_space<vmem>>, vector<1x1x128xf32>
    %16 = vector.broadcast %15 : vector<1x1x128xf32> to vector<2x32x128xf32>
    %17 = arith.mulf %14, %16 : vector<2x32x128xf32>
    %cst_15 = arith.constant dense<0.000000e+00> : vector<2x32xf32>
    %18 = vector.multi_reduction <add>, %17, %cst_15 [2] : vector<2x32x128xf32> to vector<2x32xf32>
    %19 = vector.shape_cast %18 : vector<2x32xf32> to vector<2x32x1xf32>
    %cst_16 = arith.constant 6.250000e-02 : f32
    %20 = vector.broadcast %cst_16 : f32 to vector<2x32x1xf32>
    %21 = arith.mulf %19, %20 : vector<2x32x1xf32>
    %22 = arith.mulf %17, %17 : vector<2x32x128xf32>
    %cst_17 = arith.constant dense<0.000000e+00> : vector<2x32xf32>
    %23 = vector.multi_reduction <add>, %22, %cst_17 [2] : vector<2x32x128xf32> to vector<2x32xf32>
    %24 = vector.shape_cast %23 : vector<2x32xf32> to vector<2x32x1xf32>
    %cst_18 = arith.constant 6.250000e-02 : f32
    %25 = vector.broadcast %cst_18 : f32 to vector<2x32x1xf32>
    %26 = arith.mulf %24, %25 : vector<2x32x1xf32>
    %27 = arith.mulf %21, %21 : vector<2x32x1xf32>
    %28 = arith.subf %26, %27 : vector<2x32x1xf32>
    %cst_19 = arith.constant 0.000000e+00 : f32
    %29 = vector.broadcast %cst_19 : f32 to vector<2x32x1xf32>
    %30 = arith.maximumf %28, %29 : vector<2x32x1xf32>
    %31 = vector.broadcast %21 : vector<2x32x1xf32> to vector<2x32x128xf32>
    %32 = arith.subf %14, %31 : vector<2x32x128xf32>
    %cst_20 = arith.constant 9.99999993E-9 : f32
    %33 = vector.broadcast %cst_20 : f32 to vector<2x32x1xf32>
    %34 = arith.addf %30, %33 : vector<2x32x1xf32>
    %35 = math.rsqrt %34 : vector<2x32x1xf32>
    %36 = vector.broadcast %35 : vector<2x32x1xf32> to vector<2x32x128xf32>
    %37 = arith.mulf %32, %36 : vector<2x32x128xf32>
    %c0_21 = arith.constant 0 : index
    %c0_22 = arith.constant 0 : index
    %c0_23 = arith.constant 0 : index
    %38 = vector.load %arg5[%c0_21, %c0_22, %c0_23] : memref<2x32x1xf32, #tpu.memory_space<vmem>>, vector<2x32x1xf32>
    %cst_24 = arith.constant 1.000000e+00 : f32
    %39 = vector.broadcast %cst_24 : f32 to vector<2x32x1xf32>
    %40 = arith.addf %39, %38 : vector<2x32x1xf32>
    %41 = vector.broadcast %40 : vector<2x32x1xf32> to vector<2x32x128xf32>
    %42 = arith.mulf %37, %41 : vector<2x32x128xf32>
    %c0_25 = arith.constant 0 : index
    %c0_26 = arith.constant 0 : index
    %c0_27 = arith.constant 0 : index
    %43 = vector.load %arg6[%c0_25, %c0_26, %c0_27] : memref<2x32x1xf32, #tpu.memory_space<vmem>>, vector<2x32x1xf32>
    %44 = vector.broadcast %43 : vector<2x32x1xf32> to vector<2x32x128xf32>
    %45 = arith.addf %42, %44 : vector<2x32x128xf32>
    %c0_28 = arith.constant 0 : index
    %c0_29 = arith.constant 0 : index
    %c0_30 = arith.constant 0 : index
    %46 = vector.load %arg8[%c0_28, %c0_29, %c0_30] : memref<2x32x128xf32, #tpu.memory_space<vmem>>, vector<2x32x128xf32>
    tpu.vector_store %arg8[%c0_28, %c0_29, %c0_30], %45 {strides = array<i32>} : memref<2x32x128xf32, #tpu.memory_space<vmem>>, vector<2x32x128xf32>,
    return
  }
  func.func @transform_0(%arg0: i32) -> (i32, i32, i32) {
    %c0_i32 = arith.constant 0 : i32
    %c0_i32_0 = arith.constant 0 : i32
    %c0_i32_1 = arith.constant 0 : i32
    return %c0_i32, %arg0, %c0_i32_0 : i32, i32, i32
  }
  func.func @transform_1(%arg0: i32) -> (i32, i32, i32) {
    %c0_i32 = arith.constant 0 : i32
    %c0_i32_0 = arith.constant 0 : i32
    %c0_i32_1 = arith.constant 0 : i32
    %c0_i32_2 = arith.constant 0 : i32
    return %c0_i32, %c0_i32_0, %c0_i32_1 : i32, i32, i32
  }
  func.func @transform_2(%arg0: i32) -> (i32, i32, i32) {
    %c0_i32 = arith.constant 0 : i32
    %c0_i32_0 = arith.constant 0 : i32
    %c0_i32_1 = arith.constant 0 : i32
    return %c0_i32, %arg0, %c0_i32_0 : i32, i32, i32
  }
  func.func @transform_3(%arg0: i32) -> (i32, i32, i32) {
    %c0_i32 = arith.constant 0 : i32
    %c0_i32_0 = arith.constant 0 : i32
    %c0_i32_1 = arith.constant 0 : i32
    return %c0_i32, %arg0, %c0_i32_0 : i32, i32, i32
  }
  func.func @transform_4(%arg0: i32) -> (i32, i32, i32) {
    %c0_i32 = arith.constant 0 : i32
    %c0_i32_0 = arith.constant 0 : i32
    %c0_i32_1 = arith.constant 0 : i32
    return %c0_i32, %arg0, %c0_i32_0 : i32, i32, i32
  }
  func.func @transform_5(%arg0: i32) -> (i32, i32, i32) {
    %c0_i32 = arith.constant 0 : i32
    %c0_i32_0 = arith.constant 0 : i32
    %c0_i32_1 = arith.constant 0 : i32
    return %c0_i32, %arg0, %c0_i32_0 : i32, i32, i32
  }
  func.func @transform_6(%arg0: i32) -> (i32, i32, i32) {
    %c0_i32 = arith.constant 0 : i32
    %c0_i32_0 = arith.constant 0 : i32
    %c0_i32_1 = arith.constant 0 : i32
    %c0_i32_2 = arith.constant 0 : i32
    return %c0_i32, %c0_i32_0, %c0_i32_1 : i32, i32, i32
  }
  func.func @transform_7(%arg0: i32) -> (i32, i32, i32) {
    %c0_i32 = arith.constant 0 : i32
    %c0_i32_0 = arith.constant 0 : i32
    %c0_i32_1 = arith.constant 0 : i32
    return %c0_i32, %arg0, %c0_i32_0 : i32, i32, i32
  }
}

module attributes {stable_mosaic.version = 11 : i64} {
  func.func @_gemm_kernel(%arg0: memref<32x288xbf16, #tpu.memory_space<vmem>>, %arg1: memref<288x32xbf16, #tpu.memory_space<vmem>>, %arg2: memref<32x32xf32, #tpu.memory_space<vmem>>) attributes {dimension_semantics = [], scalar_prefetch = 0 : i64, scratch_operands = 0 : i64, tpu.core_type = #tpu.core_type<tc>} {
    %c0 = arith.constant 0 : index
    %c0_0 = arith.constant 0 : index
    %0 = vector.load %arg0[%c0, %c0_0] : memref<32x288xbf16, #tpu.memory_space<vmem>>, vector<32x288xbf16>
    %c0_1 = arith.constant 0 : index
    %c0_2 = arith.constant 0 : index
    %1 = vector.load %arg1[%c0_1, %c0_2] : memref<288x32xbf16, #tpu.memory_space<vmem>>, vector<288x32xbf16>
    %cst = arith.constant dense<0.000000e+00> : vector<32x32xf32>
    %2 = tpu.matmul %0, %1, %cst {dimension_numbers = #tpu.dot_dimension_numbers<[1], [0], [0], [1], [0, 0, 1, 1], [], []>} : vector<32x288xbf16>, vector<288x32xbf16>, vector<32x32xf32> -> vector<32x32xf32>
    %c0_3 = arith.constant 0 : index
    %c0_4 = arith.constant 0 : index
    %3 = vector.load %arg2[%c0_3, %c0_4] : memref<32x32xf32, #tpu.memory_space<vmem>>, vector<32x32xf32>
    tpu.vector_store %arg2[%c0_3, %c0_4], %2 {strides = array<i32>} : memref<32x32xf32, #tpu.memory_space<vmem>>, vector<32x32xf32>,
    return
  }
}

module attributes {stable_mosaic.version = 11 : i64} {
  func.func @_noise_act_in_style_kernel(%arg0: i32, %arg1: memref<2x32x128xf32, #tpu.memory_space<vmem>>, %arg2: memref<2x1x128xf32, #tpu.memory_space<vmem>>, %arg3: memref<1x32x1xf32, #tpu.memory_space<vmem>>, %arg4: memref<1x32x1xf32, #tpu.memory_space<vmem>>, %arg5: memref<2x32x1xf32, #tpu.memory_space<vmem>>, %arg6: memref<2x32x1xf32, #tpu.memory_space<vmem>>, %arg7: memref<1x1x128xf32, #tpu.memory_space<vmem>>, %arg8: memref<2x32x128xf32, #tpu.memory_space<vmem>>) attributes {dimension_semantics = [#tpu.dimension_semantics<parallel>], iteration_bounds = array<i64: 1>, scalar_prefetch = 0 : i64, scratch_operands = 0 : i64, tpu.core_type = #tpu.core_type<tc>, window_params = [{transform_indices = @transform_0, window_bounds = array<i64: 2, 32, 128>}, {pipeline_mode = #tpu.pipeline_mode<synchronous>, transform_indices = @transform_1, window_bounds = array<i64: 2, 1, 128>}, {transform_indices = @transform_2, window_bounds = array<i64: 1, 32, 1>}, {transform_indices = @transform_3, window_bounds = array<i64: 1, 32, 1>}, {transform_indices = @transform_4, window_bounds = array<i64: 2, 32, 1>}, {transform_indices = @transform_5, window_bounds = array<i64: 2, 32, 1>}, {pipeline_mode = #tpu.pipeline_mode<synchronous>, transform_indices = @transform_6, window_bounds = array<i64: 1, 1, 128>}, {transform_indices = @transform_7, window_bounds = array<i64: 2, 32, 128>}]} {
    %c0 = arith.constant 0 : index
    %c0_0 = arith.constant 0 : index
    %c0_1 = arith.constant 0 : index
    %0 = vector.load %arg1[%c0, %c0_0, %c0_1] : memref<2x32x128xf32, #tpu.memory_space<vmem>>, vector<2x32x128xf32>
    %c0_2 = arith.constant 0 : index
    %c0_3 = arith.constant 0 : index
    %c0_4 = arith.constant 0 : index
    %1 = vector.load %arg2[%c0_2, %c0_3, %c0_4] : memref<2x1x128xf32, #tpu.memory_space<vmem>>, vector<2x1x128xf32>
    %c0_5 = arith.constant 0 : index
    %c0_6 = arith.constant 0 : index
    %c0_7 = arith.constant 0 : index
    %2 = vector.load %arg3[%c0_5, %c0_6, %c0_7] : memref<1x32x1xf32, #tpu.memory_space<vmem>>, vector<1x32x1xf32>
    %3 = vector.broadcast %1 : vector<2x1x128xf32> to vector<2x32x128xf32>
    %4 = vector.broadcast %2 : vector<1x32x1xf32> to vector<2x32x128xf32>
    %5 = arith.mulf %3, %4 : vector<2x32x128xf32>
    %6 = arith.addf %0, %5 : vector<2x32x128xf32>
    %c0_8 = arith.constant 0 : index
    %c0_9 = arith.constant 0 : index
    %c0_10 = arith.constant 0 : index
    %7 = vector.load %arg4[%c0_8, %c0_9, %c0_10] : memref<1x32x1xf32, #tpu.memory_space<vmem>>, vector<1x32x1xf32>
    %8 = vector.broadcast %7 : vector<1x32x1xf32> to vector<2x32x128xf32>
    %9 = arith.addf %6, %8 : vector<2x32x128xf32>
    %cst = arith.constant 0.000000e+00 : f32
    %10 = vector.broadcast %cst : f32 to vector<2x32x128xf32>
    %11 = arith.cmpf oge, %9, %10 : vector<2x32x128xf32>
    %cst_11 = arith.constant 2.000000e-01 : f32
    %12 = vector.broadcast %cst_11 : f32 to vector<2x32x128xf32>
    %13 = arith.mulf %12, %9 : vector<2x32x128xf32>
    %14 = arith.select %11, %9, %13 : vector<2x32x128xi1>, vector<2x32x128xf32>
    %c0_12 = arith.constant 0 : index
    %c0_13 = arith.constant 0 : index
    %c0_14 = arith.constant 0 : index
    %15 = vector.load %arg7[%c0_12, %c0_13, %c0_14] : memref<1x1x128xf32, #tpu.memory_space<vmem>>, vector<1x1x128xf32>
    %16 = vector.broadcast %15 : vector<1x1x128xf32> to vector<2x32x128xf32>
    %17 = arith.mulf %14, %16 : vector<2x32x128xf32>
    %cst_15 = arith.constant dense<0.000000e+00> : vector<2x32xf32>
    %18 = vector.multi_reduction <add>, %17, %cst_15 [2] : vector<2x32x128xf32> to vector<2x32xf32>
    %19 = vector.shape_cast %18 : vector<2x32xf32> to vector<2x32x1xf32>
    %cst_16 = arith.constant 6.250000e-02 : f32
    %20 = vector.broadcast %cst_16 : f32 to vector<2x32x1xf32>
    %21 = arith.mulf %19, %20 : vector<2x32x1xf32>
    %22 = arith.mulf %17, %17 : vector<2x32x128xf32>
    %cst_17 = arith.constant dense<0.000000e+00> : vector<2x32xf32>
    %23 = vector.multi_reduction <add>, %22, %cst_17 [2] : vector<2x32x128xf32> to vector<2x32xf32>
    %24 = vector.shape_cast %23 : vector<2x32xf32> to vector<2x32x1xf32>
    %cst_18 = arith.constant 6.250000e-02 : f32
    %25 = vector.broadcast %cst_18 : f32 to vector<2x32x1xf32>
    %26 = arith.mulf %24, %25 : vector<2x32x1xf32>
    %27 = arith.mulf %21, %21 : vector<2x32x1xf32>
    %28 = arith.subf %26, %27 : vector<2x32x1xf32>
    %cst_19 = arith.constant 0.000000e+00 : f32
    %29 = vector.broadcast %cst_19 : f32 to vector<2x32x1xf32>
    %30 = arith.maximumf %28, %29 : vector<2x32x1xf32>
    %31 = vector.broadcast %21 : vector<2x32x1xf32> to vector<2x32x128xf32>
    %32 = arith.subf %14, %31 : vector<2x32x128xf32>
    %cst_20 = arith.constant 9.99999993E-9 : f32
    %33 = vector.broadcast %cst_20 : f32 to vector<2x32x1xf32>
    %34 = arith.addf %30, %33 : vector<2x32x1xf32>
    %35 = math.rsqrt %34 : vector<2x32x1xf32>
    %36 = vector.broadcast %35 : vector<2x32x1xf32> to vector<2x32x128xf32>
    %37 = arith.mulf %32, %36 : vector<2x32x128xf32>
    %c0_21 = arith.constant 0 : index
    %c0_22 = arith.constant 0 : index
    %c0_23 = arith.constant 0 : index
    %38 = vector.load %arg5[%c0_21, %c0_22, %c0_23] : memref<2x32x1xf32, #tpu.memory_space<vmem>>, vector<2x32x1xf32>
    %cst_24 = arith.constant 1.000000e+00 : f32
    %39 = vector.broadcast %cst_24 : f32 to vector<2x32x1xf32>
    %40 = arith.addf %39, %38 : vector<2x32x1xf32>
    %41 = vector.broadcast %40 : vector<2x32x1xf32> to vector<2x32x128xf32>
    %42 = arith.mulf %37, %41 : vector<2x32x128xf32>
    %c0_25 = arith.constant 0 : index
    %c0_26 = arith.constant 0 : index
    %c0_27 = arith.constant 0 : index
    %43 = vector.load %arg6[%c0_25, %c0_26, %c0_27] : memref<2x32x1xf32, #tpu.memory_space<vmem>>, vector<2x32x1xf32>
    %44 = vector.broadcast %43 : vector<2x32x1xf32> to vector<2x32x128xf32>
    %45 = arith.addf %42, %44 : vector<2x32x128xf32>
    %c0_28 = arith.constant 0 : index
    %c0_29 = arith.constant 0 : index
    %c0_30 = arith.constant 0 : index
    %46 = vector.load %arg8[%c0_28, %c0_29, %c0_30] : memref<2x32x128xf32, #tpu.memory_space<vmem>>, vector<2x32x128xf32>
    tpu.vector_store %arg8[%c0_28, %c0_29, %c0_30], %45 {strides = array<i32>} : memref<2x32x128xf32, #tpu.memory_space<vmem>>, vector<2x32x128xf32>,
    return
  }
  func.func @transform_0(%arg0: i32) -> (i32, i32, i32) {
    %c0_i32 = arith.constant 0 : i32
    %c0_i32_0 = arith.constant 0 : i32
    %c0_i32_1 = arith.constant 0 : i32
    return %c0_i32, %arg0, %c0_i32_0 : i32, i32, i32
  }
  func.func @transform_1(%arg0: i32) -> (i32, i32, i32) {
    %c0_i32 = arith.constant 0 : i32
    %c0_i32_0 = arith.constant 0 : i32
    %c0_i32_1 = arith.constant 0 : i32
    %c0_i32_2 = arith.constant 0 : i32
    return %c0_i32, %c0_i32_0, %c0_i32_1 : i32, i32, i32
  }
  func.func @transform_2(%arg0: i32) -> (i32, i32, i32) {
    %c0_i32 = arith.constant 0 : i32
    %c0_i32_0 = arith.constant 0 : i32
    %c0_i32_1 = arith.constant 0 : i32
    return %c0_i32, %arg0, %c0_i32_0 : i32, i32, i32
  }
  func.func @transform_3(%arg0: i32) -> (i32, i32, i32) {
    %c0_i32 = arith.constant 0 : i32
    %c0_i32_0 = arith.constant 0 : i32
    %c0_i32_1 = arith.constant 0 : i32
    return %c0_i32, %arg0, %c0_i32_0 : i32, i32, i32
  }
  func.func @transform_4(%arg0: i32) -> (i32, i32, i32) {
    %c0_i32 = arith.constant 0 : i32
    %c0_i32_0 = arith.constant 0 : i32
    %c0_i32_1 = arith.constant 0 : i32
    return %c0_i32, %arg0, %c0_i32_0 : i32, i32, i32
  }
  func.func @transform_5(%arg0: i32) -> (i32, i32, i32) {
    %c0_i32 = arith.constant 0 : i32
    %c0_i32_0 = arith.constant 0 : i32
    %c0_i32_1 = arith.constant 0 : i32
    return %c0_i32, %arg0, %c0_i32_0 : i32, i32, i32
  }
  func.func @transform_6(%arg0: i32) -> (i32, i32, i32) {
    %c0_i32 = arith.constant 0 : i32
    %c0_i32_0 = arith.constant 0 : i32
    %c0_i32_1 = arith.constant 0 : i32
    %c0_i32_2 = arith.constant 0 : i32
    return %c0_i32, %c0_i32_0, %c0_i32_1 : i32, i32, i32
  }
  func.func @transform_7(%arg0: i32) -> (i32, i32, i32) {
    %c0_i32 = arith.constant 0 : i32
    %c0_i32_0 = arith.constant 0 : i32
    %c0_i32_1 = arith.constant 0 : i32
    return %c0_i32, %arg0, %c0_i32_0 : i32, i32, i32
  }
}

module attributes {stable_mosaic.version = 11 : i64} {
  func.func @_gemm_kernel(%arg0: memref<16x288xbf16, #tpu.memory_space<vmem>>, %arg1: memref<288x128xbf16, #tpu.memory_space<vmem>>, %arg2: memref<16x128xf32, #tpu.memory_space<vmem>>) attributes {dimension_semantics = [], scalar_prefetch = 0 : i64, scratch_operands = 0 : i64, tpu.core_type = #tpu.core_type<tc>} {
    %c0 = arith.constant 0 : index
    %c0_0 = arith.constant 0 : index
    %0 = vector.load %arg0[%c0, %c0_0] : memref<16x288xbf16, #tpu.memory_space<vmem>>, vector<16x288xbf16>
    %c0_1 = arith.constant 0 : index
    %c0_2 = arith.constant 0 : index
    %1 = vector.load %arg1[%c0_1, %c0_2] : memref<288x128xbf16, #tpu.memory_space<vmem>>, vector<288x128xbf16>
    %cst = arith.constant dense<0.000000e+00> : vector<16x128xf32>
    %2 = tpu.matmul %0, %1, %cst {dimension_numbers = #tpu.dot_dimension_numbers<[1], [0], [0], [1], [0, 0, 1, 1], [], []>} : vector<16x288xbf16>, vector<288x128xbf16>, vector<16x128xf32> -> vector<16x128xf32>
    %c0_3 = arith.constant 0 : index
    %c0_4 = arith.constant 0 : index
    %3 = vector.load %arg2[%c0_3, %c0_4] : memref<16x128xf32, #tpu.memory_space<vmem>>, vector<16x128xf32>
    tpu.vector_store %arg2[%c0_3, %c0_4], %2 {strides = array<i32>} : memref<16x128xf32, #tpu.memory_space<vmem>>, vector<16x128xf32>,
    return
  }
}

module attributes {stable_mosaic.version = 11 : i64} {
  func.func @_blur_taps_kernel(%arg0: memref<9x32x64xf32, #tpu.memory_space<vmem>>, %arg1: memref<32x64xf32, #tpu.memory_space<vmem>>) attributes {dimension_semantics = [], scalar_prefetch = 0 : i64, scratch_operands = 0 : i64, tpu.core_type = #tpu.core_type<tc>} {
    %c0 = arith.constant 0 : index
    %c0_0 = arith.constant 0 : index
    %c0_1 = arith.constant 0 : index
    %0 = vector.load %arg0[%c0, %c0_0, %c0_1] : memref<9x32x64xf32, #tpu.memory_space<vmem>>, vector<1x32x64xf32>
    %1 = vector.shape_cast %0 : vector<1x32x64xf32> to vector<32x64xf32>
    %cst = arith.constant 6.250000e-02 : f32
    %2 = vector.broadcast %cst : f32 to vector<32x64xf32>
    %3 = arith.mulf %2, %1 : vector<32x64xf32>
    %c1 = arith.constant 1 : index
    %c0_2 = arith.constant 0 : index
    %c0_3 = arith.constant 0 : index
    %4 = vector.load %arg0[%c1, %c0_2, %c0_3] : memref<9x32x64xf32, #tpu.memory_space<vmem>>, vector<1x32x64xf32>
    %5 = vector.shape_cast %4 : vector<1x32x64xf32> to vector<32x64xf32>
    %cst_4 = arith.constant 1.250000e-01 : f32
    %6 = vector.broadcast %cst_4 : f32 to vector<32x64xf32>
    %7 = arith.mulf %6, %5 : vector<32x64xf32>
    %8 = arith.addf %3, %7 : vector<32x64xf32>
    %c2 = arith.constant 2 : index
    %c0_5 = arith.constant 0 : index
    %c0_6 = arith.constant 0 : index
    %9 = vector.load %arg0[%c2, %c0_5, %c0_6] : memref<9x32x64xf32, #tpu.memory_space<vmem>>, vector<1x32x64xf32>
    %10 = vector.shape_cast %9 : vector<1x32x64xf32> to vector<32x64xf32>
    %cst_7 = arith.constant 6.250000e-02 : f32
    %11 = vector.broadcast %cst_7 : f32 to vector<32x64xf32>
    %12 = arith.mulf %11, %10 : vector<32x64xf32>
    %13 = arith.addf %8, %12 : vector<32x64xf32>
    %c3 = arith.constant 3 : index
    %c0_8 = arith.constant 0 : index
    %c0_9 = arith.constant 0 : index
    %14 = vector.load %arg0[%c3, %c0_8, %c0_9] : memref<9x32x64xf32, #tpu.memory_space<vmem>>, vector<1x32x64xf32>
    %15 = vector.shape_cast %14 : vector<1x32x64xf32> to vector<32x64xf32>
    %cst_10 = arith.constant 1.250000e-01 : f32
    %16 = vector.broadcast %cst_10 : f32 to vector<32x64xf32>
    %17 = arith.mulf %16, %15 : vector<32x64xf32>
    %18 = arith.addf %13, %17 : vector<32x64xf32>
    %c4 = arith.constant 4 : index
    %c0_11 = arith.constant 0 : index
    %c0_12 = arith.constant 0 : index
    %19 = vector.load %arg0[%c4, %c0_11, %c0_12] : memref<9x32x64xf32, #tpu.memory_space<vmem>>, vector<1x32x64xf32>
    %20 = vector.shape_cast %19 : vector<1x32x64xf32> to vector<32x64xf32>
    %cst_13 = arith.constant 2.500000e-01 : f32
    %21 = vector.broadcast %cst_13 : f32 to vector<32x64xf32>
    %22 = arith.mulf %21, %20 : vector<32x64xf32>
    %23 = arith.addf %18, %22 : vector<32x64xf32>
    %c5 = arith.constant 5 : index
    %c0_14 = arith.constant 0 : index
    %c0_15 = arith.constant 0 : index
    %24 = vector.load %arg0[%c5, %c0_14, %c0_15] : memref<9x32x64xf32, #tpu.memory_space<vmem>>, vector<1x32x64xf32>
    %25 = vector.shape_cast %24 : vector<1x32x64xf32> to vector<32x64xf32>
    %cst_16 = arith.constant 1.250000e-01 : f32
    %26 = vector.broadcast %cst_16 : f32 to vector<32x64xf32>
    %27 = arith.mulf %26, %25 : vector<32x64xf32>
    %28 = arith.addf %23, %27 : vector<32x64xf32>
    %c6 = arith.constant 6 : index
    %c0_17 = arith.constant 0 : index
    %c0_18 = arith.constant 0 : index
    %29 = vector.load %arg0[%c6, %c0_17, %c0_18] : memref<9x32x64xf32, #tpu.memory_space<vmem>>, vector<1x32x64xf32>
    %30 = vector.shape_cast %29 : vector<1x32x64xf32> to vector<32x64xf32>
    %cst_19 = arith.constant 6.250000e-02 : f32
    %31 = vector.broadcast %cst_19 : f32 to vector<32x64xf32>
    %32 = arith.mulf %31, %30 : vector<32x64xf32>
    %33 = arith.addf %28, %32 : vector<32x64xf32>
    %c7 = arith.constant 7 : index
    %c0_20 = arith.constant 0 : index
    %c0_21 = arith.constant 0 : index
    %34 = vector.load %arg0[%c7, %c0_20, %c0_21] : memref<9x32x64xf32, #tpu.memory_space<vmem>>, vector<1x32x64xf32>
    %35 = vector.shape_cast %34 : vector<1x32x64xf32> to vector<32x64xf32>
    %cst_22 = arith.constant 1.250000e-01 : f32
    %36 = vector.broadcast %cst_22 : f32 to vector<32x64xf32>
    %37 = arith.mulf %36, %35 : vector<32x64xf32>
    %38 = arith.addf %33, %37 : vector<32x64xf32>
    %c8 = arith.constant 8 : index
    %c0_23 = arith.constant 0 : index
    %c0_24 = arith.constant 0 : index
    %39 = vector.load %arg0[%c8, %c0_23, %c0_24] : memref<9x32x64xf32, #tpu.memory_space<vmem>>, vector<1x32x64xf32>
    %40 = vector.shape_cast %39 : vector<1x32x64xf32> to vector<32x64xf32>
    %cst_25 = arith.constant 6.250000e-02 : f32
    %41 = vector.broadcast %cst_25 : f32 to vector<32x64xf32>
    %42 = arith.mulf %41, %40 : vector<32x64xf32>
    %43 = arith.addf %38, %42 : vector<32x64xf32>
    %c0_26 = arith.constant 0 : index
    %c0_27 = arith.constant 0 : index
    %44 = vector.load %arg1[%c0_26, %c0_27] : memref<32x64xf32, #tpu.memory_space<vmem>>, vector<32x64xf32>
    tpu.vector_store %arg1[%c0_26, %c0_27], %43 {strides = array<i32>} : memref<32x64xf32, #tpu.memory_space<vmem>>, vector<32x64xf32>,
    return
  }
}

module attributes {stable_mosaic.version = 11 : i64} {
  func.func @_noise_act_in_style_kernel(%arg0: i32, %arg1: memref<2x16x128xf32, #tpu.memory_space<vmem>>, %arg2: memref<2x1x128xf32, #tpu.memory_space<vmem>>, %arg3: memref<1x16x1xf32, #tpu.memory_space<vmem>>, %arg4: memref<1x16x1xf32, #tpu.memory_space<vmem>>, %arg5: memref<2x16x1xf32, #tpu.memory_space<vmem>>, %arg6: memref<2x16x1xf32, #tpu.memory_space<vmem>>, %arg7: memref<1x1x128xf32, #tpu.memory_space<vmem>>, %arg8: memref<2x16x128xf32, #tpu.memory_space<vmem>>) attributes {dimension_semantics = [#tpu.dimension_semantics<parallel>], iteration_bounds = array<i64: 1>, scalar_prefetch = 0 : i64, scratch_operands = 0 : i64, tpu.core_type = #tpu.core_type<tc>, window_params = [{transform_indices = @transform_0, window_bounds = array<i64: 2, 16, 128>}, {pipeline_mode = #tpu.pipeline_mode<synchronous>, transform_indices = @transform_1, window_bounds = array<i64: 2, 1, 128>}, {transform_indices = @transform_2, window_bounds = array<i64: 1, 16, 1>}, {transform_indices = @transform_3, window_bounds = array<i64: 1, 16, 1>}, {transform_indices = @transform_4, window_bounds = array<i64: 2, 16, 1>}, {transform_indices = @transform_5, window_bounds = array<i64: 2, 16, 1>}, {pipeline_mode = #tpu.pipeline_mode<synchronous>, transform_indices = @transform_6, window_bounds = array<i64: 1, 1, 128>}, {transform_indices = @transform_7, window_bounds = array<i64: 2, 16, 128>}]} {
    %c0 = arith.constant 0 : index
    %c0_0 = arith.constant 0 : index
    %c0_1 = arith.constant 0 : index
    %0 = vector.load %arg1[%c0, %c0_0, %c0_1] : memref<2x16x128xf32, #tpu.memory_space<vmem>>, vector<2x16x128xf32>
    %c0_2 = arith.constant 0 : index
    %c0_3 = arith.constant 0 : index
    %c0_4 = arith.constant 0 : index
    %1 = vector.load %arg2[%c0_2, %c0_3, %c0_4] : memref<2x1x128xf32, #tpu.memory_space<vmem>>, vector<2x1x128xf32>
    %c0_5 = arith.constant 0 : index
    %c0_6 = arith.constant 0 : index
    %c0_7 = arith.constant 0 : index
    %2 = vector.load %arg3[%c0_5, %c0_6, %c0_7] : memref<1x16x1xf32, #tpu.memory_space<vmem>>, vector<1x16x1xf32>
    %3 = vector.broadcast %1 : vector<2x1x128xf32> to vector<2x16x128xf32>
    %4 = vector.broadcast %2 : vector<1x16x1xf32> to vector<2x16x128xf32>
    %5 = arith.mulf %3, %4 : vector<2x16x128xf32>
    %6 = arith.addf %0, %5 : vector<2x16x128xf32>
    %c0_8 = arith.constant 0 : index
    %c0_9 = arith.constant 0 : index
    %c0_10 = arith.constant 0 : index
    %7 = vector.load %arg4[%c0_8, %c0_9, %c0_10] : memref<1x16x1xf32, #tpu.memory_space<vmem>>, vector<1x16x1xf32>
    %8 = vector.broadcast %7 : vector<1x16x1xf32> to vector<2x16x128xf32>
    %9 = arith.addf %6, %8 : vector<2x16x128xf32>
    %cst = arith.constant 0.000000e+00 : f32
    %10 = vector.broadcast %cst : f32 to vector<2x16x128xf32>
    %11 = arith.cmpf oge, %9, %10 : vector<2x16x128xf32>
    %cst_11 = arith.constant 2.000000e-01 : f32
    %12 = vector.broadcast %cst_11 : f32 to vector<2x16x128xf32>
    %13 = arith.mulf %12, %9 : vector<2x16x128xf32>
    %14 = arith.select %11, %9, %13 : vector<2x16x128xi1>, vector<2x16x128xf32>
    %c0_12 = arith.constant 0 : index
    %c0_13 = arith.constant 0 : index
    %c0_14 = arith.constant 0 : index
    %15 = vector.load %arg7[%c0_12, %c0_13, %c0_14] : memref<1x1x128xf32, #tpu.memory_space<vmem>>, vector<1x1x128xf32>
    %16 = vector.broadcast %15 : vector<1x1x128xf32> to vector<2x16x128xf32>
    %17 = arith.mulf %14, %16 : vector<2x16x128xf32>
    %cst_15 = arith.constant dense<0.000000e+00> : vector<2x16xf32>
    %18 = vector.multi_reduction <add>, %17, %cst_15 [2] : vector<2x16x128xf32> to vector<2x16xf32>
    %19 = vector.shape_cast %18 : vector<2x16xf32> to vector<2x16x1xf32>
    %cst_16 = arith.constant 1.562500e-02 : f32
    %20 = vector.broadcast %cst_16 : f32 to vector<2x16x1xf32>
    %21 = arith.mulf %19, %20 : vector<2x16x1xf32>
    %22 = arith.mulf %17, %17 : vector<2x16x128xf32>
    %cst_17 = arith.constant dense<0.000000e+00> : vector<2x16xf32>
    %23 = vector.multi_reduction <add>, %22, %cst_17 [2] : vector<2x16x128xf32> to vector<2x16xf32>
    %24 = vector.shape_cast %23 : vector<2x16xf32> to vector<2x16x1xf32>
    %cst_18 = arith.constant 1.562500e-02 : f32
    %25 = vector.broadcast %cst_18 : f32 to vector<2x16x1xf32>
    %26 = arith.mulf %24, %25 : vector<2x16x1xf32>
    %27 = arith.mulf %21, %21 : vector<2x16x1xf32>
    %28 = arith.subf %26, %27 : vector<2x16x1xf32>
    %cst_19 = arith.constant 0.000000e+00 : f32
    %29 = vector.broadcast %cst_19 : f32 to vector<2x16x1xf32>
    %30 = arith.maximumf %28, %29 : vector<2x16x1xf32>
    %31 = vector.broadcast %21 : vector<2x16x1xf32> to vector<2x16x128xf32>
    %32 = arith.subf %14, %31 : vector<2x16x128xf32>
    %cst_20 = arith.constant 9.99999993E-9 : f32
    %33 = vector.broadcast %cst_20 : f32 to vector<2x16x1xf32>
    %34 = arith.addf %30, %33 : vector<2x16x1xf32>
    %35 = math.rsqrt %34 : vector<2x16x1xf32>
    %36 = vector.broadcast %35 : vector<2x16x1xf32> to vector<2x16x128xf32>
    %37 = arith.mulf %32, %36 : vector<2x16x128xf32>
    %c0_21 = arith.constant 0 : index
    %c0_22 = arith.constant 0 : index
    %c0_23 = arith.constant 0 : index
    %38 = vector.load %arg5[%c0_21, %c0_22, %c0_23] : memref<2x16x1xf32, #tpu.memory_space<vmem>>, vector<2x16x1xf32>
    %cst_24 = arith.constant 1.000000e+00 : f32
    %39 = vector.broadcast %cst_24 : f32 to vector<2x16x1xf32>
    %40 = arith.addf %39, %38 : vector<2x16x1xf32>
    %41 = vector.broadcast %40 : vector<2x16x1xf32> to vector<2x16x128xf32>
    %42 = arith.mulf %37, %41 : vector<2x16x128xf32>
    %c0_25 = arith.constant 0 : index
    %c0_26 = arith.constant 0 : index
    %c0_27 = arith.constant 0 : index
    %43 = vector.load %arg6[%c0_25, %c0_26, %c0_27] : memref<2x16x1xf32, #tpu.memory_space<vmem>>, vector<2x16x1xf32>
    %44 = vector.broadcast %43 : vector<2x16x1xf32> to vector<2x16x128xf32>
    %45 = arith.addf %42, %44 : vector<2x16x128xf32>
    %c0_28 = arith.constant 0 : index
    %c0_29 = arith.constant 0 : index
    %c0_30 = arith.constant 0 : index
    %46 = vector.load %arg8[%c0_28, %c0_29, %c0_30] : memref<2x16x128xf32, #tpu.memory_space<vmem>>, vector<2x16x128xf32>
    tpu.vector_store %arg8[%c0_28, %c0_29, %c0_30], %45 {strides = array<i32>} : memref<2x16x128xf32, #tpu.memory_space<vmem>>, vector<2x16x128xf32>,
    return
  }
  func.func @transform_0(%arg0: i32) -> (i32, i32, i32) {
    %c0_i32 = arith.constant 0 : i32
    %c0_i32_0 = arith.constant 0 : i32
    %c0_i32_1 = arith.constant 0 : i32
    return %c0_i32, %arg0, %c0_i32_0 : i32, i32, i32
  }
  func.func @transform_1(%arg0: i32) -> (i32, i32, i32) {
    %c0_i32 = arith.constant 0 : i32
    %c0_i32_0 = arith.constant 0 : i32
    %c0_i32_1 = arith.constant 0 : i32
    %c0_i32_2 = arith.constant 0 : i32
    return %c0_i32, %c0_i32_0, %c0_i32_1 : i32, i32, i32
  }
  func.func @transform_2(%arg0: i32) -> (i32, i32, i32) {
    %c0_i32 = arith.constant 0 : i32
    %c0_i32_0 = arith.constant 0 : i32
    %c0_i32_1 = arith.constant 0 : i32
    return %c0_i32, %arg0, %c0_i32_0 : i32, i32, i32
  }
  func.func @transform_3(%arg0: i32) -> (i32, i32, i32) {
    %c0_i32 = arith.constant 0 : i32
    %c0_i32_0 = arith.constant 0 : i32
    %c0_i32_1 = arith.constant 0 : i32
    return %c0_i32, %arg0, %c0_i32_0 : i32, i32, i32
  }
  func.func @transform_4(%arg0: i32) -> (i32, i32, i32) {
    %c0_i32 = arith.constant 0 : i32
    %c0_i32_0 = arith.constant 0 : i32
    %c0_i32_1 = arith.constant 0 : i32
    return %c0_i32, %arg0, %c0_i32_0 : i32, i32, i32
  }
  func.func @transform_5(%arg0: i32) -> (i32, i32, i32) {
    %c0_i32 = arith.constant 0 : i32
    %c0_i32_0 = arith.constant 0 : i32
    %c0_i32_1 = arith.constant 0 : i32
    return %c0_i32, %arg0, %c0_i32_0 : i32, i32, i32
  }
  func.func @transform_6(%arg0: i32) -> (i32, i32, i32) {
    %c0_i32 = arith.constant 0 : i32
    %c0_i32_0 = arith.constant 0 : i32
    %c0_i32_1 = arith.constant 0 : i32
    %c0_i32_2 = arith.constant 0 : i32
    return %c0_i32, %c0_i32_0, %c0_i32_1 : i32, i32, i32
  }
  func.func @transform_7(%arg0: i32) -> (i32, i32, i32) {
    %c0_i32 = arith.constant 0 : i32
    %c0_i32_0 = arith.constant 0 : i32
    %c0_i32_1 = arith.constant 0 : i32
    return %c0_i32, %arg0, %c0_i32_0 : i32, i32, i32
  }
}

module attributes {stable_mosaic.version = 11 : i64} {
  func.func @_gemm_kernel(%arg0: memref<16x144xbf16, #tpu.memory_space<vmem>>, %arg1: memref<144x128xbf16, #tpu.memory_space<vmem>>, %arg2: memref<16x128xf32, #tpu.memory_space<vmem>>) attributes {dimension_semantics = [], scalar_prefetch = 0 : i64, scratch_operands = 0 : i64, tpu.core_type = #tpu.core_type<tc>} {
    %c0 = arith.constant 0 : index
    %c0_0 = arith.constant 0 : index
    %0 = vector.load %arg0[%c0, %c0_0] : memref<16x144xbf16, #tpu.memory_space<vmem>>, vector<16x144xbf16>
    %c0_1 = arith.constant 0 : index
    %c0_2 = arith.constant 0 : index
    %1 = vector.load %arg1[%c0_1, %c0_2] : memref<144x128xbf16, #tpu.memory_space<vmem>>, vector<144x128xbf16>
    %cst = arith.constant dense<0.000000e+00> : vector<16x128xf32>
    %2 = tpu.matmul %0, %1, %cst {dimension_numbers = #tpu.dot_dimension_numbers<[1], [0], [0], [1], [0, 0, 1, 1], [], []>} : vector<16x144xbf16>, vector<144x128xbf16>, vector<16x128xf32> -> vector<16x128xf32>
    %c0_3 = arith.constant 0 : index
    %c0_4 = arith.constant 0 : index
    %3 = vector.load %arg2[%c0_3, %c0_4] : memref<16x128xf32, #tpu.memory_space<vmem>>, vector<16x128xf32>
    tpu.vector_store %arg2[%c0_3, %c0_4], %2 {strides = array<i32>} : memref<16x128xf32, #tpu.memory_space<vmem>>, vector<16x128xf32>,
    return
  }
}

module attributes {stable_mosaic.version = 11 : i64} {
  func.func @_rgb_kernel(%arg0: memref<2x16x256xf32, #tpu.memory_space<vmem>>, %arg1: memref<3x16xf32, #tpu.memory_space<vmem>>, %arg2: memref<3x1xf32, #tpu.memory_space<vmem>>, %arg3: memref<2x3x256xf32, #tpu.memory_space<vmem>>) attributes {dimension_semantics = [], scalar_prefetch = 0 : i64, scratch_operands = 0 : i64, tpu.core_type = #tpu.core_type<tc>} {
    %c0 = arith.constant 0 : index
    %c0_0 = arith.constant 0 : index
    %0 = vector.load %arg1[%c0, %c0_0] : memref<3x16xf32, #tpu.memory_space<vmem>>, vector<3x16xf32>
    %c0_1 = arith.constant 0 : index
    %c0_2 = arith.constant 0 : index
    %1 = vector.load %arg2[%c0_1, %c0_2] : memref<3x1xf32, #tpu.memory_space<vmem>>, vector<3x1xf32>
    %c0_3 = arith.constant 0 : index
    %c0_4 = arith.constant 0 : index
    %c0_5 = arith.constant 0 : index
    %2 = vector.load %arg0[%c0_3, %c0_4, %c0_5] : memref<2x16x256xf32, #tpu.memory_space<vmem>>, vector<1x16x256xf32>
    %3 = vector.shape_cast %2 : vector<1x16x256xf32> to vector<16x256xf32>
    %cst = arith.constant dense<0.000000e+00> : vector<3x256xf32>
    %4 = tpu.matmul %0, %3, %cst {dimension_numbers = #tpu.dot_dimension_numbers<[1], [0], [0], [1], [0, 0, 1, 1], [], []>} : vector<3x16xf32>, vector<16x256xf32>, vector<3x256xf32> -> vector<3x256xf32>
    %5 = vector.broadcast %1 : vector<3x1xf32> to vector<3x256xf32>
    %6 = arith.addf %4, %5 : vector<3x256xf32>
    %c0_6 = arith.constant 0 : index
    %c0_7 = arith.constant 0 : index
    %c0_8 = arith.constant 0 : index
    %7 = vector.load %arg3[%c0_6, %c0_7, %c0_8] : memref<2x3x256xf32, #tpu.memory_space<vmem>>, vector<1x3x256xf32>
    %8 = vector.shape_cast %7 : vector<1x3x256xf32> to vector<3x256xf32>
    %9 = vector.shape_cast %6 : vector<3x256xf32> to vector<1x3x256xf32>
    tpu.vector_store %arg3[%c0_6, %c0_7, %c0_8], %9 {strides = array<i32>} : memref<2x3x256xf32, #tpu.memory_space<vmem>>, vector<1x3x256xf32>,
    %c1 = arith.constant 1 : index
    %c0_9 = arith.constant 0 : index
    %c0_10 = arith.constant 0 : index
    %10 = vector.load %arg0[%c1, %c0_9, %c0_10] : memref<2x16x256xf32, #tpu.memory_space<vmem>>, vector<1x16x256xf32>
    %11 = vector.shape_cast %10 : vector<1x16x256xf32> to vector<16x256xf32>
    %cst_11 = arith.constant dense<0.000000e+00> : vector<3x256xf32>
    %12 = tpu.matmul %0, %11, %cst_11 {dimension_numbers = #tpu.dot_dimension_numbers<[1], [0], [0], [1], [0, 0, 1, 1], [], []>} : vector<3x16xf32>, vector<16x256xf32>, vector<3x256xf32> -> vector<3x256xf32>
    %13 = vector.broadcast %1 : vector<3x1xf32> to vector<3x256xf32>
    %14 = arith.addf %12, %13 : vector<3x256xf32>
    %c1_12 = arith.constant 1 : index
    %c0_13 = arith.constant 0 : index
    %c0_14 = arith.constant 0 : index
    %15 = vector.load %arg3[%c1_12, %c0_13, %c0_14] : memref<2x3x256xf32, #tpu.memory_space<vmem>>, vector<1x3x256xf32>
    %16 = vector.shape_cast %15 : vector<1x3x256xf32> to vector<3x256xf32>
    %17 = vector.shape_cast %14 : vector<3x256xf32> to vector<1x3x256xf32>
    tpu.vector_store %arg3[%c1_12, %c0_13, %c0_14], %17 {strides = array<i32>} : memref<2x3x256xf32, #tpu.memory_space<vmem>>, vector<1x3x256xf32>,
    return
  }
}

module attributes {stable_mosaic.version = 11 : i64} {
  func.func @_gemm_kernel(%arg0: memref<8x144xbf16, #tpu.memory_space<vmem>>, %arg1: memref<144x512xbf16, #tpu.memory_space<vmem>>, %arg2: memref<8x512xf32, #tpu.memory_space<vmem>>) attributes {dimension_semantics = [], scalar_prefetch = 0 : i64, scratch_operands = 0 : i64, tpu.core_type = #tpu.core_type<tc>} {
    %c0 = arith.constant 0 : index
    %c0_0 = arith.constant 0 : index
    %0 = vector.load %arg0[%c0, %c0_0] : memref<8x144xbf16, #tpu.memory_space<vmem>>, vector<8x144xbf16>
    %c0_1 = arith.constant 0 : index
    %c0_2 = arith.constant 0 : index
    %1 = vector.load %arg1[%c0_1, %c0_2] : memref<144x512xbf16, #tpu.memory_space<vmem>>, vector<144x512xbf16>
    %cst = arith.constant dense<0.000000e+00> : vector<8x512xf32>
    %2 = tpu.matmul %0, %1, %cst {dimension_numbers = #tpu.dot_dimension_numbers<[1], [0], [0], [1], [0, 0, 1, 1], [], []>} : vector<8x144xbf16>, vector<144x512xbf16>, vector<8x512xf32> -> vector<8x512xf32>
    %c0_3 = arith.constant 0 : index
    %c0_4 = arith.constant 0 : index
    %3 = vector.load %arg2[%c0_3, %c0_4] : memref<8x512xf32, #tpu.memory_space<vmem>>, vector<8x512xf32>
    tpu.vector_store %arg2[%c0_3, %c0_4], %2 {strides = array<i32>} : memref<8x512xf32, #tpu.memory_space<vmem>>, vector<8x512xf32>,
    return
  }
}

module attributes {stable_mosaic.version = 11 : i64} {
  func.func @_blur_taps_kernel(%arg0: memref<9x16x256xf32, #tpu.memory_space<vmem>>, %arg1: memref<16x256xf32, #tpu.memory_space<vmem>>) attributes {dimension_semantics = [], scalar_prefetch = 0 : i64, scratch_operands = 0 : i64, tpu.core_type = #tpu.core_type<tc>} {
    %c0 = arith.constant 0 : index
    %c0_0 = arith.constant 0 : index
    %c0_1 = arith.constant 0 : index
    %0 = vector.load %arg0[%c0, %c0_0, %c0_1] : memref<9x16x256xf32, #tpu.memory_space<vmem>>, vector<1x16x256xf32>
    %1 = vector.shape_cast %0 : vector<1x16x256xf32> to vector<16x256xf32>
    %cst = arith.constant 6.250000e-02 : f32
    %2 = vector.broadcast %cst : f32 to vector<16x256xf32>
    %3 = arith.mulf %2, %1 : vector<16x256xf32>
    %c1 = arith.constant 1 : index
    %c0_2 = arith.constant 0 : index
    %c0_3 = arith.constant 0 : index
    %4 = vector.load %arg0[%c1, %c0_2, %c0_3] : memref<9x16x256xf32, #tpu.memory_space<vmem>>, vector<1x16x256xf32>
    %5 = vector.shape_cast %4 : vector<1x16x256xf32> to vector<16x256xf32>
    %cst_4 = arith.constant 1.250000e-01 : f32
    %6 = vector.broadcast %cst_4 : f32 to vector<16x256xf32>
    %7 = arith.mulf %6, %5 : vector<16x256xf32>
    %8 = arith.addf %3, %7 : vector<16x256xf32>
    %c2 = arith.constant 2 : index
    %c0_5 = arith.constant 0 : index
    %c0_6 = arith.constant 0 : index
    %9 = vector.load %arg0[%c2, %c0_5, %c0_6] : memref<9x16x256xf32, #tpu.memory_space<vmem>>, vector<1x16x256xf32>
    %10 = vector.shape_cast %9 : vector<1x16x256xf32> to vector<16x256xf32>
    %cst_7 = arith.constant 6.250000e-02 : f32
    %11 = vector.broadcast %cst_7 : f32 to vector<16x256xf32>
    %12 = arith.mulf %11, %10 : vector<16x256xf32>
    %13 = arith.addf %8, %12 : vector<16x256xf32>
    %c3 = arith.constant 3 : index
    %c0_8 = arith.constant 0 : index
    %c0_9 = arith.constant 0 : index
    %14 = vector.load %arg0[%c3, %c0_8, %c0_9] : memref<9x16x256xf32, #tpu.memory_space<vmem>>, vector<1x16x256xf32>
    %15 = vector.shape_cast %14 : vector<1x16x256xf32> to vector<16x256xf32>
    %cst_10 = arith.constant 1.250000e-01 : f32
    %16 = vector.broadcast %cst_10 : f32 to vector<16x256xf32>
    %17 = arith.mulf %16, %15 : vector<16x256xf32>
    %18 = arith.addf %13, %17 : vector<16x256xf32>
    %c4 = arith.constant 4 : index
    %c0_11 = arith.constant 0 : index
    %c0_12 = arith.constant 0 : index
    %19 = vector.load %arg0[%c4, %c0_11, %c0_12] : memref<9x16x256xf32, #tpu.memory_space<vmem>>, vector<1x16x256xf32>
    %20 = vector.shape_cast %19 : vector<1x16x256xf32> to vector<16x256xf32>
    %cst_13 = arith.constant 2.500000e-01 : f32
    %21 = vector.broadcast %cst_13 : f32 to vector<16x256xf32>
    %22 = arith.mulf %21, %20 : vector<16x256xf32>
    %23 = arith.addf %18, %22 : vector<16x256xf32>
    %c5 = arith.constant 5 : index
    %c0_14 = arith.constant 0 : index
    %c0_15 = arith.constant 0 : index
    %24 = vector.load %arg0[%c5, %c0_14, %c0_15] : memref<9x16x256xf32, #tpu.memory_space<vmem>>, vector<1x16x256xf32>
    %25 = vector.shape_cast %24 : vector<1x16x256xf32> to vector<16x256xf32>
    %cst_16 = arith.constant 1.250000e-01 : f32
    %26 = vector.broadcast %cst_16 : f32 to vector<16x256xf32>
    %27 = arith.mulf %26, %25 : vector<16x256xf32>
    %28 = arith.addf %23, %27 : vector<16x256xf32>
    %c6 = arith.constant 6 : index
    %c0_17 = arith.constant 0 : index
    %c0_18 = arith.constant 0 : index
    %29 = vector.load %arg0[%c6, %c0_17, %c0_18] : memref<9x16x256xf32, #tpu.memory_space<vmem>>, vector<1x16x256xf32>
    %30 = vector.shape_cast %29 : vector<1x16x256xf32> to vector<16x256xf32>
    %cst_19 = arith.constant 6.250000e-02 : f32
    %31 = vector.broadcast %cst_19 : f32 to vector<16x256xf32>
    %32 = arith.mulf %31, %30 : vector<16x256xf32>
    %33 = arith.addf %28, %32 : vector<16x256xf32>
    %c7 = arith.constant 7 : index
    %c0_20 = arith.constant 0 : index
    %c0_21 = arith.constant 0 : index
    %34 = vector.load %arg0[%c7, %c0_20, %c0_21] : memref<9x16x256xf32, #tpu.memory_space<vmem>>, vector<1x16x256xf32>
    %35 = vector.shape_cast %34 : vector<1x16x256xf32> to vector<16x256xf32>
    %cst_22 = arith.constant 1.250000e-01 : f32
    %36 = vector.broadcast %cst_22 : f32 to vector<16x256xf32>
    %37 = arith.mulf %36, %35 : vector<16x256xf32>
    %38 = arith.addf %33, %37 : vector<16x256xf32>
    %c8 = arith.constant 8 : index
    %c0_23 = arith.constant 0 : index
    %c0_24 = arith.constant 0 : index
    %39 = vector.load %arg0[%c8, %c0_23, %c0_24] : memref<9x16x256xf32, #tpu.memory_space<vmem>>, vector<1x16x256xf32>
    %40 = vector.shape_cast %39 : vector<1x16x256xf32> to vector<16x256xf32>
    %cst_25 = arith.constant 6.250000e-02 : f32
    %41 = vector.broadcast %cst_25 : f32 to vector<16x256xf32>
    %42 = arith.mulf %41, %40 : vector<16x256xf32>
    %43 = arith.addf %38, %42 : vector<16x256xf32>
    %c0_26 = arith.constant 0 : index
    %c0_27 = arith.constant 0 : index
    %44 = vector.load %arg1[%c0_26, %c0_27] : memref<16x256xf32, #tpu.memory_space<vmem>>, vector<16x256xf32>
    tpu.vector_store %arg1[%c0_26, %c0_27], %43 {strides = array<i32>} : memref<16x256xf32, #tpu.memory_space<vmem>>, vector<16x256xf32>,
    return
  }
}

module attributes {stable_mosaic.version = 11 : i64} {
  func.func @_noise_act_in_style_kernel(%arg0: i32, %arg1: memref<2x8x256xf32, #tpu.memory_space<vmem>>, %arg2: memref<2x1x256xf32, #tpu.memory_space<vmem>>, %arg3: memref<1x8x1xf32, #tpu.memory_space<vmem>>, %arg4: memref<1x8x1xf32, #tpu.memory_space<vmem>>, %arg5: memref<2x8x1xf32, #tpu.memory_space<vmem>>, %arg6: memref<2x8x1xf32, #tpu.memory_space<vmem>>, %arg7: memref<1x1x256xf32, #tpu.memory_space<vmem>>, %arg8: memref<2x8x256xf32, #tpu.memory_space<vmem>>) attributes {dimension_semantics = [#tpu.dimension_semantics<parallel>], iteration_bounds = array<i64: 1>, scalar_prefetch = 0 : i64, scratch_operands = 0 : i64, tpu.core_type = #tpu.core_type<tc>, window_params = [{transform_indices = @transform_0, window_bounds = array<i64: 2, 8, 256>}, {pipeline_mode = #tpu.pipeline_mode<synchronous>, transform_indices = @transform_1, window_bounds = array<i64: 2, 1, 256>}, {transform_indices = @transform_2, window_bounds = array<i64: 1, 8, 1>}, {transform_indices = @transform_3, window_bounds = array<i64: 1, 8, 1>}, {transform_indices = @transform_4, window_bounds = array<i64: 2, 8, 1>}, {transform_indices = @transform_5, window_bounds = array<i64: 2, 8, 1>}, {pipeline_mode = #tpu.pipeline_mode<synchronous>, transform_indices = @transform_6, window_bounds = array<i64: 1, 1, 256>}, {transform_indices = @transform_7, window_bounds = array<i64: 2, 8, 256>}]} {
    %c0 = arith.constant 0 : index
    %c0_0 = arith.constant 0 : index
    %c0_1 = arith.constant 0 : index
    %0 = vector.load %arg1[%c0, %c0_0, %c0_1] : memref<2x8x256xf32, #tpu.memory_space<vmem>>, vector<2x8x256xf32>
    %c0_2 = arith.constant 0 : index
    %c0_3 = arith.constant 0 : index
    %c0_4 = arith.constant 0 : index
    %1 = vector.load %arg2[%c0_2, %c0_3, %c0_4] : memref<2x1x256xf32, #tpu.memory_space<vmem>>, vector<2x1x256xf32>
    %c0_5 = arith.constant 0 : index
    %c0_6 = arith.constant 0 : index
    %c0_7 = arith.constant 0 : index
    %2 = vector.load %arg3[%c0_5, %c0_6, %c0_7] : memref<1x8x1xf32, #tpu.memory_space<vmem>>, vector<1x8x1xf32>
    %3 = vector.broadcast %1 : vector<2x1x256xf32> to vector<2x8x256xf32>
    %4 = vector.broadcast %2 : vector<1x8x1xf32> to vector<2x8x256xf32>
    %5 = arith.mulf %3, %4 : vector<2x8x256xf32>
    %6 = arith.addf %0, %5 : vector<2x8x256xf32>
    %c0_8 = arith.constant 0 : index
    %c0_9 = arith.constant 0 : index
    %c0_10 = arith.constant 0 : index
    %7 = vector.load %arg4[%c0_8, %c0_9, %c0_10] : memref<1x8x1xf32, #tpu.memory_space<vmem>>, vector<1x8x1xf32>
    %8 = vector.broadcast %7 : vector<1x8x1xf32> to vector<2x8x256xf32>
    %9 = arith.addf %6, %8 : vector<2x8x256xf32>
    %cst = arith.constant 0.000000e+00 : f32
    %10 = vector.broadcast %cst : f32 to vector<2x8x256xf32>
    %11 = arith.cmpf oge, %9, %10 : vector<2x8x256xf32>
    %cst_11 = arith.constant 2.000000e-01 : f32
    %12 = vector.broadcast %cst_11 : f32 to vector<2x8x256xf32>
    %13 = arith.mulf %12, %9 : vector<2x8x256xf32>
    %14 = arith.select %11, %9, %13 : vector<2x8x256xi1>, vector<2x8x256xf32>
    %c0_12 = arith.constant 0 : index
    %c0_13 = arith.constant 0 : index
    %c0_14 = arith.constant 0 : index
    %15 = vector.load %arg7[%c0_12, %c0_13, %c0_14] : memref<1x1x256xf32, #tpu.memory_space<vmem>>, vector<1x1x256xf32>
    %16 = vector.broadcast %15 : vector<1x1x256xf32> to vector<2x8x256xf32>
    %17 = arith.mulf %14, %16 : vector<2x8x256xf32>
    %cst_15 = arith.constant dense<0.000000e+00> : vector<2x8xf32>
    %18 = vector.multi_reduction <add>, %17, %cst_15 [2] : vector<2x8x256xf32> to vector<2x8xf32>
    %19 = vector.shape_cast %18 : vector<2x8xf32> to vector<2x8x1xf32>
    %cst_16 = arith.constant 3.906250e-03 : f32
    %20 = vector.broadcast %cst_16 : f32 to vector<2x8x1xf32>
    %21 = arith.mulf %19, %20 : vector<2x8x1xf32>
    %22 = arith.mulf %17, %17 : vector<2x8x256xf32>
    %cst_17 = arith.constant dense<0.000000e+00> : vector<2x8xf32>
    %23 = vector.multi_reduction <add>, %22, %cst_17 [2] : vector<2x8x256xf32> to vector<2x8xf32>
    %24 = vector.shape_cast %23 : vector<2x8xf32> to vector<2x8x1xf32>
    %cst_18 = arith.constant 3.906250e-03 : f32
    %25 = vector.broadcast %cst_18 : f32 to vector<2x8x1xf32>
    %26 = arith.mulf %24, %25 : vector<2x8x1xf32>
    %27 = arith.mulf %21, %21 : vector<2x8x1xf32>
    %28 = arith.subf %26, %27 : vector<2x8x1xf32>
    %cst_19 = arith.constant 0.000000e+00 : f32
    %29 = vector.broadcast %cst_19 : f32 to vector<2x8x1xf32>
    %30 = arith.maximumf %28, %29 : vector<2x8x1xf32>
    %31 = vector.broadcast %21 : vector<2x8x1xf32> to vector<2x8x256xf32>
    %32 = arith.subf %14, %31 : vector<2x8x256xf32>
    %cst_20 = arith.constant 9.99999993E-9 : f32
    %33 = vector.broadcast %cst_20 : f32 to vector<2x8x1xf32>
    %34 = arith.addf %30, %33 : vector<2x8x1xf32>
    %35 = math.rsqrt %34 : vector<2x8x1xf32>
    %36 = vector.broadcast %35 : vector<2x8x1xf32> to vector<2x8x256xf32>
    %37 = arith.mulf %32, %36 : vector<2x8x256xf32>
    %c0_21 = arith.constant 0 : index
    %c0_22 = arith.constant 0 : index
    %c0_23 = arith.constant 0 : index
    %38 = vector.load %arg5[%c0_21, %c0_22, %c0_23] : memref<2x8x1xf32, #tpu.memory_space<vmem>>, vector<2x8x1xf32>
    %cst_24 = arith.constant 1.000000e+00 : f32
    %39 = vector.broadcast %cst_24 : f32 to vector<2x8x1xf32>
    %40 = arith.addf %39, %38 : vector<2x8x1xf32>
    %41 = vector.broadcast %40 : vector<2x8x1xf32> to vector<2x8x256xf32>
    %42 = arith.mulf %37, %41 : vector<2x8x256xf32>
    %c0_25 = arith.constant 0 : index
    %c0_26 = arith.constant 0 : index
    %c0_27 = arith.constant 0 : index
    %43 = vector.load %arg6[%c0_25, %c0_26, %c0_27] : memref<2x8x1xf32, #tpu.memory_space<vmem>>, vector<2x8x1xf32>
    %44 = vector.broadcast %43 : vector<2x8x1xf32> to vector<2x8x256xf32>
    %45 = arith.addf %42, %44 : vector<2x8x256xf32>
    %c0_28 = arith.constant 0 : index
    %c0_29 = arith.constant 0 : index
    %c0_30 = arith.constant 0 : index
    %46 = vector.load %arg8[%c0_28, %c0_29, %c0_30] : memref<2x8x256xf32, #tpu.memory_space<vmem>>, vector<2x8x256xf32>
    tpu.vector_store %arg8[%c0_28, %c0_29, %c0_30], %45 {strides = array<i32>} : memref<2x8x256xf32, #tpu.memory_space<vmem>>, vector<2x8x256xf32>,
    return
  }
  func.func @transform_0(%arg0: i32) -> (i32, i32, i32) {
    %c0_i32 = arith.constant 0 : i32
    %c0_i32_0 = arith.constant 0 : i32
    %c0_i32_1 = arith.constant 0 : i32
    return %c0_i32, %arg0, %c0_i32_0 : i32, i32, i32
  }
  func.func @transform_1(%arg0: i32) -> (i32, i32, i32) {
    %c0_i32 = arith.constant 0 : i32
    %c0_i32_0 = arith.constant 0 : i32
    %c0_i32_1 = arith.constant 0 : i32
    %c0_i32_2 = arith.constant 0 : i32
    return %c0_i32, %c0_i32_0, %c0_i32_1 : i32, i32, i32
  }
  func.func @transform_2(%arg0: i32) -> (i32, i32, i32) {
    %c0_i32 = arith.constant 0 : i32
    %c0_i32_0 = arith.constant 0 : i32
    %c0_i32_1 = arith.constant 0 : i32
    return %c0_i32, %arg0, %c0_i32_0 : i32, i32, i32
  }
  func.func @transform_3(%arg0: i32) -> (i32, i32, i32) {
    %c0_i32 = arith.constant 0 : i32
    %c0_i32_0 = arith.constant 0 : i32
    %c0_i32_1 = arith.constant 0 : i32
    return %c0_i32, %arg0, %c0_i32_0 : i32, i32, i32
  }
  func.func @transform_4(%arg0: i32) -> (i32, i32, i32) {
    %c0_i32 = arith.constant 0 : i32
    %c0_i32_0 = arith.constant 0 : i32
    %c0_i32_1 = arith.constant 0 : i32
    return %c0_i32, %arg0, %c0_i32_0 : i32, i32, i32
  }
  func.func @transform_5(%arg0: i32) -> (i32, i32, i32) {
    %c0_i32 = arith.constant 0 : i32
    %c0_i32_0 = arith.constant 0 : i32
    %c0_i32_1 = arith.constant 0 : i32
    return %c0_i32, %arg0, %c0_i32_0 : i32, i32, i32
  }
  func.func @transform_6(%arg0: i32) -> (i32, i32, i32) {
    %c0_i32 = arith.constant 0 : i32
    %c0_i32_0 = arith.constant 0 : i32
    %c0_i32_1 = arith.constant 0 : i32
    %c0_i32_2 = arith.constant 0 : i32
    return %c0_i32, %c0_i32_0, %c0_i32_1 : i32, i32, i32
  }
  func.func @transform_7(%arg0: i32) -> (i32, i32, i32) {
    %c0_i32 = arith.constant 0 : i32
    %c0_i32_0 = arith.constant 0 : i32
    %c0_i32_1 = arith.constant 0 : i32
    return %c0_i32, %arg0, %c0_i32_0 : i32, i32, i32
  }
}

module attributes {stable_mosaic.version = 11 : i64} {
  func.func @_gemm_kernel(%arg0: memref<8x72xbf16, #tpu.memory_space<vmem>>, %arg1: memref<72x512xbf16, #tpu.memory_space<vmem>>, %arg2: memref<8x512xf32, #tpu.memory_space<vmem>>) attributes {dimension_semantics = [], scalar_prefetch = 0 : i64, scratch_operands = 0 : i64, tpu.core_type = #tpu.core_type<tc>} {
    %c0 = arith.constant 0 : index
    %c0_0 = arith.constant 0 : index
    %0 = vector.load %arg0[%c0, %c0_0] : memref<8x72xbf16, #tpu.memory_space<vmem>>, vector<8x72xbf16>
    %c0_1 = arith.constant 0 : index
    %c0_2 = arith.constant 0 : index
    %1 = vector.load %arg1[%c0_1, %c0_2] : memref<72x512xbf16, #tpu.memory_space<vmem>>, vector<72x512xbf16>
    %cst = arith.constant dense<0.000000e+00> : vector<8x512xf32>
    %2 = tpu.matmul %0, %1, %cst {dimension_numbers = #tpu.dot_dimension_numbers<[1], [0], [0], [1], [0, 0, 1, 1], [], []>} : vector<8x72xbf16>, vector<72x512xbf16>, vector<8x512xf32> -> vector<8x512xf32>
    %c0_3 = arith.constant 0 : index
    %c0_4 = arith.constant 0 : index
    %3 = vector.load %arg2[%c0_3, %c0_4] : memref<8x512xf32, #tpu.memory_space<vmem>>, vector<8x512xf32>
    tpu.vector_store %arg2[%c0_3, %c0_4], %2 {strides = array<i32>} : memref<8x512xf32, #tpu.memory_space<vmem>>, vector<8x512xf32>,
    return
  }
}

module attributes {stable_mosaic.version = 11 : i64} {
  func.func @_rgb_kernel(%arg0: memref<2x8x256xf32, #tpu.memory_space<vmem>>, %arg1: memref<3x8xf32, #tpu.memory_space<vmem>>, %arg2: memref<3x1xf32, #tpu.memory_space<vmem>>, %arg3: memref<2x3x256xf32, #tpu.memory_space<vmem>>) attributes {dimension_semantics = [], scalar_prefetch = 0 : i64, scratch_operands = 0 : i64, tpu.core_type = #tpu.core_type<tc>} {
    %c0 = arith.constant 0 : index
    %c0_0 = arith.constant 0 : index
    %0 = vector.load %arg1[%c0, %c0_0] : memref<3x8xf32, #tpu.memory_space<vmem>>, vector<3x8xf32>
    %c0_1 = arith.constant 0 : index
    %c0_2 = arith.constant 0 : index
    %1 = vector.load %arg2[%c0_1, %c0_2] : memref<3x1xf32, #tpu.memory_space<vmem>>, vector<3x1xf32>
    %c0_3 = arith.constant 0 : index
    %c0_4 = arith.constant 0 : index
    %c0_5 = arith.constant 0 : index
    %2 = vector.load %arg0[%c0_3, %c0_4, %c0_5] : memref<2x8x256xf32, #tpu.memory_space<vmem>>, vector<1x8x256xf32>
    %3 = vector.shape_cast %2 : vector<1x8x256xf32> to vector<8x256xf32>
    %cst = arith.constant dense<0.000000e+00> : vector<3x256xf32>
    %4 = tpu.matmul %0, %3, %cst {dimension_numbers = #tpu.dot_dimension_numbers<[1], [0], [0], [1], [0, 0, 1, 1], [], []>} : vector<3x8xf32>, vector<8x256xf32>, vector<3x256xf32> -> vector<3x256xf32>
    %5 = vector.broadcast %1 : vector<3x1xf32> to vector<3x256xf32>
    %6 = arith.addf %4, %5 : vector<3x256xf32>
    %c0_6 = arith.constant 0 : index
    %c0_7 = arith.constant 0 : index
    %c0_8 = arith.constant 0 : index
    %7 = vector.load %arg3[%c0_6, %c0_7, %c0_8] : memref<2x3x256xf32, #tpu.memory_space<vmem>>, vector<1x3x256xf32>
    %8 = vector.shape_cast %7 : vector<1x3x256xf32> to vector<3x256xf32>
    %9 = vector.shape_cast %6 : vector<3x256xf32> to vector<1x3x256xf32>
    tpu.vector_store %arg3[%c0_6, %c0_7, %c0_8], %9 {strides = array<i32>} : memref<2x3x256xf32, #tpu.memory_space<vmem>>, vector<1x3x256xf32>,
    %c1 = arith.constant 1 : index
    %c0_9 = arith.constant 0 : index
    %c0_10 = arith.constant 0 : index
    %10 = vector.load %arg0[%c1, %c0_9, %c0_10] : memref<2x8x256xf32, #tpu.memory_space<vmem>>, vector<1x8x256xf32>
    %11 = vector.shape_cast %10 : vector<1x8x256xf32> to vector<8x256xf32>
    %cst_11 = arith.constant dense<0.000000e+00> : vector<3x256xf32>
    %12 = tpu.matmul %0, %11, %cst_11 {dimension_numbers = #tpu.dot_dimension_numbers<[1], [0], [0], [1], [0, 0, 1, 1], [], []>} : vector<3x8xf32>, vector<8x256xf32>, vector<3x256xf32> -> vector<3x256xf32>
    %13 = vector.broadcast %1 : vector<3x1xf32> to vector<3x256xf32>
    %14 = arith.addf %12, %13 : vector<3x256xf32>
    %c1_12 = arith.constant 1 : index
    %c0_13 = arith.constant 0 : index
    %c0_14 = arith.constant 0 : index
    %15 = vector.load %arg3[%c1_12, %c0_13, %c0_14] : memref<2x3x256xf32, #tpu.memory_space<vmem>>, vector<1x3x256xf32>
    %16 = vector.shape_cast %15 : vector<1x3x256xf32> to vector<3x256xf32>
    %17 = vector.shape_cast %14 : vector<3x256xf32> to vector<1x3x256xf32>
    tpu.vector_store %arg3[%c1_12, %c0_13, %c0_14], %17 {strides = array<i32>} : memref<2x3x256xf32, #tpu.memory_space<vmem>>, vector<1x3x256xf32>,
    return
  }
}

</mosaic_0001>

<bundles_post_ra>
// kernel: synthesis_forward.15
= control target key start
LH: loop header
LB: loop body
LE: loop exit
PB: predicated region body
PF: predicated region fallthrough
CT: control target
= control target key end

     0   :  { %12 = vsyncpa [#allocation3], 0  ;;  %s461_s24 = smov [#allocation2]   ;;  %s740_s0 = inlined_call_operand.vmem [shape: f32[2,32,128], index: 0, kind: input, shape index: {}]   ;;  %s741_s1 = inlined_call_operand.vmem [shape: f32[2,1,128], index: 1, kind: input, shape index: {}]   ;;  %s742_s2 = inlined_call_operand.vmem [shape: f32[1,32,1], index: 2, kind: input, shape index: {}]   ;;  %s743_s3 = inlined_call_operand.vmem [shape: f32[1,32,1], index: 3, kind: input, shape index: {}]   ;;  %s744_s4 = inlined_call_operand.vmem [shape: f32[2,32,1], index: 4, kind: input, shape index: {}]   ;;  %s745_s5 = inlined_call_operand.vmem [shape: f32[2,32,1], index: 5, kind: input, shape index: {}]   ;;  %s746_s6 = inlined_call_operand.hbm [shape: f32[1,1,128], index: 6, kind: input, shape index: {}]   ;;  %s747_s7 = inlined_call_operand.vmem [shape: f32[2,32,128], index: 7, kind: output, shape index: {}]  }
   0x1   :  { %s31_s25 = sshll.u32 %s461_s24, 4  ;;  %s32_s25 = int_to_ptr.vmem [resolvable:$true] %s31_s25 }
   0x2   :  { %s447_s26 = scalar_lea.vmem %s32_s25, 16  ;;  %s451_s27 = scalar_lea.vmem %s32_s25, 32 }
   0x3   :  { %p448_p0 = scmp.ne.s32.totalorder %s32_s25, %s447_s26  ;;  %p452_p1 = scmp.lt.s32.totalorder %s32_s25, %s32_s25 }
   0x4   :  { %p453_p2 = scmp.lt.s32.totalorder %s451_s27, %s447_s26 }
   0x6   :  { %p454_p3 = por %p453_p2, %p452_p1 }
   0x8   :  { %p455_p4 = pnand %p454_p3, %p448_p0 }
   0xa   :  { %458 = shalt.err (!%p455_p4)
}
   0xb   :  { %34 = dma.hbm_to_vmem [thread:$0]  %s746_s6, 16, %s32_s25, [#allocation3]  }
   0xc   :  { %459 = dma.done.wait [#allocation3], 16  }
   0xd   :  { %460 = vsyncadd [#allocation3], 4294967280  ;;  %v462_v0 = vmov 0   ;;  %v50_v1 = vld [vmem:[%s742_s2 + $0x10] sm:$0xff]  ;;  %v48_v2 = vld [vmem:[%s742_s2] sm:$0xff] }
   0xe   :  { %422 = vset.pattern.permute.xlu1 %v462_v0  ;;  %421 = vset.pattern.permute.xlu0 %v462_v0  ;;  %v51_v3 = vld [vmem:[%s742_s2 + $0x18] sm:$0xff]  ;;  %v49_v4 = vld [vmem:[%s742_s2 + $0x8] sm:$0xff]  ;;  %v100_v6 = vld [vmem:[%s743_s3] sm:$0xff] }
   0xf   :  { %76 = vperm.xlu1 %422, %v50_v1   ;;  %66 = vperm.xlu0 %421, %v48_v2   ;;  %v101_v5 = vld [vmem:[%s743_s3 + $0x8] sm:$0xff]  ;;  %v103_v7 = vld [vmem:[%s743_s3 + $0x18] sm:$0xff]  ;;  %v102_v8 = vld [vmem:[%s743_s3 + $0x10] sm:$0xff] }
  0x10   :  { %v283_v9 = vld [vmem:[%s744_s4] sm:$0xff]  ;;  %v284_v10 = vld [vmem:[%s744_s4 + $0x8] sm:$0xff]  ;;  %v285_v13 = vld [vmem:[%s744_s4 + $0x10] sm:$0xff] }
  0x11   :  { %v291_v11 = vadd.f32 1.0, %v283_v9  ;;  %v292_v12 = vadd.f32 1.0, %v284_v10  ;;  %v287_v14 = vld [vmem:[%s744_s4 + $0x20] sm:$0xff]  ;;  %v293_v15 = vadd.f32 1.0, %v285_v13  ;;  %v286_v17 = vld [vmem:[%s744_s4 + $0x18] sm:$0xff]  ;;  %v289_v18 = vld [vmem:[%s744_s4 + $0x30] sm:$0xff] }
  0x12   :  { %v295_v16 = vadd.f32 1.0, %v287_v14  ;;  %v294_v19 = vadd.f32 1.0, %v286_v17  ;;  %v297_v20 = vadd.f32 1.0, %v289_v18  ;;  %v288_v21 = vld [vmem:[%s744_s4 + $0x28] sm:$0xff]  ;;  %v347_v23 = vld [vmem:[%s745_s5] sm:$0xff]  ;;  %v290_v24 = vld [vmem:[%s744_s4 + $0x38] sm:$0xff] }
  0x13   :  { %81 = vperm.xlu1 %422, %v51_v3   ;;  %71 = vperm.xlu0 %421, %v49_v4   ;;  %v296_v22 = vadd.f32 1.0, %v288_v21  ;;  %v298_v25 = vadd.f32 1.0, %v290_v24  ;;  %v349_v26 = vld [vmem:[%s745_s5 + $0x10] sm:$0xff]  ;;  %v348_v27 = vld [vmem:[%s745_s5 + $0x8] sm:$0xff]  ;;  %v350_v28 = vld [vmem:[%s745_s5 + $0x18] sm:$0xff] }
  0x14   :  { %v416_v30 = vld [vmem:[%s741_s1] ss:$0 sm:$0xff]  ;;  %v417_v31 = vld [vmem:[%s741_s1 + $0x1] ss:$0 sm:$0xff]  ;;  %v39_v37 = vld [vmem:[%s740_s0 + $0x8] sm:$0xff] }
  0x15   :  { %v38_v38 = vld [vmem:[%s740_s0] sm:$0xff]  ;;  %v40_v47 = vld [vmem:[%s740_s0 + $0x10] sm:$0xff]  ;;  %v41_v51 = vld [vmem:[%s740_s0 + $0x18] sm:$0xff] }
  0x16   :  { %v42_v39 = vld [vmem:[%s740_s0 + $0x20] sm:$0xff]  ;;  %v44_v52 = vld [vmem:[%s740_s0 + $0x30] sm:$0xff]  ;;  %v43_v53 = vld [vmem:[%s740_s0 + $0x28] sm:$0xff] }
  0x17   :  { %111 = vperm.xlu1 %422, %v101_v5   ;;  %106 = vperm.xlu0 %421, %v100_v6   ;;  %v418_v2 = vld [vmem:[#allocation2] ss:$0 sm:$0xff] }
  0x1b   :  { %121 = vperm.xlu1 %422, %v103_v7   ;;  %116 = vperm.xlu0 %421, %v102_v8  }
  0x1f   :  { %301 = vperm.xlu1 %422, %v291_v11   ;;  %306 = vperm.xlu0 %421, %v292_v12   ;;  %v45_v11 = vld [vmem:[%s740_s0 + $0x38] sm:$0xff] }
  0x23   :  { %311 = vperm.xlu1 %422, %v293_v15   ;;  %321 = vperm.xlu0 %421, %v295_v16  }
  0x27   :  { %316 = vperm.xlu1 %422, %v294_v19   ;;  %331 = vperm.xlu0 %421, %v297_v20  }
  0x2b   :  { %326 = vperm.xlu1 %422, %v296_v22   ;;  %357 = vperm.xlu0 %421, %v347_v23  }
  0x2f   :  { %336 = vperm.xlu1 %422, %v298_v25   ;;  %367 = vperm.xlu0 %421, %v349_v26  }
  0x33   :  { %362 = vperm.xlu1 %422, %v348_v27  }
  0x37   :  { %372 = vperm.xlu1 %422, %v350_v28  }
  0x8a   :  { %v77_v29 = vpop.permute.xlu1 %76  ;;  %v67_v32 = vpop.permute.xlu0 %66 }
  0x8b   :  { %v84_v33 = vmul.f32 %v416_v30, %v67_v32  ;;  %v88_v34 = vmul.f32 %v417_v31, %v67_v32  ;;  %v86_v41 = vmul.f32 %v416_v30, %v77_v29  ;;  %v90_v42 = vmul.f32 %v417_v31, %v77_v29 }
  0x8d   :  { %v92_v45 = vadd.f32 %v84_v33, %v38_v38  ;;  %v96_v46 = vadd.f32 %v88_v34, %v42_v39  ;;  %v94_v57 = vadd.f32 %v86_v41, %v40_v47  ;;  %v98_v61 = vadd.f32 %v90_v42, %v44_v52  ;;  %v354_v41 = vld [vmem:[%s745_s5 + $0x38] sm:$0xff]  ;;  %v351_v42 = vld [vmem:[%s745_s5 + $0x20] sm:$0xff] }
  0x8e   :  { %v82_v35 = vpop.permute.xlu1 %81  ;;  %v72_v36 = vpop.permute.xlu0 %71 }
  0x8f   :  { %v85_v40 = vmul.f32 %v416_v30, %v72_v36  ;;  %v87_v43 = vmul.f32 %v416_v30, %v82_v35  ;;  %v89_v48 = vmul.f32 %v417_v31, %v72_v36  ;;  %v91_v8 = vmul.f32 %v417_v31, %v82_v35 }
  0x91   :  { %v93_v44 = vadd.f32 %v85_v40, %v39_v37  ;;  %v95_v60 = vadd.f32 %v87_v43, %v41_v51  ;;  %v97_v62 = vadd.f32 %v89_v48, %v43_v53  ;;  %v99_v19 = vadd.f32 %v91_v8, %v45_v11  ;;  %v352_v40 = vld [vmem:[%s745_s5 + $0x28] sm:$0xff]  ;;  %v353_v43 = vld [vmem:[%s745_s5 + $0x30] sm:$0xff] }
  0x92   :  { %v112_v49 = vpop.permute.xlu1 %111  ;;  %v107_v50 = vpop.permute.xlu0 %106 }
  0x93   :  { %v125_v54 = vadd.f32 %v112_v49, %v93_v44  ;;  %v124_v55 = vadd.f32 %v107_v50, %v92_v45  ;;  %v128_v56 = vadd.f32 %v107_v50, %v96_v46  ;;  %v129_v15 = vadd.f32 %v112_v49, %v97_v62 }
  0x95   :  { %v141_v58 = vmul.f32 0.2, %v125_v54  ;;  %v140_v59 = vmul.f32 0.2, %v124_v55  ;;  %v144_v63 = vmul.f32 0.2, %v128_v56 }
  0x96   :  { %v122_v0 = vpop.permute.xlu1 %121  ;;  %v117_v1 = vpop.permute.xlu0 %116  ;;  %vm133_vm0 = vcmp.ge.f32.partialorder %v125_v54, 0.0  ;;  %vm132_vm1 = vcmp.ge.f32.partialorder %v124_v55, 0.0  ;;  %vm136_vm2 = vcmp.ge.f32.partialorder %v128_v56, 0.0  ;;  %v145_v22 = vmul.f32 0.2, %v129_v15 }
  0x97   :  { %v127_v3 = vadd.f32 %v122_v0, %v95_v60  ;;  %v126_v4 = vadd.f32 %v117_v1, %v94_v57  ;;  %v130_v5 = vadd.f32 %v117_v1, %v98_v61  ;;  %v593_v6 = vsel %vm133_vm0, %v125_v54, %v141_v58 }
  0x98   :  { %v595_v7 = vsel %vm132_vm1, %v124_v55, %v140_v59  ;;  %v164_v10 = vmul.f32 %v418_v2, %v593_v6  ;;  %v602_v14 = vsel %vm136_vm2, %v128_v56, %v144_v63  ;;  %v131_v23 = vadd.f32 %v122_v0, %v99_v19 }
  0x99   :  { %v142_v9 = vmul.f32 0.2, %v126_v4  ;;  %v146_v12 = vmul.f32 0.2, %v130_v5  ;;  %v163_v13 = vmul.f32 %v418_v2, %v595_v7  ;;  %vm134_vm3 = vcmp.ge.f32.partialorder %v126_v4, 0.0 }
  0x9a   :  { %v143_v16 = vmul.f32 0.2, %v127_v3  ;;  %173 = vadd.xlane.f32.xlu1 %v164_v10  ;;  %vm138_vm4 = vcmp.ge.f32.partialorder %v130_v5, 0.0  ;;  %vm135_vm5 = vcmp.ge.f32.partialorder %v127_v3, 0.0  ;;  %v167_v20 = vmul.f32 %v418_v2, %v602_v14  ;;  %v632_v44 = vpop.permute.xlu1 %301  ;;  %v638_v47 = vpop.permute.xlu0 %306 }
  0x9b   :  { %v604_v17 = vsel %vm134_vm3, %v126_v4, %v142_v9  ;;  %171 = vadd.xlane.f32.xlu0 %v163_v13  ;;  %v608_v21 = vsel %vm138_vm4, %v130_v5, %v146_v12  ;;  %vm137_vm6 = vcmp.ge.f32.partialorder %v129_v15, 0.0  ;;  %v147_v27 = vmul.f32 0.2, %v131_v23 }
  0x9c   :  { %v165_v18 = vmul.f32 %v418_v2, %v604_v17  ;;  %v610_v24 = vsel %vm135_vm5, %v127_v3, %v143_v16  ;;  %v169_v25 = vmul.f32 %v418_v2, %v608_v21  ;;  %v614_v28 = vsel %vm137_vm6, %v129_v15, %v145_v22 }
  0x9d   :  { %v166_v26 = vmul.f32 %v418_v2, %v610_v24  ;;  %vm139_vm7 = vcmp.ge.f32.partialorder %v131_v23, 0.0  ;;  %v195_v29 = vmul.f32 %v163_v13, %v163_v13  ;;  %v168_v30 = vmul.f32 %v418_v2, %v614_v28 }
  0x9e   :  { %179 = vadd.xlane.f32.xlu1 %v167_v20  ;;  %v617_v31 = vsel %vm139_vm7, %v131_v23, %v147_v27  ;;  %v197_v32 = vmul.f32 %v165_v18, %v165_v18  ;;  %v199_v34 = vmul.f32 %v167_v20, %v167_v20  ;;  %v196_v35 = vmul.f32 %v164_v10, %v164_v10  ;;  %v634_v45 = vpop.permute.xlu1 %311  ;;  %v642_v49 = vpop.permute.xlu0 %321 }
  0x9f   :  { %175 = vadd.xlane.f32.xlu0 %v165_v18  ;;  %v170_v33 = vmul.f32 %v418_v2, %v617_v31  ;;  %v201_v36 = vmul.f32 %v169_v25, %v169_v25  ;;  %v198_v37 = vmul.f32 %v166_v26, %v166_v26  ;;  %v200_v38 = vmul.f32 %v168_v30, %v168_v30 }
  0xa1   :  { %v202_v39 = vmul.f32 %v170_v33, %v170_v33 }
  0xa2   :  { %183 = vadd.xlane.f32.xlu1 %v169_v25  ;;  %v636_v46 = vpop.permute.xlu1 %316  ;;  %v646_v51 = vpop.permute.xlu0 %331 }
  0xa3   :  { %177 = vadd.xlane.f32.xlu0 %v166_v26 }
  0xa6   :  { %203 = vadd.xlane.f32.xlu1 %v195_v29  ;;  %v640_v48 = vpop.permute.xlu1 %326  ;;  %v650_v53 = vpop.permute.xlu0 %357 }
  0xa7   :  { %181 = vadd.xlane.f32.xlu0 %v168_v30 }
  0xaa   :  { %207 = vadd.xlane.f32.xlu1 %v197_v32  ;;  %v644_v50 = vpop.permute.xlu1 %336  ;;  %v654_v55 = vpop.permute.xlu0 %367 }
  0xab   :  { %185 = vadd.xlane.f32.xlu0 %v170_v33 }
  0xae   :  { %211 = vadd.xlane.f32.xlu1 %v199_v34  ;;  %v648_v52 = vpop.permute.xlu1 %362 }
  0xaf   :  { %205 = vadd.xlane.f32.xlu0 %v196_v35 }
  0xb2   :  { %215 = vadd.xlane.f32.xlu1 %v201_v36  ;;  %v652_v54 = vpop.permute.xlu1 %372 }
  0xb3   :  { %209 = vadd.xlane.f32.xlu0 %v198_v37 }
  0xb7   :  { %213 = vadd.xlane.f32.xlu0 %v200_v38 }
  0xbb   :  { %217 = vadd.xlane.f32.xlu0 %v202_v39 }
  0xc3   :  { %382 = vperm.xlu1 %422, %v352_v40  }
  0xc7   :  { %392 = vperm.xlu1 %422, %v354_v41  }
  0xd1   :  { %377 = vperm.xlu0 %421, %v351_v42  }
  0xd5   :  { %387 = vperm.xlu0 %421, %v353_v43  }
 0x123   :  { %v174_v56 = vpop.xlane.xlu1 %173 }
 0x124   :  { %v172_v57 = vpop.xlane.xlu0 %171  ;;  %v666_v13 = vmul.f32 0.0625, %v174_v56 }
 0x125   :  { %v656_v61 = vmul.f32 0.0625, %v172_v57 }
 0x126   :  { %v228_v26 = vmul.f32 %v666_v13, %v666_v13 }
 0x127   :  { %v180_v58 = vpop.xlane.xlu1 %179  ;;  %v227_v0 = vmul.f32 %v656_v61, %v656_v61 }
 0x128   :  { %v176_v59 = vpop.xlane.xlu0 %175  ;;  %v662_v8 = vmul.f32 0.0625, %v180_v58 }
 0x129   :  { %v660_v1 = vmul.f32 0.0625, %v176_v59 }
 0x12a   :  { %v231_v20 = vmul.f32 %v662_v8, %v662_v8 }
 0x12b   :  { %v184_v60 = vpop.xlane.xlu1 %183  ;;  %v229_v9 = vmul.f32 %v660_v1, %v660_v1 }
 0x12c   :  { %v178_v62 = vpop.xlane.xlu0 %177  ;;  %v668_v18 = vmul.f32 0.0625, %v184_v60 }
 0x12d   :  { %v674_v27 = vmul.f32 0.0625, %v178_v62 }
 0x12e   :  { %v233_v33 = vmul.f32 %v668_v18, %v668_v18 }
 0x12f   :  { %v204_v63 = vpop.xlane.xlu1 %203  ;;  %v230_v40 = vmul.f32 %v674_v27, %v674_v27 }
 0x130   :  { %v182_v2 = vpop.xlane.xlu0 %181  ;;  %v219_v3 = vmul.f32 0.0625, %v204_v63 }
 0x131   :  { %v678_v36 = vmul.f32 0.0625, %v182_v2 }
 0x132   :  { %v235_v4 = vsub.f32 %v219_v3, %v227_v0 }
 0x133   :  { %v208_v5 = vpop.xlane.xlu1 %207  ;;  %v232_v59 = vmul.f32 %v678_v36, %v678_v36 }
 0x134   :  { %v243_v10 = vmax.f32 %v235_v4, 0.0  ;;  %v186_v11 = vpop.xlane.xlu0 %185  ;;  %v221_v12 = vmul.f32 0.0625, %v208_v5 }
 0x135   :  { %v684_v63 = vmul.f32 0.0625, %v186_v11 }
 0x136   :  { %v259_v15 = vadd.f32 1e-08, %v243_v10  ;;  %v237_v16 = vsub.f32 %v221_v12, %v229_v9  ;;  %v251_v9 = vsub.f32 %v595_v7, %v656_v61 }
 0x137   :  { %v212_v19 = vpop.xlane.xlu1 %211 }
 0x138   :  { %423 = vrsqrt.f32 %v259_v15  ;;  %v245_v22 = vmax.f32 %v237_v16, 0.0  ;;  %v206_v23 = vpop.xlane.xlu0 %205  ;;  %v223_v25 = vmul.f32 0.0625, %v212_v19  ;;  %v234_v15 = vmul.f32 %v684_v63, %v684_v63 }
 0x139   :  { %v220_v29 = vmul.f32 0.0625, %v206_v23  ;;  %v253_v23 = vsub.f32 %v604_v17, %v660_v1  ;;  %v252_v17 = vsub.f32 %v593_v6, %v666_v13  ;;  %v254_v6 = vsub.f32 %v610_v24, %v674_v27 }
 0x13a   :  { %v261_v30 = vadd.f32 1e-08, %v245_v22  ;;  %v239_v32 = vsub.f32 %v223_v25, %v231_v20 }
 0x13b   :  { %v236_v34 = vsub.f32 %v220_v29, %v228_v26  ;;  %v216_v35 = vpop.xlane.xlu1 %215 }
 0x13c   :  { %425 = vrsqrt.f32 %v261_v30  ;;  %v247_v37 = vmax.f32 %v239_v32, 0.0  ;;  %v210_v38 = vpop.xlane.xlu0 %209  ;;  %v225_v39 = vmul.f32 0.0625, %v216_v35  ;;  %v255_v32 = vsub.f32 %v602_v14, %v662_v8 }
 0x13d   :  { %v244_v41 = vmax.f32 %v236_v34, 0.0  ;;  %v222_v42 = vmul.f32 0.0625, %v210_v38  ;;  %v257_v14 = vsub.f32 %v608_v21, %v668_v18 }
 0x13e   :  { %v263_v43 = vadd.f32 1e-08, %v247_v37  ;;  %v241_v56 = vsub.f32 %v225_v39, %v233_v33 }
 0x13f   :  { %v260_v57 = vadd.f32 1e-08, %v244_v41  ;;  %v238_v58 = vsub.f32 %v222_v42, %v230_v40 }
 0x140   :  { %427 = vrsqrt.f32 %v263_v43  ;;  %v249_v60 = vmax.f32 %v241_v56, 0.0  ;;  %v214_v62 = vpop.xlane.xlu0 %213  ;;  %v383_v43 = vpop.permute.xlu1 %382 }
 0x141   :  { %429 = vrsqrt.f32 %v260_v57  ;;  %v246_v0 = vmax.f32 %v238_v58, 0.0  ;;  %v224_v2 = vmul.f32 0.0625, %v214_v62 }
 0x142   :  { %v265_v3 = vadd.f32 1e-08, %v249_v60 }
 0x143   :  { %v262_v4 = vadd.f32 1e-08, %v246_v0  ;;  %v240_v5 = vsub.f32 %v224_v2, %v232_v59 }
 0x144   :  { %431 = vrsqrt.f32 %v265_v3  ;;  %v218_v10 = vpop.xlane.xlu0 %217  ;;  %v393_v57 = vpop.permute.xlu1 %392 }
 0x145   :  { %v424_v12 = vpop.eup %423  ;;  %433 = vrsqrt.f32 %v262_v4  ;;  %v248_v16 = vmax.f32 %v240_v5, 0.0  ;;  %v226_v19 = vmul.f32 0.0625, %v218_v10 }
 0x146   :  { %v275_v11 = vmul.f32 %v424_v12, %v251_v9 }
 0x147   :  { %v264_v20 = vadd.f32 1e-08, %v248_v16  ;;  %v242_v22 = vsub.f32 %v226_v19, %v234_v15 }
 0x148   :  { %v339_v25 = vmul.f32 %v632_v44, %v275_v11 }
 0x149   :  { %v426_v26 = vpop.eup %425  ;;  %435 = vrsqrt.f32 %v264_v20  ;;  %v250_v7 = vmax.f32 %v242_v22, 0.0 }
 0x14a   :  { %v395_v61 = vadd.f32 %v650_v53, %v339_v25  ;;  %v277_v29 = vmul.f32 %v426_v26, %v253_v23 }
 0x14b   :  { %v266_v30 = vadd.f32 1e-08, %v250_v7 }
 0x14c   :  { %403 = vst [vmem:[%s747_s7] sm:$0xff] %v395_v61  ;;  %v341_v33 = vmul.f32 %v634_v45, %v277_v29  ;;  %v378_v37 = vpop.permute.xlu0 %377 }
 0x14d   :  { %v428_v34 = vpop.eup %427  ;;  %437 = vrsqrt.f32 %v266_v30 }
 0x14e   :  { %v430_v44 = vpop.eup %429  ;;  %v397_v1 = vadd.f32 %v654_v55, %v341_v33  ;;  %v279_v53 = vmul.f32 %v428_v34, %v255_v32 }
 0x14f   :  { %v276_v35 = vmul.f32 %v430_v44, %v252_v17 }
 0x150   :  { %405 = vst [vmem:[%s747_s7 + $0x10] sm:$0xff] %v397_v1  ;;  %v343_v45 = vmul.f32 %v642_v49, %v279_v53  ;;  %v256_v49 = vsub.f32 %v614_v28, %v678_v36  ;;  %v258_v28 = vsub.f32 %v617_v31, %v684_v63 }
 0x151   :  { %v432_v8 = vpop.eup %431  ;;  %v340_v13 = vmul.f32 %v638_v47, %v276_v35  ;;  %v388_v47 = vpop.permute.xlu0 %387 }
 0x152   :  { %v434_v38 = vpop.eup %433  ;;  %v399_v55 = vadd.f32 %v378_v37, %v343_v45  ;;  %v281_v39 = vmul.f32 %v432_v8, %v257_v14 }
 0x153   :  { %v396_v40 = vadd.f32 %v648_v52, %v340_v13  ;;  %v278_v41 = vmul.f32 %v434_v38, %v254_v6 }
 0x154   :  { %407 = vst [vmem:[%s747_s7 + $0x20] sm:$0xff] %v399_v55  ;;  %v345_v21 = vmul.f32 %v646_v51, %v281_v39 }
 0x155   :  { %404 = vst [vmem:[%s747_s7 + $0x8] sm:$0xff] %v396_v40  ;;  %v342_v24 = vmul.f32 %v636_v46, %v278_v41 }
 0x156   :  { %v436_v18 = vpop.eup %435  ;;  %v401_v27 = vadd.f32 %v388_v47, %v345_v21 }
 0x157   :  { %v398_v52 = vadd.f32 %v652_v54, %v342_v24  ;;  %v280_v42 = vmul.f32 %v436_v18, %v256_v49 }
 0x158   :  { %409 = vst [vmem:[%s747_s7 + $0x30] sm:$0xff] %v401_v27 }
 0x159   :  { %406 = vst [vmem:[%s747_s7 + $0x18] sm:$0xff] %v398_v52  ;;  %v344_v46 = vmul.f32 %v640_v48, %v280_v42 }
 0x15a   :  { %v438_v51 = vpop.eup %437 }
 0x15b   :  { %v400_v36 = vadd.f32 %v383_v43, %v344_v46  ;;  %v282_v56 = vmul.f32 %v438_v51, %v258_v28 }
 0x15d   :  { %408 = vst [vmem:[%s747_s7 + $0x28] sm:$0xff] %v400_v36  ;;  %v346_v54 = vmul.f32 %v644_v50, %v282_v56 }
 0x15f   :  { %v402_v58 = vadd.f32 %v393_v57, %v346_v54 }
 0x161   :  { %410 = vst [vmem:[%s747_s7 + $0x38] sm:$0xff] %v402_v58 }
 0x162   :  { %415 = vsyncpa [#allocation3], 1 }

// kernel: synthesis_forward.16
= control target key start
LH: loop header
LB: loop body
LE: loop exit
PB: predicated region body
PF: predicated region fallthrough
CT: control target
= control target key end

     0   :  { %vm194_vm0 = vcmask 261120   ;;  %s504_s1 = inlined_call_operand.vmem [shape: bf16[288,32], index: 1, kind: input, shape index: {}]   ;;  %s505_s0 = inlined_call_operand.vmem [shape: bf16[32,288], index: 0, kind: input, shape index: {}]   ;;  %s506_s2 = inlined_call_operand.vmem [shape: f32[32,32], index: 2, kind: output, shape index: {}]  }
   0x1   :  { %v373_v0 = vld [vmem:[%s504_s1 + $0x78] sm:$0xff]   ;;  %v375_v2 = vld [vmem:[%s504_s1 + $0x70] sm:$0xff]   ;;  %v377_v4 = vld [vmem:[%s504_s1 + $0x68] sm:$0xff]  }
   0x2   :  { %v374_v1 = vld [vmem:[%s504_s1 + $0x38] sm:$0xff]   ;;  %333 = vmatprep.subr.bf16.mxu0 %v373_v0  ;;  %v376_v3 = vld [vmem:[%s504_s1 + $0x30] sm:$0xff]   ;;  %v378_v5 = vld [vmem:[%s504_s1 + $0x28] sm:$0xff]  }
   0x3   :  { %334 = vmatpush3.bf16.msra.mxu0 %v374_v1  ;;  %v379_v6 = vld [vmem:[%s504_s1 + $0x60] sm:$0xff]   ;;  %v381_v8 = vld [vmem:[%s504_s1 + $0x58] sm:$0xff]   ;;  %v387_v9 = vld [vmem:[%s504_s1 + $0x88] sm:$0xff]  }
   0x4   :  { %335 = vmatprep.subr.bf16.mxu0 %v375_v2  ;;  %v380_v7 = vld [vmem:[%s504_s1 + $0x20] sm:$0xff]   ;;  %v382_v10 = vld [vmem:[%s504_s1 + $0x18] sm:$0xff]   ;;  %v383_v11 = vld [vmem:[%s504_s1 + $0x50] sm:$0xff]   ;;  %365 = vmatprep.subr.bf16.mxu1 %v387_v9 }
   0x5   :  { %v384_v12 = vld [vmem:[%s504_s1 + $0x10] sm:$0xff]   ;;  %366 = vmatpush3.bf16.msra.mxu1 %v387_v9  ;;  %v390_v13 = vld [vmem:[%s504_s1 + $0x80] sm:$0xff]   ;;  %v385_v14 = vld [vmem:[%s504_s1 + $0x48] sm:$0xff]  }
   0x6   :  { %367 = vmatprep.subr.bf16.mxu1 %v390_v13  ;;  %v393_v15 = vld [vmem:[%s505_s0 + $0x4] ss:$12 sps:$4 sm:$0xff]   ;;  %v394_v16 = vld [vmem:[%s505_s0 + $0x8] ss:$12 sps:$4 sm:$0xff]   ;;  %v395_v17 = vld [vmem:[%s505_s0 + $0x20] ss:$12 sps:$4 sm:$0xff]  }
   0x7   :  { %336 = vmatpush3.bf16.msra.mxu0 %v376_v3  ;;  %233 = vmatprep.mubr.bf16.mxu0 %v393_v15  ;;  %v386_v18 = vld [vmem:[%s504_s1 + $0x8] sm:$0xff]   ;;  %v388_v19 = vld [vmem:[%s504_s1 + $0x40] sm:$0xff]  }
   0x8   :  { %337 = vmatprep.subr.bf16.mxu0 %v377_v4  ;;  %369 = vmatprep.mubr.msk.bf16.mxu1 %vm194_vm0, %v394_v16  ;;  %v389_v20 = vld [vmem:[%s504_s1] sm:$0xff]   ;;  %v396_v22 = vld [vmem:[%s505_s0 + $0x1c] ss:$12 sps:$4 sm:$0xff]  }
   0x9   :  { %368 = vmatpush3.bf16.msra.mxu1 %v390_v13  ;;  %v391_v21 = vld [vmem:[%s505_s0] ss:$12 sps:$4 sm:$0xff]   ;;  %v398_v23 = vld [vmem:[%s505_s0 + $0x18] ss:$12 sps:$4 sm:$0xff]  }
   0xb   :  { %338 = vmatpush3.bf16.msra.mxu0 %v378_v5 }
   0xc   :  { %339 = vmatprep.subr.bf16.mxu0 %v379_v6  ;;  %370 = vmatmul.mubr.msk.bf16.vlgmr.msra.gmra.mxu1 %vm194_vm0, %v395_v17 }
   0xf   :  { %340 = vmatpush3.bf16.msra.mxu0 %v380_v7 }
  0x10   :  { %341 = vmatprep.subr.bf16.mxu0 %v381_v8 }
  0x13   :  { %342 = vmatpush3.bf16.msra.mxu0 %v382_v10 }
  0x14   :  { %343 = vmatprep.subr.bf16.mxu0 %v383_v11 }
  0x17   :  { %344 = vmatpush3.bf16.msra.mxu0 %v384_v12 }
  0x18   :  { %345 = vmatprep.subr.bf16.mxu0 %v385_v14 }
  0x1b   :  { %346 = vmatpush3.bf16.msra.mxu0 %v386_v18 }
  0x1c   :  { %347 = vmatprep.subr.bf16.mxu0 %v388_v19 }
  0x1f   :  { %348 = vmatpush3.bf16.msra.mxu0 %v389_v20 }
  0x22   :  { %234 = vmatmul.mubr.bf16.vlgmr.msra.gmra.mxu0 %v391_v21 }
  0x23   :  { %241 = vmatprep.mubr.bf16.mxu0 %v396_v22 }
  0x2a   :  { %242 = vmatmul.mubr.bf16.gmra.mxu0 %v398_v23 }
  0xcc   :  { %v371_v24 = vpop.f32.mrf.mxu1 }
  0xce   :  { %v284_v25 = vpop.f32.mrf.mxu1 }
  0xd0   :  { %v372_v28 = vpop.f32.mrf.mxu1 }
  0xd2   :  { %v287_v33 = vpop.f32.mrf.mxu1 }
  0xe2   :  { %v349_v26 = vpop.f32.mrf.mxu0 }
  0xe4   :  { %v350_v27 = vpop.f32.mrf.mxu0 }
  0xe5   :  { %v351_v29 = vadd.f32 %v350_v27, %v349_v26 }
  0xe6   :  { %v352_v30 = vpop.f32.mrf.mxu0 }
  0xe7   :  { %v285_v31 = vadd.f32 %v351_v29, %v284_v25 }
  0xe8   :  { %v353_v32 = vpop.f32.mrf.mxu0 }
  0xe9   :  { %299 = vst.msk [vmem:[%s506_s2] sm:$0xff] %vm194_vm0, %v285_v31  ;;  %v354_v34 = vadd.f32 %v353_v32, %v352_v30 }
  0xea   :  { %v355_v35 = vpop.f32.mrf.mxu0 }
  0xeb   :  { %v288_v36 = vadd.f32 %v354_v34, %v287_v33 }
  0xec   :  { %v356_v37 = vpop.f32.mrf.mxu0 }
  0xed   :  { %300 = vst.msk [vmem:[%s506_s2 + $0x8] sm:$0xff] %vm194_vm0, %v288_v36  ;;  %v357_v38 = vadd.f32 %v356_v37, %v355_v35 }
  0xee   :  { %v358_v39 = vpop.f32.mrf.mxu0 }
  0xef   :  { %v293_v40 = vadd.f32 %v371_v24, %v357_v38 }
  0xf0   :  { %v359_v41 = vpop.f32.mrf.mxu0 }
  0xf1   :  { %301 = vst.msk [vmem:[%s506_s2 + $0x10] sm:$0xff] %vm194_vm0, %v293_v40  ;;  %v360_v42 = vadd.f32 %v359_v41, %v358_v39 }
  0xf3   :  { %v296_v43 = vadd.f32 %v372_v28, %v360_v42 }
  0xf5   :  { %302 = vst.msk [vmem:[%s506_s2 + $0x18] sm:$0xff] %vm194_vm0, %v296_v43 }

// kernel: synthesis_forward.17
= control target key start
LH: loop header
LB: loop body
LE: loop exit
PB: predicated region body
PF: predicated region fallthrough
CT: control target
= control target key end

     0   :  { %v425_v0 = vmov 0   ;;  %s703_s2 = inlined_call_operand.vmem [shape: f32[1,32,1], index: 2, kind: input, shape index: {}]   ;;  %s704_s3 = inlined_call_operand.vmem [shape: f32[1,32,1], index: 3, kind: input, shape index: {}]   ;;  %s705_s4 = inlined_call_operand.vmem [shape: f32[2,32,1], index: 4, kind: input, shape index: {}]   ;;  %s706_s5 = inlined_call_operand.vmem [shape: f32[2,32,1], index: 5, kind: input, shape index: {}]   ;;  %s707_s1 = inlined_call_operand.vmem [shape: f32[2,1,128], index: 1, kind: input, shape index: {}]   ;;  %s708_s0 = inlined_call_operand.vmem [shape: f32[2,32,128], index: 0, kind: input, shape index: {}]   ;;  %s709_s6 = inlined_call_operand.vmem [shape: f32[1,1,128], index: 6, kind: input, shape index: {}]   ;;  %s710_s7 = inlined_call_operand.vmem [shape: f32[2,32,128], index: 7, kind: output, shape index: {}]  }
   0x1   :  { %408 = vset.pattern.permute.xlu1 %v425_v0  ;;  %407 = vset.pattern.permute.xlu0 %v425_v0  ;;  %v38_v1 = vld [vmem:[%s703_s2 + $0x10] sm:$0xff]  ;;  %v36_v2 = vld [vmem:[%s703_s2] sm:$0xff]  ;;  %v39_v3 = vld [vmem:[%s703_s2 + $0x18] sm:$0xff] }
   0x2   :  { %64 = vperm.xlu1 %408, %v38_v1   ;;  %54 = vperm.xlu0 %407, %v36_v2   ;;  %v37_v4 = vld [vmem:[%s703_s2 + $0x8] sm:$0xff]  ;;  %v88_v6 = vld [vmem:[%s704_s3] sm:$0xff]  ;;  %v91_v7 = vld [vmem:[%s704_s3 + $0x18] sm:$0xff] }
   0x3   :  { %v89_v5 = vld [vmem:[%s704_s3 + $0x8] sm:$0xff]  ;;  %v90_v8 = vld [vmem:[%s704_s3 + $0x10] sm:$0xff]  ;;  %v271_v9 = vld [vmem:[%s705_s4] sm:$0xff] }
   0x4   :  { %v272_v10 = vld [vmem:[%s705_s4 + $0x8] sm:$0xff]  ;;  %v279_v11 = vadd.f32 1.0, %v271_v9  ;;  %v273_v13 = vld [vmem:[%s705_s4 + $0x10] sm:$0xff]  ;;  %v275_v14 = vld [vmem:[%s705_s4 + $0x20] sm:$0xff] }
   0x5   :  { %v280_v12 = vadd.f32 1.0, %v272_v10  ;;  %v281_v15 = vadd.f32 1.0, %v273_v13  ;;  %v283_v16 = vadd.f32 1.0, %v275_v14  ;;  %v274_v17 = vld [vmem:[%s705_s4 + $0x18] sm:$0xff]  ;;  %v277_v18 = vld [vmem:[%s705_s4 + $0x30] sm:$0xff]  ;;  %v276_v21 = vld [vmem:[%s705_s4 + $0x28] sm:$0xff] }
   0x6   :  { %69 = vperm.xlu1 %408, %v39_v3   ;;  %59 = vperm.xlu0 %407, %v37_v4   ;;  %v282_v19 = vadd.f32 1.0, %v274_v17  ;;  %v285_v20 = vadd.f32 1.0, %v277_v18  ;;  %v284_v22 = vadd.f32 1.0, %v276_v21  ;;  %v335_v23 = vld [vmem:[%s706_s5] sm:$0xff]  ;;  %v278_v24 = vld [vmem:[%s705_s4 + $0x38] sm:$0xff]  ;;  %v337_v26 = vld [vmem:[%s706_s5 + $0x10] sm:$0xff] }
   0x7   :  { %v286_v25 = vadd.f32 1.0, %v278_v24  ;;  %v336_v27 = vld [vmem:[%s706_s5 + $0x8] sm:$0xff]  ;;  %v338_v28 = vld [vmem:[%s706_s5 + $0x18] sm:$0xff]  ;;  %v403_v30 = vld [vmem:[%s707_s1] ss:$0 sm:$0xff] }
   0x8   :  { %v404_v31 = vld [vmem:[%s707_s1 + $0x1] ss:$0 sm:$0xff]  ;;  %v27_v37 = vld [vmem:[%s708_s0 + $0x8] sm:$0xff]  ;;  %v28_v47 = vld [vmem:[%s708_s0 + $0x10] sm:$0xff] }
   0x9   :  { %v26_v38 = vld [vmem:[%s708_s0] sm:$0xff]  ;;  %v29_v51 = vld [vmem:[%s708_s0 + $0x18] sm:$0xff]  ;;  %v32_v52 = vld [vmem:[%s708_s0 + $0x30] sm:$0xff] }
   0xa   :  { %99 = vperm.xlu1 %408, %v89_v5   ;;  %94 = vperm.xlu0 %407, %v88_v6   ;;  %v30_v39 = vld [vmem:[%s708_s0 + $0x20] sm:$0xff]  ;;  %v31_v53 = vld [vmem:[%s708_s0 + $0x28] sm:$0xff] }
   0xb   :  { %v405_v2 = vld [vmem:[%s709_s6] ss:$0 sm:$0xff] }
   0xe   :  { %109 = vperm.xlu1 %408, %v91_v7   ;;  %104 = vperm.xlu0 %407, %v90_v8  }
  0x12   :  { %289 = vperm.xlu1 %408, %v279_v11   ;;  %294 = vperm.xlu0 %407, %v280_v12   ;;  %v33_v11 = vld [vmem:[%s708_s0 + $0x38] sm:$0xff] }
  0x16   :  { %299 = vperm.xlu1 %408, %v281_v15   ;;  %309 = vperm.xlu0 %407, %v283_v16  }
  0x1a   :  { %304 = vperm.xlu1 %408, %v282_v19   ;;  %319 = vperm.xlu0 %407, %v285_v20  }
  0x1e   :  { %314 = vperm.xlu1 %408, %v284_v22   ;;  %345 = vperm.xlu0 %407, %v335_v23  }
  0x22   :  { %324 = vperm.xlu1 %408, %v286_v25   ;;  %355 = vperm.xlu0 %407, %v337_v26  }
  0x26   :  { %350 = vperm.xlu1 %408, %v336_v27  }
  0x2a   :  { %360 = vperm.xlu1 %408, %v338_v28  }
  0x7d   :  { %v65_v29 = vpop.permute.xlu1 %64  ;;  %v55_v32 = vpop.permute.xlu0 %54 }
  0x7e   :  { %v72_v33 = vmul.f32 %v403_v30, %v55_v32  ;;  %v76_v34 = vmul.f32 %v404_v31, %v55_v32  ;;  %v74_v41 = vmul.f32 %v403_v30, %v65_v29  ;;  %v78_v42 = vmul.f32 %v404_v31, %v65_v29 }
  0x80   :  { %v80_v45 = vadd.f32 %v72_v33, %v26_v38  ;;  %v84_v46 = vadd.f32 %v76_v34, %v30_v39  ;;  %v82_v57 = vadd.f32 %v74_v41, %v28_v47  ;;  %v86_v61 = vadd.f32 %v78_v42, %v32_v52  ;;  %v342_v41 = vld [vmem:[%s706_s5 + $0x38] sm:$0xff]  ;;  %v339_v42 = vld [vmem:[%s706_s5 + $0x20] sm:$0xff] }
  0x81   :  { %v70_v35 = vpop.permute.xlu1 %69  ;;  %v60_v36 = vpop.permute.xlu0 %59 }
  0x82   :  { %v73_v40 = vmul.f32 %v403_v30, %v60_v36  ;;  %v75_v43 = vmul.f32 %v403_v30, %v70_v35  ;;  %v77_v48 = vmul.f32 %v404_v31, %v60_v36  ;;  %v79_v8 = vmul.f32 %v404_v31, %v70_v35 }
  0x84   :  { %v81_v44 = vadd.f32 %v73_v40, %v27_v37  ;;  %v83_v60 = vadd.f32 %v75_v43, %v29_v51  ;;  %v85_v62 = vadd.f32 %v77_v48, %v31_v53  ;;  %v87_v19 = vadd.f32 %v79_v8, %v33_v11  ;;  %v340_v40 = vld [vmem:[%s706_s5 + $0x28] sm:$0xff]  ;;  %v341_v43 = vld [vmem:[%s706_s5 + $0x30] sm:$0xff] }
  0x85   :  { %v100_v49 = vpop.permute.xlu1 %99  ;;  %v95_v50 = vpop.permute.xlu0 %94 }
  0x86   :  { %v113_v54 = vadd.f32 %v100_v49, %v81_v44  ;;  %v112_v55 = vadd.f32 %v95_v50, %v80_v45  ;;  %v116_v56 = vadd.f32 %v95_v50, %v84_v46  ;;  %v117_v15 = vadd.f32 %v100_v49, %v85_v62 }
  0x88   :  { %v129_v58 = vmul.f32 0.2, %v113_v54  ;;  %v128_v59 = vmul.f32 0.2, %v112_v55  ;;  %v132_v63 = vmul.f32 0.2, %v116_v56 }
  0x89   :  { %v110_v0 = vpop.permute.xlu1 %109  ;;  %v105_v1 = vpop.permute.xlu0 %104  ;;  %vm121_vm0 = vcmp.ge.f32.partialorder %v113_v54, 0.0  ;;  %vm120_vm1 = vcmp.ge.f32.partialorder %v112_v55, 0.0  ;;  %vm124_vm2 = vcmp.ge.f32.partialorder %v116_v56, 0.0  ;;  %v133_v22 = vmul.f32 0.2, %v117_v15 }
  0x8a   :  { %v115_v3 = vadd.f32 %v110_v0, %v83_v60  ;;  %v114_v4 = vadd.f32 %v105_v1, %v82_v57  ;;  %v118_v5 = vadd.f32 %v105_v1, %v86_v61  ;;  %v556_v6 = vsel %vm121_vm0, %v113_v54, %v129_v58 }
  0x8b   :  { %v558_v7 = vsel %vm120_vm1, %v112_v55, %v128_v59  ;;  %v152_v10 = vmul.f32 %v405_v2, %v556_v6  ;;  %v565_v14 = vsel %vm124_vm2, %v116_v56, %v132_v63  ;;  %v119_v23 = vadd.f32 %v110_v0, %v87_v19 }
  0x8c   :  { %v130_v9 = vmul.f32 0.2, %v114_v4  ;;  %v134_v12 = vmul.f32 0.2, %v118_v5  ;;  %v151_v13 = vmul.f32 %v405_v2, %v558_v7  ;;  %vm122_vm3 = vcmp.ge.f32.partialorder %v114_v4, 0.0 }
  0x8d   :  { %v131_v16 = vmul.f32 0.2, %v115_v3  ;;  %161 = vadd.xlane.f32.xlu1 %v152_v10  ;;  %vm126_vm4 = vcmp.ge.f32.partialorder %v118_v5, 0.0  ;;  %vm123_vm5 = vcmp.ge.f32.partialorder %v115_v3, 0.0  ;;  %v155_v20 = vmul.f32 %v405_v2, %v565_v14  ;;  %v595_v44 = vpop.permute.xlu1 %289  ;;  %v601_v47 = vpop.permute.xlu0 %294 }
  0x8e   :  { %v567_v17 = vsel %vm122_vm3, %v114_v4, %v130_v9  ;;  %159 = vadd.xlane.f32.xlu0 %v151_v13  ;;  %v571_v21 = vsel %vm126_vm4, %v118_v5, %v134_v12  ;;  %vm125_vm6 = vcmp.ge.f32.partialorder %v117_v15, 0.0  ;;  %v135_v27 = vmul.f32 0.2, %v119_v23 }
  0x8f   :  { %v153_v18 = vmul.f32 %v405_v2, %v567_v17  ;;  %v573_v24 = vsel %vm123_vm5, %v115_v3, %v131_v16  ;;  %v157_v25 = vmul.f32 %v405_v2, %v571_v21  ;;  %v577_v28 = vsel %vm125_vm6, %v117_v15, %v133_v22 }
  0x90   :  { %v154_v26 = vmul.f32 %v405_v2, %v573_v24  ;;  %vm127_vm7 = vcmp.ge.f32.partialorder %v119_v23, 0.0  ;;  %v183_v29 = vmul.f32 %v151_v13, %v151_v13  ;;  %v156_v30 = vmul.f32 %v405_v2, %v577_v28 }
  0x91   :  { %167 = vadd.xlane.f32.xlu1 %v155_v20  ;;  %v580_v31 = vsel %vm127_vm7, %v119_v23, %v135_v27  ;;  %v185_v32 = vmul.f32 %v153_v18, %v153_v18  ;;  %v187_v34 = vmul.f32 %v155_v20, %v155_v20  ;;  %v184_v35 = vmul.f32 %v152_v10, %v152_v10  ;;  %v597_v45 = vpop.permute.xlu1 %299  ;;  %v605_v49 = vpop.permute.xlu0 %309 }
  0x92   :  { %163 = vadd.xlane.f32.xlu0 %v153_v18  ;;  %v158_v33 = vmul.f32 %v405_v2, %v580_v31  ;;  %v189_v36 = vmul.f32 %v157_v25, %v157_v25  ;;  %v186_v37 = vmul.f32 %v154_v26, %v154_v26  ;;  %v188_v38 = vmul.f32 %v156_v30, %v156_v30 }
  0x94   :  { %v190_v39 = vmul.f32 %v158_v33, %v158_v33 }
  0x95   :  { %171 = vadd.xlane.f32.xlu1 %v157_v25  ;;  %v599_v46 = vpop.permute.xlu1 %304  ;;  %v609_v51 = vpop.permute.xlu0 %319 }
  0x96   :  { %165 = vadd.xlane.f32.xlu0 %v154_v26 }
  0x99   :  { %191 = vadd.xlane.f32.xlu1 %v183_v29  ;;  %v603_v48 = vpop.permute.xlu1 %314  ;;  %v613_v53 = vpop.permute.xlu0 %345 }
  0x9a   :  { %169 = vadd.xlane.f32.xlu0 %v156_v30 }
  0x9d   :  { %195 = vadd.xlane.f32.xlu1 %v185_v32  ;;  %v607_v50 = vpop.permute.xlu1 %324  ;;  %v617_v55 = vpop.permute.xlu0 %355 }
  0x9e   :  { %173 = vadd.xlane.f32.xlu0 %v158_v33 }
  0xa1   :  { %199 = vadd.xlane.f32.xlu1 %v187_v34  ;;  %v611_v52 = vpop.permute.xlu1 %350 }
  0xa2   :  { %193 = vadd.xlane.f32.xlu0 %v184_v35 }
  0xa5   :  { %203 = vadd.xlane.f32.xlu1 %v189_v36  ;;  %v615_v54 = vpop.permute.xlu1 %360 }
  0xa6   :  { %197 = vadd.xlane.f32.xlu0 %v186_v37 }
  0xaa   :  { %201 = vadd.xlane.f32.xlu0 %v188_v38 }
  0xae   :  { %205 = vadd.xlane.f32.xlu0 %v190_v39 }
  0xb6   :  { %370 = vperm.xlu1 %408, %v340_v40  }
  0xba   :  { %380 = vperm.xlu1 %408, %v342_v41  }
  0xc4   :  { %365 = vperm.xlu0 %407, %v339_v42  }
  0xc8   :  { %375 = vperm.xlu0 %407, %v341_v43  }
 0x116   :  { %v162_v56 = vpop.xlane.xlu1 %161 }
 0x117   :  { %v160_v57 = vpop.xlane.xlu0 %159  ;;  %v629_v13 = vmul.f32 0.0625, %v162_v56 }
 0x118   :  { %v619_v61 = vmul.f32 0.0625, %v160_v57 }
 0x119   :  { %v216_v26 = vmul.f32 %v629_v13, %v629_v13 }
 0x11a   :  { %v168_v58 = vpop.xlane.xlu1 %167  ;;  %v215_v0 = vmul.f32 %v619_v61, %v619_v61 }
 0x11b   :  { %v164_v59 = vpop.xlane.xlu0 %163  ;;  %v625_v8 = vmul.f32 0.0625, %v168_v58 }
 0x11c   :  { %v623_v1 = vmul.f32 0.0625, %v164_v59 }
 0x11d   :  { %v219_v20 = vmul.f32 %v625_v8, %v625_v8 }
 0x11e   :  { %v172_v60 = vpop.xlane.xlu1 %171  ;;  %v217_v9 = vmul.f32 %v623_v1, %v623_v1 }
 0x11f   :  { %v166_v62 = vpop.xlane.xlu0 %165  ;;  %v631_v18 = vmul.f32 0.0625, %v172_v60 }
 0x120   :  { %v637_v27 = vmul.f32 0.0625, %v166_v62 }
 0x121   :  { %v221_v33 = vmul.f32 %v631_v18, %v631_v18 }
 0x122   :  { %v192_v63 = vpop.xlane.xlu1 %191  ;;  %v218_v40 = vmul.f32 %v637_v27, %v637_v27 }
 0x123   :  { %v170_v2 = vpop.xlane.xlu0 %169  ;;  %v207_v3 = vmul.f32 0.0625, %v192_v63 }
 0x124   :  { %v641_v36 = vmul.f32 0.0625, %v170_v2 }
 0x125   :  { %v223_v4 = vsub.f32 %v207_v3, %v215_v0 }
 0x126   :  { %v196_v5 = vpop.xlane.xlu1 %195  ;;  %v220_v59 = vmul.f32 %v641_v36, %v641_v36 }
 0x127   :  { %v231_v10 = vmax.f32 %v223_v4, 0.0  ;;  %v174_v11 = vpop.xlane.xlu0 %173  ;;  %v209_v12 = vmul.f32 0.0625, %v196_v5 }
 0x128   :  { %v647_v63 = vmul.f32 0.0625, %v174_v11 }
 0x129   :  { %v247_v15 = vadd.f32 1e-08, %v231_v10  ;;  %v225_v16 = vsub.f32 %v209_v12, %v217_v9  ;;  %v239_v9 = vsub.f32 %v558_v7, %v619_v61 }
 0x12a   :  { %v200_v19 = vpop.xlane.xlu1 %199 }
 0x12b   :  { %409 = vrsqrt.f32 %v247_v15  ;;  %v233_v22 = vmax.f32 %v225_v16, 0.0  ;;  %v194_v23 = vpop.xlane.xlu0 %193  ;;  %v211_v25 = vmul.f32 0.0625, %v200_v19  ;;  %v222_v15 = vmul.f32 %v647_v63, %v647_v63 }
 0x12c   :  { %v208_v29 = vmul.f32 0.0625, %v194_v23  ;;  %v241_v23 = vsub.f32 %v567_v17, %v623_v1  ;;  %v240_v17 = vsub.f32 %v556_v6, %v629_v13  ;;  %v242_v6 = vsub.f32 %v573_v24, %v637_v27 }
 0x12d   :  { %v249_v30 = vadd.f32 1e-08, %v233_v22  ;;  %v227_v32 = vsub.f32 %v211_v25, %v219_v20 }
 0x12e   :  { %v224_v34 = vsub.f32 %v208_v29, %v216_v26  ;;  %v204_v35 = vpop.xlane.xlu1 %203 }
 0x12f   :  { %411 = vrsqrt.f32 %v249_v30  ;;  %v235_v37 = vmax.f32 %v227_v32, 0.0  ;;  %v198_v38 = vpop.xlane.xlu0 %197  ;;  %v213_v39 = vmul.f32 0.0625, %v204_v35  ;;  %v243_v32 = vsub.f32 %v565_v14, %v625_v8 }
 0x130   :  { %v232_v41 = vmax.f32 %v224_v34, 0.0  ;;  %v210_v42 = vmul.f32 0.0625, %v198_v38  ;;  %v245_v14 = vsub.f32 %v571_v21, %v631_v18 }
 0x131   :  { %v251_v43 = vadd.f32 1e-08, %v235_v37  ;;  %v229_v56 = vsub.f32 %v213_v39, %v221_v33 }
 0x132   :  { %v248_v57 = vadd.f32 1e-08, %v232_v41  ;;  %v226_v58 = vsub.f32 %v210_v42, %v218_v40 }
 0x133   :  { %413 = vrsqrt.f32 %v251_v43  ;;  %v237_v60 = vmax.f32 %v229_v56, 0.0  ;;  %v202_v62 = vpop.xlane.xlu0 %201  ;;  %v371_v43 = vpop.permute.xlu1 %370 }
 0x134   :  { %415 = vrsqrt.f32 %v248_v57  ;;  %v234_v0 = vmax.f32 %v226_v58, 0.0  ;;  %v212_v2 = vmul.f32 0.0625, %v202_v62 }
 0x135   :  { %v253_v3 = vadd.f32 1e-08, %v237_v60 }
 0x136   :  { %v250_v4 = vadd.f32 1e-08, %v234_v0  ;;  %v228_v5 = vsub.f32 %v212_v2, %v220_v59 }
 0x137   :  { %417 = vrsqrt.f32 %v253_v3  ;;  %v206_v10 = vpop.xlane.xlu0 %205  ;;  %v381_v57 = vpop.permute.xlu1 %380 }
 0x138   :  { %v410_v12 = vpop.eup %409  ;;  %419 = vrsqrt.f32 %v250_v4  ;;  %v236_v16 = vmax.f32 %v228_v5, 0.0  ;;  %v214_v19 = vmul.f32 0.0625, %v206_v10 }
 0x139   :  { %v263_v11 = vmul.f32 %v410_v12, %v239_v9 }
 0x13a   :  { %v252_v20 = vadd.f32 1e-08, %v236_v16  ;;  %v230_v22 = vsub.f32 %v214_v19, %v222_v15 }
 0x13b   :  { %v327_v25 = vmul.f32 %v595_v44, %v263_v11 }
 0x13c   :  { %v412_v26 = vpop.eup %411  ;;  %421 = vrsqrt.f32 %v252_v20  ;;  %v238_v7 = vmax.f32 %v230_v22, 0.0 }
 0x13d   :  { %v383_v61 = vadd.f32 %v613_v53, %v327_v25  ;;  %v265_v29 = vmul.f32 %v412_v26, %v241_v23 }
 0x13e   :  { %v254_v30 = vadd.f32 1e-08, %v238_v7 }
 0x13f   :  { %v329_v33 = vmul.f32 %v597_v45, %v265_v29  ;;  %391 = vst [vmem:[%s710_s7] sm:$0xff] %v383_v61  ;;  %v366_v37 = vpop.permute.xlu0 %365 }
 0x140   :  { %v414_v34 = vpop.eup %413  ;;  %423 = vrsqrt.f32 %v254_v30 }
 0x141   :  { %v416_v44 = vpop.eup %415  ;;  %v385_v1 = vadd.f32 %v617_v55, %v329_v33  ;;  %v267_v53 = vmul.f32 %v414_v34, %v243_v32 }
 0x142   :  { %v264_v35 = vmul.f32 %v416_v44, %v240_v17 }
 0x143   :  { %393 = vst [vmem:[%s710_s7 + $0x10] sm:$0xff] %v385_v1  ;;  %v331_v45 = vmul.f32 %v605_v49, %v267_v53  ;;  %v244_v49 = vsub.f32 %v577_v28, %v641_v36  ;;  %v376_v24 = vpop.permute.xlu0 %375  ;;  %v246_v28 = vsub.f32 %v580_v31, %v647_v63 }
 0x144   :  { %v418_v8 = vpop.eup %417  ;;  %v328_v13 = vmul.f32 %v601_v47, %v264_v35 }
 0x145   :  { %v420_v38 = vpop.eup %419  ;;  %v387_v55 = vadd.f32 %v366_v37, %v331_v45  ;;  %v269_v39 = vmul.f32 %v418_v8, %v245_v14 }
 0x146   :  { %v384_v40 = vadd.f32 %v611_v52, %v328_v13  ;;  %v266_v41 = vmul.f32 %v420_v38, %v242_v6 }
 0x147   :  { %395 = vst [vmem:[%s710_s7 + $0x20] sm:$0xff] %v387_v55  ;;  %v333_v21 = vmul.f32 %v609_v51, %v269_v39 }
 0x148   :  { %v330_v18 = vmul.f32 %v599_v46, %v266_v41  ;;  %392 = vst [vmem:[%s710_s7 + $0x8] sm:$0xff] %v384_v40 }
 0x149   :  { %v422_v47 = vpop.eup %421  ;;  %v389_v27 = vadd.f32 %v376_v24, %v333_v21 }
 0x14a   :  { %v386_v52 = vadd.f32 %v615_v54, %v330_v18  ;;  %v268_v42 = vmul.f32 %v422_v47, %v244_v49 }
 0x14b   :  { %397 = vst [vmem:[%s710_s7 + $0x30] sm:$0xff] %v389_v27 }
 0x14c   :  { %v332_v46 = vmul.f32 %v603_v48, %v268_v42  ;;  %394 = vst [vmem:[%s710_s7 + $0x18] sm:$0xff] %v386_v52 }
 0x14d   :  { %v424_v51 = vpop.eup %423 }
 0x14e   :  { %v388_v36 = vadd.f32 %v371_v43, %v332_v46  ;;  %v270_v56 = vmul.f32 %v424_v51, %v246_v28 }
 0x150   :  { %396 = vst [vmem:[%s710_s7 + $0x28] sm:$0xff] %v388_v36  ;;  %v334_v54 = vmul.f32 %v607_v50, %v270_v56 }
 0x152   :  { %v390_v58 = vadd.f32 %v381_v57, %v334_v54 }
 0x154   :  { %398 = vst [vmem:[%s710_s7 + $0x38] sm:$0xff] %v390_v58 }

// kernel: synthesis_forward.18
= control target key start
LH: loop header
LB: loop body
LE: loop exit
PB: predicated region body
PF: predicated region fallthrough
CT: control target
= control target key end

     0   :  { %v346_v1 = vmov 0.0   ;;  %vm347_vm0 = vmmov 0   ;;  %vm175_vm1 = vcmask 261120   ;;  %s432_s1 = inlined_call_operand.vmem [shape: bf16[288,128], index: 1, kind: input, shape index: {}]   ;;  %s433_s0 = inlined_call_operand.vmem [shape: bf16[16,288], index: 0, kind: input, shape index: {}]   ;;  %s434_s2 = inlined_call_operand.vmem [shape: f32[16,128], index: 2, kind: output, shape index: {}]  }
   0x1   :  { %v324_v0 = vld [vmem:[%s432_s1 + $0x78] sm:$0xff]   ;;  %314 = vmatprep.subr.bf16.mxu1 %v346_v1  ;;  %318 = vmatprep.mubr.msk.bf16.mxu1 %vm347_vm0, %v346_v1  ;;  %v326_v3 = vld [vmem:[%s432_s1 + $0x70] sm:$0xff]   ;;  %v328_v5 = vld [vmem:[%s432_s1 + $0x68] sm:$0xff]  }
   0x2   :  { %v325_v2 = vld [vmem:[%s432_s1 + $0x38] sm:$0xff]   ;;  %289 = vmatprep.subr.bf16.mxu0 %v324_v0  ;;  %v327_v4 = vld [vmem:[%s432_s1 + $0x30] sm:$0xff]   ;;  %v329_v6 = vld [vmem:[%s432_s1 + $0x28] sm:$0xff]  }
   0x3   :  { %290 = vmatpush3.bf16.msra.mxu0 %v325_v2  ;;  %v330_v7 = vld [vmem:[%s432_s1 + $0x60] sm:$0xff]   ;;  %v332_v9 = vld [vmem:[%s432_s1 + $0x58] sm:$0xff]   ;;  %v336_v10 = vld [vmem:[%s432_s1 + $0x88] sm:$0xff]  }
   0x4   :  { %291 = vmatprep.subr.bf16.mxu0 %v326_v3  ;;  %v331_v8 = vld [vmem:[%s432_s1 + $0x20] sm:$0xff]   ;;  %v333_v11 = vld [vmem:[%s432_s1 + $0x18] sm:$0xff]   ;;  %315 = vmatpush3.bf16.msra.mxu1 %v336_v10  ;;  %v334_v13 = vld [vmem:[%s432_s1 + $0x50] sm:$0xff]  }
   0x5   :  { %316 = vmatprep.subr.bf16.mxu1 %v346_v1  ;;  %v339_v12 = vld [vmem:[%s432_s1 + $0x80] sm:$0xff]   ;;  %v342_v14 = vld [vmem:[%s433_s0 + $0x8] ss:$12 sps:$4 sm:$0xff]  }
   0x6   :  { %v335_v15 = vld [vmem:[%s432_s1 + $0x10] sm:$0xff]   ;;  %v337_v16 = vld [vmem:[%s432_s1 + $0x48] sm:$0xff]   ;;  %v340_v19 = vld [vmem:[%s432_s1 + $0x40] sm:$0xff]  }
   0x7   :  { %292 = vmatpush3.bf16.msra.mxu0 %v327_v4  ;;  %v345_v17 = vld [vmem:[%s433_s0 + $0x4] ss:$12 sps:$4 sm:$0xff]   ;;  %v338_v18 = vld [vmem:[%s432_s1 + $0x8] sm:$0xff]  }
   0x8   :  { %293 = vmatprep.subr.bf16.mxu0 %v328_v5  ;;  %317 = vmatpush3.bf16.msra.mxu1 %v339_v12  ;;  %v341_v20 = vld [vmem:[%s432_s1] sm:$0xff]  }
   0x9   :  { %211 = vmatprep.mubr.bf16.mxu0 %v345_v17  ;;  %v343_v21 = vld [vmem:[%s433_s0] ss:$12 sps:$4 sm:$0xff]  }
   0xb   :  { %294 = vmatpush3.bf16.msra.mxu0 %v329_v6  ;;  %319 = vmatmul.mubr.msk.bf16.vlgmr.msra.gmra.mxu1 %vm175_vm1, %v342_v14 }
   0xc   :  { %295 = vmatprep.subr.bf16.mxu0 %v330_v7 }
   0xf   :  { %296 = vmatpush3.bf16.msra.mxu0 %v331_v8 }
  0x10   :  { %297 = vmatprep.subr.bf16.mxu0 %v332_v9 }
  0x13   :  { %298 = vmatpush3.bf16.msra.mxu0 %v333_v11 }
  0x14   :  { %299 = vmatprep.subr.bf16.mxu0 %v334_v13 }
  0x17   :  { %300 = vmatpush3.bf16.msra.mxu0 %v335_v15 }
  0x18   :  { %301 = vmatprep.subr.bf16.mxu0 %v337_v16 }
  0x1b   :  { %302 = vmatpush3.bf16.msra.mxu0 %v338_v18 }
  0x1c   :  { %303 = vmatprep.subr.bf16.mxu0 %v340_v19 }
  0x1f   :  { %304 = vmatpush3.bf16.msra.mxu0 %v341_v20 }
  0x22   :  { %212 = vmatmul.mubr.bf16.vlgmr.msra.gmra.mxu0 %v343_v21 }
  0xcb   :  { %v254_v22 = vpop.f32.mrf.mxu1 }
  0xcd   :  { %v320_v23 = vpop.f32.mrf.mxu1 }
  0xcf   :  { %v257_v24 = vpop.f32.mrf.mxu1 }
  0xd1   :  { %v321_v25 = vpop.f32.mrf.mxu1 }
  0xe2   :  { %v305_v26 = vpop.f32.mrf.mxu0 }
  0xe4   :  { %v306_v27 = vpop.f32.mrf.mxu0 }
  0xe5   :  { %v307_v28 = vadd.f32 %v306_v27, %v305_v26 }
  0xe6   :  { %v308_v29 = vpop.f32.mrf.mxu0 }
  0xe7   :  { %v255_v30 = vadd.f32 %v307_v28, %v254_v22 }
  0xe8   :  { %v309_v31 = vpop.f32.mrf.mxu0 }
  0xe9   :  { %261 = vst [vmem:[%s434_s2] sm:$0xff] %v255_v30  ;;  %v310_v32 = vadd.f32 %v309_v31, %v308_v29 }
  0xeb   :  { %v258_v33 = vadd.f32 %v310_v32, %v257_v24 }
  0xed   :  { %262 = vst [vmem:[%s434_s2 + $0x8] sm:$0xff] %v258_v33 }

// kernel: synthesis_forward.19
= control target key start
LH: loop header
LB: loop body
LE: loop exit
PB: predicated region body
PF: predicated region fallthrough
CT: control target
= control target key end

     0   :  { %vm120_vm0 = vcmask 523264   ;;  %s295_s0 = inlined_call_operand.vmem [shape: f32[9,32,64], index: 0, kind: input, shape index: {}]   ;;  %s296_s1 = inlined_call_operand.vmem [shape: f32[32,64], index: 1, kind: output, shape index: {}]  }
   0x1   :  { %v8_v0 = vld [vmem:[%s295_s0] sm:$0xff]  ;;  %v9_v11 = vld [vmem:[%s295_s0 + $0x8] sm:$0xff]  ;;  %v10_v26 = vld [vmem:[%s295_s0 + $0x10] sm:$0xff] }
   0x2   :  { %v129_v1 = vld [vmem:[%s295_s0 + $0x20] sm:$0xff]  ;;  %v12_v3 = vmul.f32 0.0625, %v8_v0  ;;  %v130_v12 = vld [vmem:[%s295_s0 + $0x28] sm:$0xff]  ;;  %v13_v14 = vmul.f32 0.0625, %v9_v11  ;;  %v131_v27 = vld [vmem:[%s295_s0 + $0x30] sm:$0xff]  ;;  %v14_v31 = vmul.f32 0.0625, %v10_v26 }
   0x3   :  { %v133_v2 = vld [vmem:[%s295_s0 + $0x40] sm:$0xff]  ;;  %v21_v4 = vmul.f32 0.125, %v129_v1  ;;  %v134_v13 = vld [vmem:[%s295_s0 + $0x48] sm:$0xff]  ;;  %v22_v15 = vmul.f32 0.125, %v130_v12  ;;  %v135_v28 = vld [vmem:[%s295_s0 + $0x50] sm:$0xff]  ;;  %v23_v32 = vmul.f32 0.125, %v131_v27 }
   0x4   :  { %v34_v5 = vmul.f32 0.0625, %v133_v2  ;;  %v137_v6 = vld [vmem:[%s295_s0 + $0x60] sm:$0xff]  ;;  %v35_v16 = vmul.f32 0.0625, %v134_v13  ;;  %v138_v17 = vld [vmem:[%s295_s0 + $0x68] sm:$0xff]  ;;  %v36_v33 = vmul.f32 0.0625, %v135_v28  ;;  %v139_v34 = vld [vmem:[%s295_s0 + $0x70] sm:$0xff] }
   0x5   :  { %v141_v7 = vld [vmem:[%s295_s0 + $0x80] sm:$0xff]  ;;  %v25_v9 = vadd.f32 %v21_v4, %v12_v3  ;;  %v47_v10 = vmul.f32 0.125, %v137_v6  ;;  %v142_v22 = vld [vmem:[%s295_s0 + $0x88] sm:$0xff]  ;;  %v26_v24 = vadd.f32 %v22_v15, %v13_v14  ;;  %v48_v25 = vmul.f32 0.125, %v138_v17  ;;  %v143_v39 = vld [vmem:[%s295_s0 + $0x90] sm:$0xff] }
   0x6   :  { %v145_v8 = vld [vmem:[%s295_s0 + $0xa0] sm:$0xff]  ;;  %v60_v19 = vmul.f32 0.25, %v141_v7  ;;  %v146_v30 = vld [vmem:[%s295_s0 + $0xa8] sm:$0xff]  ;;  %v61_v37 = vmul.f32 0.25, %v142_v22  ;;  %v27_v42 = vadd.f32 %v23_v32, %v14_v31  ;;  %v49_v43 = vmul.f32 0.125, %v139_v34  ;;  %v11_v44 = vld [vmem:[%s295_s0 + $0x18] sm:$0xff] }
   0x7   :  { %v38_v18 = vadd.f32 %v34_v5, %v25_v9  ;;  %v149_v20 = vld [vmem:[%s295_s0 + $0xc0] sm:$0xff]  ;;  %v73_v23 = vmul.f32 0.125, %v145_v8  ;;  %v39_v36 = vadd.f32 %v35_v16, %v26_v24  ;;  %v150_v38 = vld [vmem:[%s295_s0 + $0xc8] sm:$0xff]  ;;  %v132_v45 = vld [vmem:[%s295_s0 + $0x38] sm:$0xff]  ;;  %v74_v49 = vmul.f32 0.125, %v146_v30 }
   0x8   :  { %v153_v21 = vld [vmem:[%s295_s0 + $0xe0] sm:$0xff]  ;;  %v86_v35 = vmul.f32 0.0625, %v149_v20  ;;  %v136_v46 = vld [vmem:[%s295_s0 + $0x58] sm:$0xff]  ;;  %v147_v50 = vld [vmem:[%s295_s0 + $0xb0] sm:$0xff]  ;;  %v15_v51 = vmul.f32 0.0625, %v11_v44  ;;  %v24_v52 = vmul.f32 0.125, %v132_v45  ;;  %v40_v56 = vadd.f32 %v36_v33, %v27_v42 }
   0x9   :  { %v51_v29 = vadd.f32 %v47_v10, %v38_v18  ;;  %v99_v41 = vmul.f32 0.125, %v153_v21  ;;  %v157_v47 = vld [vmem:[%s295_s0 + $0x100] sm:$0xff]  ;;  %v52_v48 = vadd.f32 %v48_v25, %v39_v36  ;;  %v140_v53 = vld [vmem:[%s295_s0 + $0x78] sm:$0xff]  ;;  %v154_v55 = vld [vmem:[%s295_s0 + $0xe8] sm:$0xff]  ;;  %v62_v57 = vmul.f32 0.25, %v143_v39 }
   0xa   :  { %v37_v58 = vmul.f32 0.0625, %v136_v46  ;;  %v144_v59 = vld [vmem:[%s295_s0 + $0x98] sm:$0xff]  ;;  %v87_v61 = vmul.f32 0.0625, %v150_v38  ;;  %v151_v62 = vld [vmem:[%s295_s0 + $0xd0] sm:$0xff]  ;;  %v28_v63 = vadd.f32 %v24_v52, %v15_v51  ;;  %v50_v0 = vmul.f32 0.125, %v140_v53  ;;  %v158_v3 = vld [vmem:[%s295_s0 + $0x108] sm:$0xff] }
   0xb   :  { %v64_v40 = vadd.f32 %v60_v19, %v51_v29  ;;  %v65_v60 = vadd.f32 %v61_v37, %v52_v48  ;;  %v112_v2 = vmul.f32 0.0625, %v157_v47  ;;  %v53_v4 = vadd.f32 %v49_v43, %v40_v56  ;;  %v148_v6 = vld [vmem:[%s295_s0 + $0xb8] sm:$0xff]  ;;  %v155_v9 = vld [vmem:[%s295_s0 + $0xf0] sm:$0xff] }
   0xc   :  { %v75_v5 = vmul.f32 0.125, %v147_v50  ;;  %v100_v8 = vmul.f32 0.125, %v154_v55  ;;  %v41_v10 = vadd.f32 %v37_v58, %v28_v63  ;;  %v63_v11 = vmul.f32 0.25, %v144_v59  ;;  %v152_v15 = vld [vmem:[%s295_s0 + $0xd8] sm:$0xff]  ;;  %v159_v18 = vld [vmem:[%s295_s0 + $0x110] sm:$0xff] }
   0xd   :  { %v77_v54 = vadd.f32 %v73_v23, %v64_v40  ;;  %v78_v7 = vadd.f32 %v74_v49, %v65_v60  ;;  %v66_v13 = vadd.f32 %v62_v57, %v53_v4  ;;  %v88_v14 = vmul.f32 0.0625, %v151_v62  ;;  %v156_v24 = vld [vmem:[%s295_s0 + $0xf8] sm:$0xff] }
   0xe   :  { %v113_v17 = vmul.f32 0.0625, %v158_v3  ;;  %v54_v19 = vadd.f32 %v50_v0, %v41_v10  ;;  %v76_v20 = vmul.f32 0.125, %v148_v6  ;;  %v101_v23 = vmul.f32 0.125, %v155_v9  ;;  %v160_v30 = vld [vmem:[%s295_s0 + $0x118] sm:$0xff] }
   0xf   :  { %v90_v1 = vadd.f32 %v86_v35, %v77_v54  ;;  %v91_v16 = vadd.f32 %v87_v61, %v78_v7  ;;  %v79_v22 = vadd.f32 %v75_v5, %v66_v13  ;;  %v89_v27 = vmul.f32 0.0625, %v152_v15 }
  0x10   :  { %v67_v26 = vadd.f32 %v63_v11, %v54_v19  ;;  %v114_v29 = vmul.f32 0.0625, %v159_v18  ;;  %v102_v33 = vmul.f32 0.125, %v156_v24  ;;  %v115_v36 = vmul.f32 0.0625, %v160_v30 }
  0x11   :  { %v103_v12 = vadd.f32 %v99_v41, %v90_v1  ;;  %v104_v25 = vadd.f32 %v100_v8, %v91_v16  ;;  %v92_v28 = vadd.f32 %v88_v14, %v79_v22 }
  0x12   :  { %v80_v32 = vadd.f32 %v76_v20, %v67_v26 }
  0x13   :  { %v116_v21 = vadd.f32 %v112_v2, %v103_v12  ;;  %v117_v31 = vadd.f32 %v113_v17, %v104_v25  ;;  %v105_v34 = vadd.f32 %v101_v23, %v92_v28 }
  0x14   :  { %v93_v35 = vadd.f32 %v89_v27, %v80_v32 }
  0x15   :  { %121 = vst.msk [vmem:[%s296_s1] sm:$0xff] %vm120_vm0, %v116_v21  ;;  %122 = vst.msk [vmem:[%s296_s1 + $0x8] sm:$0xff] %vm120_vm0, %v117_v31  ;;  %v118_v37 = vadd.f32 %v114_v29, %v105_v34 }
  0x16   :  { %v106_v38 = vadd.f32 %v102_v33, %v93_v35 }
  0x17   :  { %123 = vst.msk [vmem:[%s296_s1 + $0x10] sm:$0xff] %vm120_vm0, %v118_v37 }
  0x18   :  { %v119_v39 = vadd.f32 %v115_v36, %v106_v38 }
  0x1a   :  { %124 = vst.msk [vmem:[%s296_s1 + $0x18] sm:$0xff] %vm120_vm0, %v119_v39 }

// kernel: synthesis_forward.20
= control target key start
LH: loop header
LB: loop body
LE: loop exit
PB: predicated region body
PF: predicated region fallthrough
CT: control target
= control target key end

     0   :  { %v241_v0 = vmov 0   ;;  %s367_s3 = inlined_call_operand.vmem [shape: f32[1,16,1], index: 3, kind: input, shape index: {}]   ;;  %s368_s2 = inlined_call_operand.vmem [shape: f32[1,16,1], index: 2, kind: input, shape index: {}]   ;;  %s369_s4 = inlined_call_operand.vmem [shape: f32[2,16,1], index: 4, kind: input, shape index: {}]   ;;  %s370_s1 = inlined_call_operand.vmem [shape: f32[2,1,128], index: 1, kind: input, shape index: {}]   ;;  %s371_s0 = inlined_call_operand.vmem [shape: f32[2,16,128], index: 0, kind: input, shape index: {}]   ;;  %s372_s6 = inlined_call_operand.vmem [shape: f32[1,1,128], index: 6, kind: input, shape index: {}]   ;;  %s373_s5 = inlined_call_operand.vmem [shape: f32[2,16,1], index: 5, kind: input, shape index: {}]   ;;  %s374_s7 = inlined_call_operand.vmem [shape: f32[2,16,128], index: 7, kind: output, shape index: {}]  }
   0x1   :  { %232 = vset.pattern.permute.xlu1 %v241_v0  ;;  %231 = vset.pattern.permute.xlu0 %v241_v0  ;;  %v64_v1 = vld [vmem:[%s367_s3] sm:$0xff]  ;;  %v65_v3 = vld [vmem:[%s367_s3 + $0x8] sm:$0xff]  ;;  %v161_v9 = vld [vmem:[%s369_s4 + $0x10] sm:$0xff] }
   0x2   :  { %v32_v2 = vld [vmem:[%s368_s2] sm:$0xff]  ;;  %68 = vperm.xlu1 %232, %v64_v1   ;;  %v33_v4 = vld [vmem:[%s368_s2 + $0x8] sm:$0xff]  ;;  %v165_v10 = vadd.f32 1.0, %v161_v9  ;;  %v162_v11 = vld [vmem:[%s369_s4 + $0x18] sm:$0xff] }
   0x3   :  { %48 = vperm.xlu0 %231, %v32_v2   ;;  %v159_v5 = vld [vmem:[%s369_s4] sm:$0xff]  ;;  %v160_v6 = vld [vmem:[%s369_s4 + $0x8] sm:$0xff]  ;;  %v166_v12 = vadd.f32 1.0, %v162_v11  ;;  %v28_v17 = vld [vmem:[%s371_s0 + $0x10] sm:$0xff] }
   0x4   :  { %v163_v7 = vadd.f32 1.0, %v159_v5  ;;  %v164_v8 = vadd.f32 1.0, %v160_v6  ;;  %v227_v13 = vld [vmem:[%s370_s1] ss:$0 sm:$0xff]  ;;  %v228_v14 = vld [vmem:[%s370_s1 + $0x1] ss:$0 sm:$0xff] }
   0x5   :  { %v26_v16 = vld [vmem:[%s371_s0] sm:$0xff]  ;;  %v27_v24 = vld [vmem:[%s371_s0 + $0x8] sm:$0xff]  ;;  %v29_v25 = vld [vmem:[%s371_s0 + $0x18] sm:$0xff] }
   0x6   :  { %73 = vperm.xlu1 %232, %v65_v3   ;;  %v229_v33 = vld [vmem:[%s372_s6] ss:$0 sm:$0xff]  ;;  %v192_v52 = vld [vmem:[%s373_s5 + $0x8] sm:$0xff]  ;;  %v194_v53 = vld [vmem:[%s373_s5 + $0x18] sm:$0xff] }
   0x7   :  { %53 = vperm.xlu0 %231, %v33_v4   ;;  %v191_v54 = vld [vmem:[%s373_s5] sm:$0xff]  ;;  %v193_v55 = vld [vmem:[%s373_s5 + $0x10] sm:$0xff] }
   0xa   :  { %169 = vperm.xlu1 %232, %v163_v7  }
   0xb   :  { %174 = vperm.xlu0 %231, %v164_v8  }
   0xe   :  { %179 = vperm.xlu1 %232, %v165_v10  }
  0x12   :  { %184 = vperm.xlu1 %232, %v166_v12  }
  0x7d   :  { %v69_v20 = vpop.permute.xlu1 %68 }
  0x7e   :  { %v49_v15 = vpop.permute.xlu0 %48 }
  0x7f   :  { %v56_v18 = vmul.f32 %v227_v13, %v49_v15  ;;  %v58_v19 = vmul.f32 %v228_v14, %v49_v15 }
  0x81   :  { %v60_v21 = vadd.f32 %v56_v18, %v26_v16  ;;  %v62_v22 = vadd.f32 %v58_v19, %v28_v17  ;;  %v74_v34 = vpop.permute.xlu1 %73 }
  0x82   :  { %v54_v23 = vpop.permute.xlu0 %53 }
  0x83   :  { %v76_v26 = vadd.f32 %v69_v20, %v60_v21  ;;  %v78_v27 = vadd.f32 %v69_v20, %v62_v22  ;;  %v57_v28 = vmul.f32 %v227_v13, %v54_v23  ;;  %v59_v29 = vmul.f32 %v228_v14, %v54_v23 }
  0x85   :  { %v61_v30 = vadd.f32 %v57_v28, %v27_v24  ;;  %v63_v31 = vadd.f32 %v59_v29, %v29_v25  ;;  %vm80_vm0 = vcmp.ge.f32.partialorder %v76_v26, 0.0  ;;  %v84_v32 = vmul.f32 0.2, %v76_v26  ;;  %v170_v56 = vpop.permute.xlu1 %169 }
  0x86   :  { %vm82_vm1 = vcmp.ge.f32.partialorder %v78_v27, 0.0  ;;  %v86_v35 = vmul.f32 0.2, %v78_v27  ;;  %v175_v58 = vpop.permute.xlu0 %174 }
  0x87   :  { %v77_v36 = vadd.f32 %v74_v34, %v61_v30  ;;  %v79_v37 = vadd.f32 %v74_v34, %v63_v31  ;;  %v327_v38 = vsel %vm80_vm0, %v76_v26, %v84_v32 }
  0x88   :  { %v99_v39 = vmul.f32 %v229_v33, %v327_v38  ;;  %v330_v41 = vsel %vm82_vm1, %v78_v27, %v86_v35 }
  0x89   :  { %vm81_vm2 = vcmp.ge.f32.partialorder %v77_v36, 0.0  ;;  %v85_v40 = vmul.f32 0.2, %v77_v36  ;;  %vm83_vm3 = vcmp.ge.f32.partialorder %v79_v37, 0.0  ;;  %v87_v42 = vmul.f32 0.2, %v79_v37  ;;  %v180_v57 = vpop.permute.xlu1 %179 }
  0x8a   :  { %103 = vadd.xlane.f32.xlu0 %v99_v39  ;;  %v101_v45 = vmul.f32 %v229_v33, %v330_v41  ;;  %v115_v48 = vmul.f32 %v99_v39, %v99_v39 }
  0x8b   :  { %v332_v43 = vsel %vm81_vm2, %v77_v36, %v85_v40  ;;  %v336_v46 = vsel %vm83_vm3, %v79_v37, %v87_v42 }
  0x8c   :  { %v100_v44 = vmul.f32 %v229_v33, %v332_v43  ;;  %v102_v47 = vmul.f32 %v229_v33, %v336_v46  ;;  %v117_v50 = vmul.f32 %v101_v45, %v101_v45 }
  0x8d   :  { %v185_v59 = vpop.permute.xlu1 %184 }
  0x8e   :  { %105 = vadd.xlane.f32.xlu1 %v100_v44  ;;  %107 = vadd.xlane.f32.xlu0 %v101_v45  ;;  %v116_v49 = vmul.f32 %v100_v44, %v100_v44  ;;  %v118_v51 = vmul.f32 %v102_v47, %v102_v47 }
  0x92   :  { %109 = vadd.xlane.f32.xlu0 %v102_v47  ;;  %119 = vadd.xlane.f32.xlu1 %v115_v48 }
  0x96   :  { %121 = vadd.xlane.f32.xlu0 %v116_v49  ;;  %123 = vadd.xlane.f32.xlu1 %v117_v50 }
  0x9a   :  { %125 = vadd.xlane.f32.xlu0 %v118_v51 }
  0xa7   :  { %202 = vperm.xlu1 %232, %v192_v52  }
  0xab   :  { %212 = vperm.xlu1 %232, %v194_v53  }
  0xb0   :  { %197 = vperm.xlu0 %231, %v191_v54  }
  0xb4   :  { %207 = vperm.xlu0 %231, %v193_v55  }
 0x113   :  { %v104_v60 = vpop.xlane.xlu0 %103 }
 0x114   :  { %v111_v63 = vmul.f32 0.015625, %v104_v60 }
 0x116   :  { %v131_v3 = vmul.f32 %v111_v63, %v111_v63  ;;  %v143_v28 = vsub.f32 %v327_v38, %v111_v63 }
 0x117   :  { %v106_v61 = vpop.xlane.xlu1 %105  ;;  %v108_v62 = vpop.xlane.xlu0 %107 }
 0x118   :  { %v112_v0 = vmul.f32 0.015625, %v106_v61  ;;  %v113_v4 = vmul.f32 0.015625, %v108_v62 }
 0x11a   :  { %v132_v7 = vmul.f32 %v112_v0, %v112_v0  ;;  %v133_v11 = vmul.f32 %v113_v4, %v113_v4  ;;  %v144_v31 = vsub.f32 %v332_v43, %v112_v0  ;;  %v145_v35 = vsub.f32 %v330_v41, %v113_v4 }
 0x11b   :  { %v110_v1 = vpop.xlane.xlu0 %109  ;;  %v120_v2 = vpop.xlane.xlu1 %119 }
 0x11c   :  { %v127_v5 = vmul.f32 0.015625, %v120_v2  ;;  %v114_v8 = vmul.f32 0.015625, %v110_v1 }
 0x11e   :  { %v135_v6 = vsub.f32 %v127_v5, %v131_v3  ;;  %v134_v18 = vmul.f32 %v114_v8, %v114_v8  ;;  %v146_v44 = vsub.f32 %v336_v46, %v114_v8 }
 0x11f   :  { %v122_v9 = vpop.xlane.xlu0 %121  ;;  %v124_v10 = vpop.xlane.xlu1 %123 }
 0x120   :  { %v139_v12 = vmax.f32 %v135_v6, 0.0  ;;  %v128_v13 = vmul.f32 0.015625, %v122_v9  ;;  %v129_v14 = vmul.f32 0.015625, %v124_v10 }
 0x122   :  { %v147_v15 = vadd.f32 1e-08, %v139_v12  ;;  %v136_v16 = vsub.f32 %v128_v13, %v132_v7  ;;  %v137_v17 = vsub.f32 %v129_v14, %v133_v11 }
 0x123   :  { %v126_v19 = vpop.xlane.xlu0 %125  ;;  %v203_v40 = vpop.permute.xlu1 %202 }
 0x124   :  { %233 = vrsqrt.f32 %v147_v15  ;;  %v140_v20 = vmax.f32 %v136_v16, 0.0  ;;  %v141_v21 = vmax.f32 %v137_v17, 0.0  ;;  %v130_v22 = vmul.f32 0.015625, %v126_v19 }
 0x126   :  { %v148_v23 = vadd.f32 1e-08, %v140_v20  ;;  %v149_v24 = vadd.f32 1e-08, %v141_v21  ;;  %v138_v25 = vsub.f32 %v130_v22, %v134_v18 }
 0x127   :  { %v213_v51 = vpop.permute.xlu1 %212 }
 0x128   :  { %235 = vrsqrt.f32 %v148_v23  ;;  %v142_v26 = vmax.f32 %v138_v25, 0.0 }
 0x129   :  { %237 = vrsqrt.f32 %v149_v24 }
 0x12a   :  { %v150_v27 = vadd.f32 1e-08, %v142_v26 }
 0x12b   :  { %v198_v32 = vpop.permute.xlu0 %197 }
 0x12c   :  { %239 = vrsqrt.f32 %v150_v27 }
 0x12f   :  { %v208_v49 = vpop.permute.xlu0 %207 }
 0x131   :  { %v234_v29 = vpop.eup %233 }
 0x132   :  { %v155_v30 = vmul.f32 %v234_v29, %v143_v28 }
 0x134   :  { %v187_v33 = vmul.f32 %v170_v56, %v155_v30 }
 0x135   :  { %v236_v34 = vpop.eup %235 }
 0x136   :  { %v238_v36 = vpop.eup %237  ;;  %v156_v37 = vmul.f32 %v236_v34, %v144_v31  ;;  %v215_v39 = vadd.f32 %v198_v32, %v187_v33 }
 0x137   :  { %v157_v42 = vmul.f32 %v238_v36, %v145_v35 }
 0x138   :  { %v188_v45 = vmul.f32 %v175_v58, %v156_v37  ;;  %219 = vst [vmem:[%s374_s7] sm:$0xff] %v215_v39 }
 0x139   :  { %v240_v38 = vpop.eup %239  ;;  %v189_v47 = vmul.f32 %v180_v57, %v157_v42 }
 0x13a   :  { %v216_v43 = vadd.f32 %v203_v40, %v188_v45  ;;  %v158_v48 = vmul.f32 %v240_v38, %v146_v44 }
 0x13b   :  { %v217_v50 = vadd.f32 %v208_v49, %v189_v47 }
 0x13c   :  { %220 = vst [vmem:[%s374_s7 + $0x8] sm:$0xff] %v216_v43  ;;  %v190_v41 = vmul.f32 %v185_v59, %v158_v48 }
 0x13d   :  { %221 = vst [vmem:[%s374_s7 + $0x10] sm:$0xff] %v217_v50 }
 0x13e   :  { %v218_v46 = vadd.f32 %v213_v51, %v190_v41 }
 0x140   :  { %222 = vst [vmem:[%s374_s7 + $0x18] sm:$0xff] %v218_v46 }

// kernel: synthesis_forward.21
= control target key start
LH: loop header
LB: loop body
LE: loop exit
PB: predicated region body
PF: predicated region fallthrough
CT: control target
= control target key end

     0   :  { %v171_v0 = vmov 0   ;;  %vm95_vm0 = vcmask 130048   ;;  %s226_s1 = inlined_call_operand.vmem [shape: bf16[144,128], index: 1, kind: input, shape index: {}]   ;;  %s227_s0 = inlined_call_operand.vmem [shape: bf16[16,144], index: 0, kind: input, shape index: {}]   ;;  %s228_s2 = inlined_call_operand.vmem [shape: f32[16,128], index: 2, kind: output, shape index: {}]  }
   0x1   :  { %99 = vmatprep.subr.bf16.mxu0 %v171_v0  ;;  %v159_v1 = vld [vmem:[%s226_s1 + $0x38] sm:$0xff]   ;;  %v160_v2 = vld [vmem:[%s226_s1 + $0x30] sm:$0xff]   ;;  %v161_v3 = vld [vmem:[%s226_s1 + $0x28] sm:$0xff]  }
   0x2   :  { %100 = vmatpush1.bf16.msra.mxu0 %v159_v1  ;;  %v162_v4 = vld [vmem:[%s226_s1 + $0x20] sm:$0xff]   ;;  %v163_v6 = vld [vmem:[%s226_s1 + $0x18] sm:$0xff]   ;;  %v164_v7 = vld [vmem:[%s226_s1 + $0x10] sm:$0xff]  }
   0x3   :  { %101 = vmatprep.subr.bf16.mxu0 %v171_v0  ;;  %v170_v5 = vld [vmem:[%s227_s0 + $0x4] ss:$8 sps:$4 sm:$0xff]   ;;  %v168_v11 = vld [vmem:[%s227_s0] ss:$8 sps:$4 sm:$0xff]  }
   0x4   :  { %157 = vmatprep.mubr.msk.bf16.mxu0 %vm95_vm0, %v170_v5  ;;  %v165_v8 = vld [vmem:[%s226_s1 + $0x8] sm:$0xff]   ;;  %v166_v9 = vld [vmem:[%s226_s1] sm:$0xff]  }
   0x5   :  { %v167_v10 = vld [vmem:[%s226_s1 + $0x40] sm:$0xff]  }
   0x6   :  { %102 = vmatpush1.bf16.msra.mxu0 %v160_v2 }
   0x7   :  { %103 = vmatprep.subr.bf16.mxu0 %v171_v0 }
   0xa   :  { %104 = vmatpush1.bf16.msra.mxu0 %v161_v3 }
   0xb   :  { %105 = vmatprep.subr.bf16.mxu0 %v171_v0 }
   0xe   :  { %106 = vmatpush1.bf16.msra.mxu0 %v162_v4 }
   0xf   :  { %107 = vmatprep.subr.bf16.mxu0 %v171_v0 }
  0x12   :  { %108 = vmatpush1.bf16.msra.mxu0 %v163_v6 }
  0x13   :  { %109 = vmatprep.subr.bf16.mxu0 %v171_v0 }
  0x16   :  { %110 = vmatpush1.bf16.msra.mxu0 %v164_v7 }
  0x17   :  { %111 = vmatprep.subr.bf16.mxu0 %v171_v0 }
  0x1a   :  { %112 = vmatpush1.bf16.msra.mxu0 %v165_v8 }
  0x1b   :  { %113 = vmatprep.subr.bf16.mxu0 %v171_v0 }
  0x1e   :  { %114 = vmatpush1.bf16.msra.mxu0 %v166_v9 }
  0x1f   :  { %129 = vmatprep.subr.bf16.mxu0 %v171_v0 }
  0x22   :  { %130 = vmatpush2.bf16.msra.mxu0 %v167_v10 }
  0x25   :  { %132 = vmatmul.mubr.bf16.vlgmr.msra.gmra.mxu0 %v168_v11 }
  0xe5   :  { %v133_v12 = vpop.f32.mrf.mxu0 }
  0xe6   :  { %140 = vst [vmem:[%s228_s2] sm:$0xff] %v133_v12 }
  0xe7   :  { %v135_v13 = vpop.f32.mrf.mxu0 }
  0xe9   :  { %v136_v14 = vpop.f32.mrf.mxu0 }
  0xea   :  { %141 = vst [vmem:[%s228_s2 + $0x8] sm:$0xff] %v136_v14 }
  0xeb   :  { %v138_v15 = vpop.f32.mrf.mxu0 }

// kernel: synthesis_forward.23
= control target key start
LH: loop header
LB: loop body
LE: loop exit
PB: predicated region body
PF: predicated region fallthrough
CT: control target
= control target key end

     0   :  { %v201_v3 = vmov 0.0   ;;  %vm25_vm0 = vcmask 130048   ;;  %v202_v11 = vmov 0   ;;  %s259_s0 = inlined_call_operand.vmem [shape: f32[2,16,256], index: 0, kind: input, shape index: {}]   ;;  %s260_s1 = inlined_call_operand.vmem [shape: f32[3,16], index: 1, kind: input, shape index: {}]   ;;  %s261_s2 = inlined_call_operand.vmem [shape: f32[3,1], index: 2, kind: input, shape index: {}]   ;;  %s262_s3 = inlined_call_operand.vmem [shape: f32[2,3,256], index: 3, kind: output, shape index: {}]  }
   0x1   :  { %v19_v0 = vld [vmem:[%s259_s0 + $0x18] sm:$0xff]  ;;  %v18_v2 = vld [vmem:[%s259_s0 + $0x10] sm:$0xff]  ;;  %93 = vmatprep.mubr.f32.mxu0 %v201_v3  ;;  %174 = vmatprep.mubr.f32.mxu1 %v201_v3  ;;  %v17_v5 = vld [vmem:[%s259_s0 + $0x8] sm:$0xff] }
   0x2   :  { %v195_v1 = vld [vmem:[%s259_s0 + $0x38] sm:$0xff]  ;;  %57 = vmatprep.subr.mxu0 %v19_v0  ;;  %v194_v4 = vld [vmem:[%s259_s0 + $0x30] sm:$0xff]  ;;  %v193_v6 = vld [vmem:[%s259_s0 + $0x28] sm:$0xff]  ;;  %200 = vset.pattern.permute.xlu0 %v202_v11 }
   0x3   :  { %138 = vmatprep.subr.mxu1 %v195_v1  ;;  %58 = vmatpush1.msra.mxu0 %v18_v2  ;;  %v16_v7 = vld [vmem:[%s259_s0] sm:$0xff] }
   0x4   :  { %139 = vmatpush1.msra.mxu1 %v194_v4  ;;  %v192_v8 = vld [vmem:[%s259_s0 + $0x20] sm:$0xff]  ;;  %59 = vmatprep.subr.mxu0 %v17_v5 }
   0x5   :  { %v14_v9 = vld [vmem:[%s260_s1] sm:$0x7]  ;;  %140 = vmatprep.subr.mxu1 %v193_v6  ;;  %60 = vmatpush1.msra.mxu0 %v16_v7 }
   0x6   :  { %141 = vmatpush1.msra.mxu1 %v192_v8  ;;  %v15_v10 = vld [vmem:[%s261_s2] sm:$0x7]  ;;  %191 = vmatmul.mubr.msk.f32.vlgmr.msra.gmra.mxu0 %vm25_vm0, %v14_v9 }
   0x7   :  { %196 = vmatmul.mubr.msk.f32.vlgmr.msra.gmra.mxu1 %vm25_vm0, %v14_v9  ;;  %22 = vperm.xlu0 %200, %v15_v10  }
  0x82   :  { %v23_v12 = vpop.permute.xlu0 %22 }
  0xc6   :  { %v95_v13 = vpop.f32.mrf.mxu0 }
  0xc7   :  { %v176_v14 = vpop.f32.mrf.mxu1  ;;  %v96_v17 = vadd.f32 %v95_v13, %v23_v12 }
  0xc8   :  { %v97_v15 = vpop.f32.mrf.mxu0  ;;  %v177_v18 = vadd.f32 %v176_v14, %v23_v12 }
  0xc9   :  { %v178_v16 = vpop.f32.mrf.mxu1  ;;  %v98_v19 = vadd.f32 %v97_v15, %v23_v12 }
  0xca   :  { %v179_v20 = vadd.f32 %v178_v16, %v23_v12 }
  0xcb   :  { %v102_v21 = vcombine.low %v96_v17, %v98_v19 }
  0xcc   :  { %v183_v22 = vcombine.low %v177_v18, %v179_v20 }
  0xcd   :  { %104 = vst [vmem:[%s262_s3] sm:$0x77] %v102_v21 }
  0xce   :  { %197 = vst [vmem:[%s262_s3 + $0x8] sm:$0x77] %v183_v22 }

// kernel: synthesis_forward.24
= control target key start
LH: loop header
LB: loop body
LE: loop exit
PB: predicated region body
PF: predicated region fallthrough
CT: control target
= control target key end

     0   :  { %vm235_vm0 = vcmask 130048   ;;  %s563_s1 = inlined_call_operand.vmem [shape: bf16[144,512], index: 1, kind: input, shape index: {}]   ;;  %s564_s0 = inlined_call_operand.vmem [shape: bf16[8,144], index: 0, kind: input, shape index: {}]   ;;  %s565_s2 = inlined_call_operand.vmem [shape: f32[8,512], index: 2, kind: output, shape index: {}]  }
   0x1   :  { %v369_v0 = vld [vmem:[%s563_s1 + $0xe4] ss:$16 sps:$4 sm:$0xff]   ;;  %v371_v1 = vld [vmem:[%s563_s1 + $0xec] ss:$16 sps:$4 sm:$0xff]   ;;  %v373_v2 = vld [vmem:[%s563_s1 + $0xe0] ss:$16 sps:$4 sm:$0xff]  }
   0x2   :  { %239 = vmatprep.subr.bf16.mxu0 %v369_v0  ;;  %v374_v3 = vld [vmem:[%s563_s1 + $0xe8] ss:$16 sps:$4 sm:$0xff]   ;;  %280 = vmatprep.subr.bf16.mxu1 %v371_v1  ;;  %v375_v4 = vld [vmem:[%s563_s1 + $0xc4] ss:$16 sps:$4 sm:$0xff]   ;;  %v377_v5 = vld [vmem:[%s563_s1 + $0xcc] ss:$16 sps:$4 sm:$0xff]  }
   0x3   :  { %240 = vmatpush1.bf16.msra.mxu0 %v373_v2  ;;  %281 = vmatpush1.bf16.msra.mxu1 %v374_v3  ;;  %v379_v6 = vld [vmem:[%s563_s1 + $0xc0] ss:$16 sps:$4 sm:$0xff]   ;;  %v380_v7 = vld [vmem:[%s563_s1 + $0xc8] ss:$16 sps:$4 sm:$0xff]   ;;  %v381_v8 = vld [vmem:[%s563_s1 + $0xa4] ss:$16 sps:$4 sm:$0xff]  }
   0x4   :  { %241 = vmatprep.subr.bf16.mxu0 %v375_v4  ;;  %282 = vmatprep.subr.bf16.mxu1 %v377_v5  ;;  %v383_v9 = vld [vmem:[%s563_s1 + $0xac] ss:$16 sps:$4 sm:$0xff]   ;;  %v385_v10 = vld [vmem:[%s563_s1 + $0xa0] ss:$16 sps:$4 sm:$0xff]   ;;  %v386_v11 = vld [vmem:[%s563_s1 + $0xa8] ss:$16 sps:$4 sm:$0xff]  }
   0x5   :  { %v387_v12 = vld [vmem:[%s563_s1 + $0x84] ss:$16 sps:$4 sm:$0xff]   ;;  %v389_v13 = vld [vmem:[%s563_s1 + $0x8c] ss:$16 sps:$4 sm:$0xff]   ;;  %v391_v14 = vld [vmem:[%s563_s1 + $0x80] ss:$16 sps:$4 sm:$0xff]  }
   0x6   :  { %v392_v15 = vld [vmem:[%s563_s1 + $0x88] ss:$16 sps:$4 sm:$0xff]   ;;  %v393_v16 = vld [vmem:[%s563_s1 + $0x64] ss:$16 sps:$4 sm:$0xff]   ;;  %v395_v17 = vld [vmem:[%s563_s1 + $0x6c] ss:$16 sps:$4 sm:$0xff]  }
   0x7   :  { %242 = vmatpush1.bf16.msra.mxu0 %v379_v6  ;;  %283 = vmatpush1.bf16.msra.mxu1 %v380_v7  ;;  %v397_v18 = vld [vmem:[%s563_s1 + $0x60] ss:$16 sps:$4 sm:$0xff]   ;;  %v398_v19 = vld [vmem:[%s563_s1 + $0x68] ss:$16 sps:$4 sm:$0xff]   ;;  %v399_v20 = vld [vmem:[%s563_s1 + $0x44] ss:$16 sps:$4 sm:$0xff]  }
   0x8   :  { %243 = vmatprep.subr.bf16.mxu0 %v381_v8  ;;  %284 = vmatprep.subr.bf16.mxu1 %v383_v9  ;;  %v401_v21 = vld [vmem:[%s563_s1 + $0x4c] ss:$16 sps:$4 sm:$0xff]   ;;  %v403_v22 = vld [vmem:[%s563_s1 + $0x40] ss:$16 sps:$4 sm:$0xff]   ;;  %v404_v23 = vld [vmem:[%s563_s1 + $0x48] ss:$16 sps:$4 sm:$0xff]  }
   0x9   :  { %v405_v24 = vld [vmem:[%s563_s1 + $0x24] ss:$16 sps:$4 sm:$0xff]   ;;  %v407_v25 = vld [vmem:[%s563_s1 + $0x2c] ss:$16 sps:$4 sm:$0xff]   ;;  %v409_v26 = vld [vmem:[%s563_s1 + $0x20] ss:$16 sps:$4 sm:$0xff]  }
   0xa   :  { %v410_v27 = vld [vmem:[%s563_s1 + $0x28] ss:$16 sps:$4 sm:$0xff]   ;;  %v12_v28 = vld [vmem:[%s564_s0] sm:$0xff]  ;;  %v413_v30 = vld [vmem:[%s563_s1 + $0xc] ss:$16 sps:$4 sm:$0xff]  }
   0xb   :  { %244 = vmatpush1.bf16.msra.mxu0 %v385_v10  ;;  %285 = vmatpush1.bf16.msra.mxu1 %v386_v11  ;;  %v411_v29 = vld [vmem:[%s563_s1 + $0x4] ss:$16 sps:$4 sm:$0xff]   ;;  %v330_v31 = vcombine.high %v12_v28, %v12_v28  ;;  %v415_v32 = vld [vmem:[%s563_s1] ss:$16 sps:$4 sm:$0xff]   ;;  %v416_v33 = vld [vmem:[%s563_s1 + $0x8] ss:$16 sps:$4 sm:$0xff]   ;;  %v329_v38 = vcombine.low %v12_v28, %v12_v28 }
   0xc   :  { %245 = vmatprep.subr.bf16.mxu0 %v387_v12  ;;  %286 = vmatprep.subr.bf16.mxu1 %v389_v13  ;;  %v417_v34 = vld [vmem:[%s563_s1 + $0x104] ss:$16 sps:$4 sm:$0xff]   ;;  %v419_v35 = vld [vmem:[%s563_s1 + $0x10c] ss:$16 sps:$4 sm:$0xff]   ;;  %v421_v36 = vld [vmem:[%s563_s1 + $0x100] ss:$16 sps:$4 sm:$0xff]  }
   0xd   :  { %367 = vmatprep.mubr.msk.bf16.mxu0 %vm235_vm0, %v330_v31  ;;  %368 = vmatprep.mubr.msk.bf16.mxu1 %vm235_vm0, %v330_v31  ;;  %v422_v37 = vld [vmem:[%s563_s1 + $0x108] ss:$16 sps:$4 sm:$0xff]  }
   0xf   :  { %246 = vmatpush1.bf16.msra.mxu0 %v391_v14  ;;  %287 = vmatpush1.bf16.msra.mxu1 %v392_v15 }
  0x10   :  { %247 = vmatprep.subr.bf16.mxu0 %v393_v16  ;;  %288 = vmatprep.subr.bf16.mxu1 %v395_v17 }
  0x13   :  { %248 = vmatpush1.bf16.msra.mxu0 %v397_v18  ;;  %289 = vmatpush1.bf16.msra.mxu1 %v398_v19 }
  0x14   :  { %249 = vmatprep.subr.bf16.mxu0 %v399_v20  ;;  %290 = vmatprep.subr.bf16.mxu1 %v401_v21 }
  0x17   :  { %250 = vmatpush1.bf16.msra.mxu0 %v403_v22  ;;  %291 = vmatpush1.bf16.msra.mxu1 %v404_v23 }
  0x18   :  { %251 = vmatprep.subr.bf16.mxu0 %v405_v24  ;;  %292 = vmatprep.subr.bf16.mxu1 %v407_v25 }
  0x1b   :  { %252 = vmatpush1.bf16.msra.mxu0 %v409_v26  ;;  %293 = vmatpush1.bf16.msra.mxu1 %v410_v27 }
  0x1c   :  { %253 = vmatprep.subr.bf16.mxu0 %v411_v29  ;;  %294 = vmatprep.subr.bf16.mxu1 %v413_v30 }
  0x1f   :  { %254 = vmatpush1.bf16.msra.mxu0 %v415_v32  ;;  %295 = vmatpush1.bf16.msra.mxu1 %v416_v33 }
  0x20   :  { %269 = vmatprep.subr.bf16.mxu0 %v417_v34  ;;  %310 = vmatprep.subr.bf16.mxu1 %v419_v35 }
  0x23   :  { %270 = vmatpush2.bf16.msra.mxu0 %v421_v36  ;;  %311 = vmatpush2.bf16.msra.mxu1 %v422_v37 }
  0x26   :  { %272 = vmatmul.mubr.bf16.vlgmr.msra.gmra.mxu0 %v329_v38  ;;  %313 = vmatmul.mubr.bf16.vlgmr.msra.gmra.mxu1 %v329_v38 }
  0xe6   :  { %v273_v39 = vpop.f32.mrf.mxu0  ;;  %v314_v40 = vpop.f32.mrf.mxu1 }
  0xe7   :  { %321 = vst [vmem:[%s565_s2] sm:$0xff] %v273_v39  ;;  %323 = vst [vmem:[%s565_s2 + $0x10] sm:$0xff] %v314_v40 }
  0xe8   :  { %v275_v41 = vpop.f32.mrf.mxu0  ;;  %v316_v42 = vpop.f32.mrf.mxu1 }
  0xe9   :  { %322 = vst [vmem:[%s565_s2 + $0x8] sm:$0xff] %v275_v41  ;;  %324 = vst [vmem:[%s565_s2 + $0x18] sm:$0xff] %v316_v42 }
  0xea   :  { %v277_v43 = vpop.f32.mrf.mxu0  ;;  %v318_v44 = vpop.f32.mrf.mxu1 }
  0xec   :  { %v278_v45 = vpop.f32.mrf.mxu0  ;;  %v319_v46 = vpop.f32.mrf.mxu1 }

// kernel: synthesis_forward.25
= control target key start
LH: loop header
LB: loop body
LE: loop exit
PB: predicated region body
PF: predicated region fallthrough
CT: control target
= control target key end

     0   :  { %s290_s0 = inlined_call_operand.vmem [shape: f32[9,16,256], index: 0, kind: input, shape index: {}]   ;;  %s291_s1 = inlined_call_operand.vmem [shape: f32[16,256], index: 1, kind: output, shape index: {}]  }
   0x1   :  { %v8_v0 = vld [vmem:[%s290_s0] sm:$0xff]  ;;  %v9_v11 = vld [vmem:[%s290_s0 + $0x8] sm:$0xff]  ;;  %v10_v26 = vld [vmem:[%s290_s0 + $0x10] sm:$0xff] }
   0x2   :  { %v128_v1 = vld [vmem:[%s290_s0 + $0x20] sm:$0xff]  ;;  %v12_v3 = vmul.f32 0.0625, %v8_v0  ;;  %v129_v12 = vld [vmem:[%s290_s0 + $0x28] sm:$0xff]  ;;  %v13_v14 = vmul.f32 0.0625, %v9_v11  ;;  %v130_v27 = vld [vmem:[%s290_s0 + $0x30] sm:$0xff]  ;;  %v14_v31 = vmul.f32 0.0625, %v10_v26 }
   0x3   :  { %v132_v2 = vld [vmem:[%s290_s0 + $0x40] sm:$0xff]  ;;  %v21_v4 = vmul.f32 0.125, %v128_v1  ;;  %v133_v13 = vld [vmem:[%s290_s0 + $0x48] sm:$0xff]  ;;  %v22_v15 = vmul.f32 0.125, %v129_v12  ;;  %v134_v28 = vld [vmem:[%s290_s0 + $0x50] sm:$0xff]  ;;  %v23_v32 = vmul.f32 0.125, %v130_v27 }
   0x4   :  { %v34_v5 = vmul.f32 0.0625, %v132_v2  ;;  %v136_v6 = vld [vmem:[%s290_s0 + $0x60] sm:$0xff]  ;;  %v35_v16 = vmul.f32 0.0625, %v133_v13  ;;  %v137_v17 = vld [vmem:[%s290_s0 + $0x68] sm:$0xff]  ;;  %v36_v33 = vmul.f32 0.0625, %v134_v28  ;;  %v138_v34 = vld [vmem:[%s290_s0 + $0x70] sm:$0xff] }
   0x5   :  { %v140_v7 = vld [vmem:[%s290_s0 + $0x80] sm:$0xff]  ;;  %v25_v9 = vadd.f32 %v21_v4, %v12_v3  ;;  %v47_v10 = vmul.f32 0.125, %v136_v6  ;;  %v141_v22 = vld [vmem:[%s290_s0 + $0x88] sm:$0xff]  ;;  %v26_v24 = vadd.f32 %v22_v15, %v13_v14  ;;  %v48_v25 = vmul.f32 0.125, %v137_v17  ;;  %v142_v39 = vld [vmem:[%s290_s0 + $0x90] sm:$0xff] }
   0x6   :  { %v144_v8 = vld [vmem:[%s290_s0 + $0xa0] sm:$0xff]  ;;  %v60_v19 = vmul.f32 0.25, %v140_v7  ;;  %v145_v30 = vld [vmem:[%s290_s0 + $0xa8] sm:$0xff]  ;;  %v61_v37 = vmul.f32 0.25, %v141_v22  ;;  %v27_v42 = vadd.f32 %v23_v32, %v14_v31  ;;  %v49_v43 = vmul.f32 0.125, %v138_v34  ;;  %v11_v44 = vld [vmem:[%s290_s0 + $0x18] sm:$0xff] }
   0x7   :  { %v38_v18 = vadd.f32 %v34_v5, %v25_v9  ;;  %v148_v20 = vld [vmem:[%s290_s0 + $0xc0] sm:$0xff]  ;;  %v73_v23 = vmul.f32 0.125, %v144_v8  ;;  %v39_v36 = vadd.f32 %v35_v16, %v26_v24  ;;  %v149_v38 = vld [vmem:[%s290_s0 + $0xc8] sm:$0xff]  ;;  %v131_v45 = vld [vmem:[%s290_s0 + $0x38] sm:$0xff]  ;;  %v74_v49 = vmul.f32 0.125, %v145_v30 }
   0x8   :  { %v152_v21 = vld [vmem:[%s290_s0 + $0xe0] sm:$0xff]  ;;  %v86_v35 = vmul.f32 0.0625, %v148_v20  ;;  %v135_v46 = vld [vmem:[%s290_s0 + $0x58] sm:$0xff]  ;;  %v146_v50 = vld [vmem:[%s290_s0 + $0xb0] sm:$0xff]  ;;  %v15_v51 = vmul.f32 0.0625, %v11_v44  ;;  %v24_v52 = vmul.f32 0.125, %v131_v45  ;;  %v40_v56 = vadd.f32 %v36_v33, %v27_v42 }
   0x9   :  { %v51_v29 = vadd.f32 %v47_v10, %v38_v18  ;;  %v99_v41 = vmul.f32 0.125, %v152_v21  ;;  %v156_v47 = vld [vmem:[%s290_s0 + $0x100] sm:$0xff]  ;;  %v52_v48 = vadd.f32 %v48_v25, %v39_v36  ;;  %v139_v53 = vld [vmem:[%s290_s0 + $0x78] sm:$0xff]  ;;  %v153_v55 = vld [vmem:[%s290_s0 + $0xe8] sm:$0xff]  ;;  %v62_v57 = vmul.f32 0.25, %v142_v39 }
   0xa   :  { %v37_v58 = vmul.f32 0.0625, %v135_v46  ;;  %v143_v59 = vld [vmem:[%s290_s0 + $0x98] sm:$0xff]  ;;  %v87_v61 = vmul.f32 0.0625, %v149_v38  ;;  %v150_v62 = vld [vmem:[%s290_s0 + $0xd0] sm:$0xff]  ;;  %v28_v63 = vadd.f32 %v24_v52, %v15_v51  ;;  %v50_v0 = vmul.f32 0.125, %v139_v53  ;;  %v157_v3 = vld [vmem:[%s290_s0 + $0x108] sm:$0xff] }
   0xb   :  { %v64_v40 = vadd.f32 %v60_v19, %v51_v29  ;;  %v65_v60 = vadd.f32 %v61_v37, %v52_v48  ;;  %v112_v2 = vmul.f32 0.0625, %v156_v47  ;;  %v53_v4 = vadd.f32 %v49_v43, %v40_v56  ;;  %v147_v6 = vld [vmem:[%s290_s0 + $0xb8] sm:$0xff]  ;;  %v154_v9 = vld [vmem:[%s290_s0 + $0xf0] sm:$0xff] }
   0xc   :  { %v75_v5 = vmul.f32 0.125, %v146_v50  ;;  %v100_v8 = vmul.f32 0.125, %v153_v55  ;;  %v41_v10 = vadd.f32 %v37_v58, %v28_v63  ;;  %v63_v11 = vmul.f32 0.25, %v143_v59  ;;  %v151_v15 = vld [vmem:[%s290_s0 + $0xd8] sm:$0xff]  ;;  %v158_v18 = vld [vmem:[%s290_s0 + $0x110] sm:$0xff] }
   0xd   :  { %v77_v54 = vadd.f32 %v73_v23, %v64_v40  ;;  %v78_v7 = vadd.f32 %v74_v49, %v65_v60  ;;  %v66_v13 = vadd.f32 %v62_v57, %v53_v4  ;;  %v88_v14 = vmul.f32 0.0625, %v150_v62  ;;  %v155_v24 = vld [vmem:[%s290_s0 + $0xf8] sm:$0xff] }
   0xe   :  { %v113_v17 = vmul.f32 0.0625, %v157_v3  ;;  %v54_v19 = vadd.f32 %v50_v0, %v41_v10  ;;  %v76_v20 = vmul.f32 0.125, %v147_v6  ;;  %v101_v23 = vmul.f32 0.125, %v154_v9  ;;  %v159_v30 = vld [vmem:[%s290_s0 + $0x118] sm:$0xff] }
   0xf   :  { %v90_v1 = vadd.f32 %v86_v35, %v77_v54  ;;  %v91_v16 = vadd.f32 %v87_v61, %v78_v7  ;;  %v79_v22 = vadd.f32 %v75_v5, %v66_v13  ;;  %v89_v27 = vmul.f32 0.0625, %v151_v15 }
  0x10   :  { %v67_v26 = vadd.f32 %v63_v11, %v54_v19  ;;  %v114_v29 = vmul.f32 0.0625, %v158_v18  ;;  %v102_v33 = vmul.f32 0.125, %v155_v24  ;;  %v115_v36 = vmul.f32 0.0625, %v159_v30 }
  0x11   :  { %v103_v12 = vadd.f32 %v99_v41, %v90_v1  ;;  %v104_v25 = vadd.f32 %v100_v8, %v91_v16  ;;  %v92_v28 = vadd.f32 %v88_v14, %v79_v22 }
  0x12   :  { %v80_v32 = vadd.f32 %v76_v20, %v67_v26 }
  0x13   :  { %v116_v21 = vadd.f32 %v112_v2, %v103_v12  ;;  %v117_v31 = vadd.f32 %v113_v17, %v104_v25  ;;  %v105_v34 = vadd.f32 %v101_v23, %v92_v28 }
  0x14   :  { %v93_v35 = vadd.f32 %v89_v27, %v80_v32 }
  0x15   :  { %120 = vst [vmem:[%s291_s1] sm:$0xff] %v116_v21  ;;  %121 = vst [vmem:[%s291_s1 + $0x8] sm:$0xff] %v117_v31  ;;  %v118_v37 = vadd.f32 %v114_v29, %v105_v34 }
  0x16   :  { %v106_v38 = vadd.f32 %v102_v33, %v93_v35 }
  0x17   :  { %122 = vst [vmem:[%s291_s1 + $0x10] sm:$0xff] %v118_v37 }
  0x18   :  { %v119_v39 = vadd.f32 %v115_v36, %v106_v38 }
  0x1a   :  { %123 = vst [vmem:[%s291_s1 + $0x18] sm:$0xff] %v119_v39 }

// kernel: synthesis_forward.26
= control target key start
LH: loop header
LB: loop body
LE: loop exit
PB: predicated region body
PF: predicated region fallthrough
CT: control target
= control target key end

     0   :  { %v193_v0 = vmov 0   ;;  %v35_v3 = vlaneseq  ;;  %s293_s2 = inlined_call_operand.vmem [shape: f32[1,8,1], index: 2, kind: input, shape index: {}]   ;;  %s294_s3 = inlined_call_operand.vmem [shape: f32[1,8,1], index: 3, kind: input, shape index: {}]   ;;  %s295_s1 = inlined_call_operand.vmem [shape: f32[2,1,256], index: 1, kind: input, shape index: {}]   ;;  %s296_s0 = inlined_call_operand.vmem [shape: f32[2,8,256], index: 0, kind: input, shape index: {}]   ;;  %s297_s6 = inlined_call_operand.vmem [shape: f32[1,1,256], index: 6, kind: input, shape index: {}]   ;;  %s298_s4 = inlined_call_operand.vmem [shape: f32[2,8,1], index: 4, kind: input, shape index: {}]   ;;  %s299_s5 = inlined_call_operand.vmem [shape: f32[2,8,1], index: 5, kind: input, shape index: {}]   ;;  %s300_s7 = inlined_call_operand.vmem [shape: f32[2,8,256], index: 7, kind: output, shape index: {}]  }
   0x1   :  { %187 = vset.pattern.permute.xlu0 %v193_v0  ;;  %v32_v1 = vld [vmem:[%s293_s2] sm:$0xff]  ;;  %188 = vset.pattern.permute.xlu1 %v193_v0  ;;  %v27_v15 = vld [vmem:[%s296_s0 + $0x8] sm:$0xff]  ;;  %v28_v16 = vld [vmem:[%s296_s0 + $0x10] sm:$0xff] }
   0x2   :  { %57 = vperm.xlu0 %187, %v32_v1   ;;  %v68_v2 = vld [vmem:[%s294_s3] sm:$0xff]  ;;  %v36_v4 = vshrl.u32 %v35_v3, 7  ;;  %v29_v17 = vld [vmem:[%s296_s0 + $0x18] sm:$0xff]  ;;  %v145_v53 = vld [vmem:[%s298_s4 + $0x8] sm:$0xff] }
   0x3   :  { %v30_v7 = vld [vmem:[%s295_s1] sm:$0x3]  ;;  %v31_v8 = vld [vmem:[%s295_s1 + $0x2] sm:$0x3]  ;;  %v147_v54 = vadd.f32 1.0, %v145_v53  ;;  %v163_v59 = vld [vmem:[%s299_s5 + $0x8] sm:$0xff] }
   0x4   :  { %v37_v5 = vsub.s32 0, %v36_v4  ;;  %v41_v6 = vsub.s32 1, %v36_v4  ;;  %v26_v13 = vld [vmem:[%s296_s0] sm:$0xff] }
   0x5   :  { %v90_v26 = vld [vmem:[%s297_s6] sm:$0x3] }
   0x6   :  { %71 = vperm.xlu0 %187, %v68_v2   ;;  %v38_v9 = vrot.slane %v30_v7, %v37_v5  ;;  %v42_v10 = vrot.slane %v30_v7, %v41_v6  ;;  %v46_v11 = vrot.slane %v31_v8, %v37_v5  ;;  %v50_v12 = vrot.slane %v31_v8, %v41_v6  ;;  %v144_v51 = vld [vmem:[%s298_s4] sm:$0xff] }
   0x7   :  { %v95_v32 = vrot.slane %v90_v26, %v37_v5  ;;  %v99_v33 = vrot.slane %v90_v26, %v41_v6  ;;  %v146_v52 = vadd.f32 1.0, %v144_v51  ;;  %v162_v55 = vld [vmem:[%s299_s5] sm:$0xff] }
  0x7d   :  { %v58_v14 = vpop.permute.xlu0 %57 }
  0x7e   :  { %v60_v18 = vmul.f32 %v58_v14, %v38_v9  ;;  %v61_v19 = vmul.f32 %v58_v14, %v42_v10  ;;  %v62_v20 = vmul.f32 %v58_v14, %v46_v11  ;;  %v63_v21 = vmul.f32 %v58_v14, %v50_v12 }
  0x80   :  { %v64_v22 = vadd.f32 %v60_v18, %v26_v13  ;;  %v65_v23 = vadd.f32 %v61_v19, %v27_v15  ;;  %v66_v24 = vadd.f32 %v62_v20, %v28_v16  ;;  %v67_v25 = vadd.f32 %v63_v21, %v29_v17 }
  0x81   :  { %v72_v27 = vpop.permute.xlu0 %71 }
  0x82   :  { %v74_v28 = vadd.f32 %v72_v27, %v64_v22  ;;  %v75_v29 = vadd.f32 %v72_v27, %v65_v23  ;;  %v76_v30 = vadd.f32 %v72_v27, %v66_v24  ;;  %v77_v31 = vadd.f32 %v72_v27, %v67_v25 }
  0x84   :  { %vm78_vm0 = vcmp.ge.f32.partialorder %v74_v28, 0.0  ;;  %vm79_vm1 = vcmp.ge.f32.partialorder %v75_v29, 0.0  ;;  %v82_v34 = vmul.f32 0.2, %v74_v28  ;;  %v83_v35 = vmul.f32 0.2, %v75_v29 }
  0x85   :  { %vm80_vm2 = vcmp.ge.f32.partialorder %v76_v30, 0.0  ;;  %vm81_vm3 = vcmp.ge.f32.partialorder %v77_v31, 0.0  ;;  %v84_v36 = vmul.f32 0.2, %v76_v30  ;;  %v85_v37 = vmul.f32 0.2, %v77_v31 }
  0x86   :  { %v86_v38 = vsel %vm78_vm0, %v74_v28, %v82_v34  ;;  %v87_v39 = vsel %vm79_vm1, %v75_v29, %v83_v35 }
  0x87   :  { %v102_v40 = vmul.f32 %v95_v32, %v86_v38  ;;  %v103_v41 = vmul.f32 %v99_v33, %v87_v39  ;;  %v261_v42 = vsel %vm80_vm2, %v76_v30, %v84_v36  ;;  %v263_v43 = vsel %vm81_vm3, %v77_v31, %v85_v37 }
  0x88   :  { %v104_v44 = vmul.f32 %v95_v32, %v261_v42  ;;  %v105_v48 = vmul.f32 %v99_v33, %v263_v43 }
  0x89   :  { %v106_v45 = vadd.f32 %v103_v41, %v102_v40  ;;  %v114_v46 = vmul.f32 %v102_v40, %v102_v40  ;;  %v115_v47 = vmul.f32 %v103_v41, %v103_v41 }
  0x8a   :  { %v109_v50 = vadd.f32 %v105_v48, %v104_v44  ;;  %v116_v56 = vmul.f32 %v104_v44, %v104_v44  ;;  %v117_v57 = vmul.f32 %v105_v48, %v105_v48 }
  0x8b   :  { %107 = vadd.xlane.f32.xlu1 %v106_v45  ;;  %v118_v49 = vadd.f32 %v115_v47, %v114_v46 }
  0x8c   :  { %v121_v58 = vadd.f32 %v117_v57, %v116_v56 }
  0x8d   :  { %119 = vadd.xlane.f32.xlu0 %v118_v49 }
  0x8f   :  { %110 = vadd.xlane.f32.xlu1 %v109_v50 }
  0xa0   :  { %150 = vperm.xlu1 %188, %v146_v52  }
  0xa4   :  { %155 = vperm.xlu1 %188, %v147_v54  }
  0xa8   :  { %166 = vperm.xlu1 %188, %v162_v55  }
  0xcc   :  { %122 = vadd.xlane.f32.xlu1 %v121_v58 }
  0xdd   :  { %171 = vperm.xlu1 %188, %v163_v59  }
 0x114   :  { %v108_v60 = vpop.xlane.xlu1 %107 }
 0x115   :  { %v112_v61 = vmul.f32 0.00390625, %v108_v60 }
 0x116   :  { %v120_v62 = vpop.xlane.xlu0 %119 }
 0x117   :  { %v124_v63 = vmul.f32 0.00390625, %v120_v62  ;;  %v126_v0 = vmul.f32 %v112_v61, %v112_v61  ;;  %v132_v7 = vsub.f32 %v86_v38, %v112_v61  ;;  %v133_v8 = vsub.f32 %v87_v39, %v112_v61 }
 0x118   :  { %v111_v4 = vpop.xlane.xlu1 %110 }
 0x119   :  { %v128_v1 = vsub.f32 %v124_v63, %v126_v0  ;;  %v113_v17 = vmul.f32 0.00390625, %v111_v4 }
 0x11b   :  { %v130_v2 = vmax.f32 %v128_v1, 0.0  ;;  %v127_v19 = vmul.f32 %v113_v17, %v113_v17  ;;  %v134_v24 = vsub.f32 %v261_v42, %v113_v17  ;;  %v135_v25 = vsub.f32 %v263_v43, %v113_v17 }
 0x11c   :  { %v151_v5 = vpop.permute.xlu1 %150 }
 0x11d   :  { %v136_v3 = vadd.f32 1e-08, %v130_v2 }
 0x11f   :  { %189 = vrsqrt.f32 %v136_v3 }
 0x120   :  { %v156_v6 = vpop.permute.xlu1 %155 }
 0x124   :  { %v167_v14 = vpop.permute.xlu1 %166 }
 0x12c   :  { %v190_v9 = vpop.eup %189 }
 0x12d   :  { %v140_v10 = vmul.f32 %v190_v9, %v132_v7  ;;  %v141_v11 = vmul.f32 %v190_v9, %v133_v8 }
 0x12f   :  { %v158_v12 = vmul.f32 %v151_v5, %v140_v10  ;;  %v159_v13 = vmul.f32 %v151_v5, %v141_v11 }
 0x131   :  { %v174_v15 = vadd.f32 %v167_v14, %v158_v12  ;;  %v175_v16 = vadd.f32 %v167_v14, %v159_v13 }
 0x133   :  { %178 = vst [vmem:[%s300_s7] sm:$0xff] %v174_v15  ;;  %179 = vst [vmem:[%s300_s7 + $0x8] sm:$0xff] %v175_v16 }
 0x155   :  { %v123_v18 = vpop.xlane.xlu1 %122 }
 0x156   :  { %v125_v20 = vmul.f32 0.00390625, %v123_v18 }
 0x158   :  { %v129_v21 = vsub.f32 %v125_v20, %v127_v19 }
 0x159   :  { %v172_v31 = vpop.permute.xlu1 %171 }
 0x15a   :  { %v131_v22 = vmax.f32 %v129_v21, 0.0 }
 0x15c   :  { %v137_v23 = vadd.f32 1e-08, %v131_v22 }
 0x15e   :  { %191 = vrsqrt.f32 %v137_v23 }
 0x16b   :  { %v192_v26 = vpop.eup %191 }
 0x16c   :  { %v142_v27 = vmul.f32 %v192_v26, %v134_v24  ;;  %v143_v28 = vmul.f32 %v192_v26, %v135_v25 }
 0x16e   :  { %v160_v29 = vmul.f32 %v156_v6, %v142_v27  ;;  %v161_v30 = vmul.f32 %v156_v6, %v143_v28 }
 0x170   :  { %v176_v32 = vadd.f32 %v172_v31, %v160_v29  ;;  %v177_v33 = vadd.f32 %v172_v31, %v161_v30 }
 0x172   :  { %180 = vst [vmem:[%s300_s7 + $0x10] sm:$0xff] %v176_v32  ;;  %181 = vst [vmem:[%s300_s7 + $0x18] sm:$0xff] %v177_v33 }

// kernel: synthesis_forward.27
= control target key start
LH: loop header
LB: loop body
LE: loop exit
PB: predicated region body
PF: predicated region fallthrough
CT: control target
= control target key end

     0   :  { %vm125_vm0 = vcmask 1043456   ;;  %v281_v2 = vmov 0   ;;  %vm121_vm1 = vcmask 588800   ;;  %s366_s1 = inlined_call_operand.vmem [shape: bf16[72,512], index: 1, kind: input, shape index: {}]   ;;  %s367_s0 = inlined_call_operand.vmem [shape: bf16[8,72], index: 0, kind: input, shape index: {}]   ;;  %s368_s2 = inlined_call_operand.vmem [shape: f32[8,512], index: 2, kind: output, shape index: {}]  }
   0x1   :  { %v29_v0 = vld [vmem:[%s366_s1 + $0x80] sm:$0xff]  ;;  %v30_v1 = vld [vmem:[%s366_s1 + $0x88] sm:$0xff]  ;;  %170 = vmatprep.mubr.bf16.mxu0 %v281_v2  ;;  %211 = vmatprep.mubr.bf16.mxu1 %v281_v2 }
   0x2   :  { %v245_v3 = vcombine.high %v29_v0, %v29_v0  ;;  %v247_v4 = vcombine.high %v30_v1, %v30_v1  ;;  %v244_v5 = vcombine.low %v29_v0, %v29_v0  ;;  %v246_v6 = vcombine.low %v30_v1, %v30_v1  ;;  %v257_v7 = vld [vmem:[%s366_s1 + $0x64] ss:$16 sps:$4 sm:$0xff]   ;;  %v259_v8 = vld [vmem:[%s366_s1 + $0x6c] ss:$16 sps:$4 sm:$0xff]   ;;  %v261_v11 = vld [vmem:[%s366_s1 + $0x60] ss:$16 sps:$4 sm:$0xff]  }
   0x3   :  { %v262_v12 = vld [vmem:[%s366_s1 + $0x68] ss:$16 sps:$4 sm:$0xff]   ;;  %v263_v13 = vld [vmem:[%s366_s1 + $0x44] ss:$16 sps:$4 sm:$0xff]   ;;  %v265_v14 = vld [vmem:[%s366_s1 + $0x4c] ss:$16 sps:$4 sm:$0xff]  }
   0x4   :  { %248 = vmatprep.subr.msk.bf16.mxu0 %vm125_vm0, %v245_v3  ;;  %250 = vmatprep.subr.msk.bf16.mxu1 %vm125_vm0, %v247_v4  ;;  %v127_v9 = vsel %vm125_vm0, %v244_v5, 0  ;;  %v133_v10 = vsel %vm125_vm0, %v246_v6, 0  ;;  %v267_v15 = vld [vmem:[%s366_s1 + $0x40] ss:$16 sps:$4 sm:$0xff]   ;;  %v268_v16 = vld [vmem:[%s366_s1 + $0x48] ss:$16 sps:$4 sm:$0xff]  }
   0x5   :  { %145 = vmatpush1.bf16.msra.mxu0 %v127_v9  ;;  %186 = vmatpush1.bf16.msra.mxu1 %v133_v10  ;;  %v269_v17 = vld [vmem:[%s366_s1 + $0x24] ss:$16 sps:$4 sm:$0xff]   ;;  %v271_v18 = vld [vmem:[%s366_s1 + $0x2c] ss:$16 sps:$4 sm:$0xff]   ;;  %v273_v19 = vld [vmem:[%s366_s1 + $0x20] ss:$16 sps:$4 sm:$0xff]  }
   0x6   :  { %146 = vmatprep.subr.bf16.mxu0 %v257_v7  ;;  %187 = vmatprep.subr.bf16.mxu1 %v259_v8  ;;  %v274_v20 = vld [vmem:[%s366_s1 + $0x28] ss:$16 sps:$4 sm:$0xff]   ;;  %v275_v21 = vld [vmem:[%s366_s1 + $0x4] ss:$16 sps:$4 sm:$0xff]   ;;  %v277_v22 = vld [vmem:[%s366_s1 + $0xc] ss:$16 sps:$4 sm:$0xff]  }
   0x7   :  { %v279_v23 = vld [vmem:[%s366_s1] ss:$16 sps:$4 sm:$0xff]   ;;  %v280_v24 = vld [vmem:[%s366_s1 + $0x8] ss:$16 sps:$4 sm:$0xff]  }
   0x8   :  { %v12_v25 = vld [vmem:[%s367_s0] sm:$0xf] }
   0x9   :  { %147 = vmatpush1.bf16.msra.mxu0 %v261_v11  ;;  %188 = vmatpush1.bf16.msra.mxu1 %v262_v12 }
   0xa   :  { %148 = vmatprep.subr.bf16.mxu0 %v263_v13  ;;  %189 = vmatprep.subr.bf16.mxu1 %v265_v14 }
   0xd   :  { %149 = vmatpush1.bf16.msra.mxu0 %v267_v15  ;;  %190 = vmatpush1.bf16.msra.mxu1 %v268_v16 }
   0xe   :  { %150 = vmatprep.subr.bf16.mxu0 %v269_v17  ;;  %191 = vmatprep.subr.bf16.mxu1 %v271_v18 }
  0x11   :  { %151 = vmatpush1.bf16.msra.mxu0 %v273_v19  ;;  %192 = vmatpush1.bf16.msra.mxu1 %v274_v20 }
  0x12   :  { %152 = vmatprep.subr.bf16.mxu0 %v275_v21  ;;  %193 = vmatprep.subr.bf16.mxu1 %v277_v22 }
  0x15   :  { %153 = vmatpush1.bf16.msra.mxu0 %v279_v23  ;;  %194 = vmatpush1.bf16.msra.mxu1 %v280_v24 }
  0x18   :  { %249 = vmatmul.mubr.msk.bf16.vlgmr.msra.gmra.mxu0 %vm121_vm1, %v12_v25  ;;  %251 = vmatmul.mubr.msk.bf16.vlgmr.msra.gmra.mxu1 %vm121_vm1, %v12_v25 }
  0xd8   :  { %v172_v26 = vpop.f32.mrf.mxu0  ;;  %v213_v27 = vpop.f32.mrf.mxu1 }
  0xd9   :  { %220 = vst [vmem:[%s368_s2] sm:$0xff] %v172_v26  ;;  %222 = vst [vmem:[%s368_s2 + $0x10] sm:$0xff] %v213_v27 }
  0xda   :  { %v174_v28 = vpop.f32.mrf.mxu0  ;;  %v215_v29 = vpop.f32.mrf.mxu1 }
  0xdb   :  { %221 = vst [vmem:[%s368_s2 + $0x8] sm:$0xff] %v174_v28  ;;  %223 = vst [vmem:[%s368_s2 + $0x18] sm:$0xff] %v215_v29 }
  0xdc   :  { %v176_v30 = vpop.f32.mrf.mxu0  ;;  %v217_v31 = vpop.f32.mrf.mxu1 }
  0xde   :  { %v177_v32 = vpop.f32.mrf.mxu0  ;;  %v218_v33 = vpop.f32.mrf.mxu1 }

// kernel: synthesis_forward.29
= control target key start
LH: loop header
LB: loop body
LE: loop exit
PB: predicated region body
PF: predicated region fallthrough
CT: control target
= control target key end

     0   :  { %v195_v3 = vmov 0.0   ;;  %vm23_vm0 = vcmask 64512   ;;  %v196_v7 = vmov 0   ;;  %s241_s0 = inlined_call_operand.vmem [shape: f32[2,8,256], index: 0, kind: input, shape index: {}]   ;;  %s242_s1 = inlined_call_operand.vmem [shape: f32[3,8], index: 1, kind: input, shape index: {}]   ;;  %s243_s2 = inlined_call_operand.vmem [shape: f32[3,1], index: 2, kind: input, shape index: {}]   ;;  %s244_s3 = inlined_call_operand.vmem [shape: f32[2,3,256], index: 3, kind: output, shape index: {}]  }
   0x1   :  { %v17_v0 = vld [vmem:[%s241_s0 + $0x8] sm:$0xff]  ;;  %v189_v1 = vld [vmem:[%s241_s0 + $0x18] sm:$0xff]  ;;  %v16_v2 = vld [vmem:[%s241_s0] sm:$0xff]  ;;  %91 = vmatprep.mubr.f32.mxu0 %v195_v3  ;;  %170 = vmatprep.mubr.f32.mxu1 %v195_v3 }
   0x2   :  { %57 = vmatprep.subr.mxu0 %v17_v0  ;;  %136 = vmatprep.subr.mxu1 %v189_v1  ;;  %v188_v4 = vld [vmem:[%s241_s0 + $0x10] sm:$0xff]  ;;  %v14_v5 = vld [vmem:[%s242_s1] sm:$0x7] }
   0x3   :  { %58 = vmatpush1.msra.mxu0 %v16_v2  ;;  %137 = vmatpush1.msra.mxu1 %v188_v4  ;;  %v15_v6 = vld [vmem:[%s243_s2] sm:$0x7] }
   0x4   :  { %187 = vmatmul.mubr.msk.f32.vlgmr.msra.gmra.mxu0 %vm23_vm0, %v14_v5  ;;  %190 = vmatmul.mubr.msk.f32.vlgmr.msra.gmra.mxu1 %vm23_vm0, %v14_v5 }
   0x5   :  { %194 = vset.pattern.permute.xlu0 %v196_v7 }
   0x6   :  { %20 = vperm.xlu0 %194, %v15_v6  }
  0x81   :  { %v21_v8 = vpop.permute.xlu0 %20 }
  0xc4   :  { %v93_v9 = vpop.f32.mrf.mxu0  ;;  %v172_v10 = vpop.f32.mrf.mxu1 }
  0xc5   :  { %v94_v13 = vadd.f32 %v93_v9, %v21_v8  ;;  %v173_v14 = vadd.f32 %v172_v10, %v21_v8 }
  0xc6   :  { %v95_v11 = vpop.f32.mrf.mxu0  ;;  %v174_v12 = vpop.f32.mrf.mxu1 }
  0xc7   :  { %v96_v15 = vadd.f32 %v95_v11, %v21_v8  ;;  %v175_v16 = vadd.f32 %v174_v12, %v21_v8 }
  0xc9   :  { %v100_v17 = vcombine.low %v94_v13, %v96_v15  ;;  %v179_v18 = vcombine.low %v173_v14, %v175_v16 }
  0xcb   :  { %102 = vst [vmem:[%s244_s3] sm:$0x77] %v100_v17  ;;  %191 = vst [vmem:[%s244_s3 + $0x8] sm:$0x77] %v179_v18 }

</bundles_post_ra>
